<compile_context>
chip_gen: v5e
topology: v5e:2x2
jax: 0.10.0
libtpu: 0.0.40
codegen_flags: <defaults>
</compile_context>

<pallas_src>
import functools

import numpy as np
import jax
import jax.numpy as jnp
from jax.experimental import pallas as pl
from jax.experimental.pallas import tpu as pltpu

# The original module reads WAVENET_CONFIG from elsewhere; defined here deterministically.
WAVENET_CONFIG = {
    'activation': 'relu',
    'filters': [32, 64],          # skip_channels = filters[-1]
    'kernel_size': 3,
    'dilations': [1, 2, 4],
    'dropout_rate': 0.2,          # identity at inference
    'use_gating': True,
    'use_skip_scale': False,
    'use_residual_scale': 1.0,
}
BN_EPS = 1e-5  # PyTorch BatchNorm eval with fresh running stats: (x - 0) / sqrt(1 + eps)


# ---------------------------------------------------------------------------
# Fused kernel: initial conv -> residual blocks -> skip sum -> post-skip conv
# -> global average pool -> dense head.  Single invocation, whole batch.
# ---------------------------------------------------------------------------
def wavenet_fused_kernel(x_ref, tcol_ref, pool_ref, other_ref,
                         w_init_ref, b_init_ref,
                         cf_w_ref, cf_b_ref, cg_w_ref, cg_b_ref,
                         rs_w_ref, rs_b_ref, col_scale_ref,
                         post_w_ref, post_b_ref,
                         w1a_ref, w1b_ref, b1_ref,
                         w2_ref, b2_ref, w3_ref, b3_ref,
                         out_ref, hbuf,
                         *, num_layers, kernel_size, dilations, R, NR, pad):
    f32 = jnp.float32
    x = x_ref[...].astype(f32)                         # (NR, F)  rows = batch*time
    tcol = tcol_ref[...]                               # (NR, 1)  per-row time index (-1 on pad rows)

    # Fused trunk state: columns [0:R] = residual-path activation h,
    # columns [R:R+S] = running skip sum (starts at 0 via zero-extended init weights).
    state = jnp.dot(x, w_init_ref[...], preferred_element_type=f32) + b_init_ref[...]

    cf_w = cf_w_ref[...]; cf_b = cf_b_ref[...]         # BN-folded filter conv  (L,K,R,R), (L,1,R)
    cg_w = cg_w_ref[...]; cg_b = cg_b_ref[...]         # BN-folded gate conv
    rs_w = rs_w_ref[...]; rs_b = rs_b_ref[...]         # fused res+skip 1x1 conv (L,R,R+S), (L,1,R+S)
    col_scale = col_scale_ref[...]                     # (1, R+S): 2.0 for h cols, 1.0 for skip cols

    # Zero causal history once; taps that read rows < pad see zeros.
    hbuf[0:pad, :] = jnp.zeros((pad, R), f32)

    for i in range(num_layers):
        d = dilations[i]
        # Stash the current h so the dilated taps are cheap static row-offset loads.
        hbuf[pad:pad + NR, :] = state[:, :R]
        cf_w_i = cf_w[i]
        cg_w_i = cg_w[i]
        f = cf_b[i]                                    # (1, R) -> broadcasts over rows
        g = cg_b[i]
        for k in range(kernel_size):
            s = (kernel_size - 1 - k) * d              # causal left shift of this tap
            if s == 0:
                h_s = state[:, :R]
            else:
                h_s = hbuf[pad - s:pad - s + NR, :]    # rows shifted down by s
                # causal zero padding + stop leakage across batch boundaries
                h_s = jnp.where(tcol >= s, h_s, 0.0)
            # Shared shifted tap feeds both filter and gate convs.  (Kept as two
            # matmuls: fusing them would need an unaligned lane split of the output.)
            f = f + jnp.dot(h_s, cf_w_i[k], preferred_element_type=f32)
            g = g + jnp.dot(h_s, cg_w_i[k], preferred_element_type=f32)
        gated = jnp.tanh(f) * jax.nn.sigmoid(g)        # (NR, R); Dropout = identity at inference
        # Fused residual_proj + skip_proj; model update is x = x + (res_proj + x),
        # skip_sum += skip_proj  ->  state = state * [2|1] + rs.
        rs = jnp.dot(gated, rs_w[i], preferred_element_type=f32) + rs_b[i]
        state = state * col_scale + rs

    # post-skip: relu -> 1x1 conv -> relu.  post_w has zero rows for the h columns,
    # so only the accumulated skip part of `state` contributes.
    post = jnp.maximum(state, 0.0)
    post = jnp.dot(post, post_w_ref[...], preferred_element_type=f32) + post_b_ref[...]
    post = jnp.maximum(post, 0.0)                      # (NR, S)

    # AdaptiveAvgPool1d(1): per-sample mean over its T rows (padding rows excluded).
    pooled = jnp.dot(pool_ref[...], post, preferred_element_type=f32)        # (B, S)

    # Dense head on [pooled ++ other]; the concat is avoided by splitting w1 into
    # its pooled-feature and other-feature row blocks.  Eval-BN already folded in.
    h1 = (jnp.dot(pooled, w1a_ref[...], preferred_element_type=f32)
          + jnp.dot(other_ref[...], w1b_ref[...], preferred_element_type=f32)
          + b1_ref[...])
    h1 = jnp.maximum(h1, 0.0)
    h2 = jnp.dot(h1, w2_ref[...], preferred_element_type=f32) + b2_ref[...]
    h2 = jnp.maximum(h2, 0.0)
    out_ref[...] = jnp.dot(h2, w3_ref[...], preferred_element_type=f32) + b3_ref[...]


# ---------------------------------------------------------------------------
# Wrapper: builds the time-major inputs, folds eval-mode BatchNorm into the
# weights, fuses res/skip projections, and launches a single pallas_call.
# ---------------------------------------------------------------------------
def wavenet_forward(cgm, other, P, dilations, kernel_size):
    """cgm: (B, T, F); other: (B, other_dim). Returns (B, 1) float32."""
    B, T, F = cgm.shape
    L = len(dilations)
    K = kernel_size
    R = P['res_w'].shape[1]                 # residual channels
    S = P['skip_w'].shape[1]                # skip channels
    assert P['w_init'].shape[0] == R        # initial_channels == residual_channels
    inv = 1.0 / np.sqrt(1.0 + BN_EPS)       # eval-mode BN scale

    BT = B * T
    NR = ((BT + 7) // 8) * 8                # pad rows up to a sublane multiple
    max_s = (K - 1) * max(dilations)
    pad = max(8, ((max_s + 7) // 8) * 8)    # zero-history rows (keeps the store 8-aligned)

    # --- inputs in time-major layout: rows = batch*time, cols = channels ------
    x_tc = jnp.reshape(cgm.astype(jnp.float32), (BT, F))
    if NR > BT:
        x_tc = jnp.concatenate([x_tc, jnp.zeros((NR - BT, F), jnp.float32)], axis=0)

    g_idx = np.arange(NR)
    t_local = np.where(g_idx < BT, g_idx % T, -1).astype(np.int32)
    tcol = jnp.asarray(t_local.reshape(NR, 1))

    pool_np = np.zeros((B, NR), np.float32)
    for b in range(B):
        pool_np[b, b * T:(b + 1) * T] = 1.0 / T
    pool = jnp.asarray(pool_np)

    # --- fold eval-mode BatchNorm into weights; transpose convs to (C_in, C_out)
    sf = P['fn_g'] * inv                                              # (L, R)
    sg = P['gn_g'] * inv
    cf_w = jnp.transpose(P['filt_w'], (0, 1, 3, 2)) * sf[:, None, None, :]
    cf_b = (P['filt_b'] * sf + P['fn_b']).reshape(L, 1, R)
    cg_w = jnp.transpose(P['gate_w'], (0, 1, 3, 2)) * sg[:, None, None, :]
    cg_b = (P['gate_b'] * sg + P['gn_b']).reshape(L, 1, R)

    rs_w = jnp.concatenate([jnp.transpose(P['res_w'], (0, 2, 1)),
                            jnp.transpose(P['skip_w'], (0, 2, 1))], axis=2)   # (L, R, R+S)
    rs_b = jnp.concatenate([P['res_b'], P['skip_b']], axis=1).reshape(L, 1, R + S)

    w_init_ext = jnp.concatenate([P['w_init'].T,
                                  jnp.zeros((F, S), jnp.float32)], axis=1)     # (F, R+S)
    b_init_ext = jnp.concatenate([P['b_init'],
                                  jnp.zeros((S,), jnp.float32)]).reshape(1, R + S)
    col_scale = jnp.concatenate([2.0 * jnp.ones((R,), jnp.float32),
                                 jnp.ones((S,), jnp.float32)]).reshape(1, R + S)

    post_w_ext = jnp.concatenate([jnp.zeros((R, S), jnp.float32),
                                  P['post_w'].T], axis=0)                      # (R+S, S)
    post_b = P['post_b'].reshape(1, S)

    s1 = P['g1'] * inv
    w1_eff = P['w1'] * s1[None, :]
    b1_eff = (P['b1'] * s1 + P['be1']).reshape(1, -1)
    w1a, w1b = w1_eff[:S], w1_eff[S:]
    s2 = P['g2'] * inv
    w2_eff = P['w2'] * s2[None, :]
    b2_eff = (P['b2'] * s2 + P['be2']).reshape(1, -1)
    w3 = P['w3']
    b3 = P['b3'].reshape(1, 1)

    kernel = functools.partial(
        wavenet_fused_kernel,
        num_layers=L, kernel_size=K,
        dilations=tuple(int(d) for d in dilations),
        R=R, NR=NR, pad=pad)

    # Single step, everything resident in VMEM (few hundred KB total).  A grid /
    # multi-core split is not worthwhile at this problem size (one fused step).
    return pl.pallas_call(
        kernel,
        out_shape=jax.ShapeDtypeStruct((B, 1), jnp.float32),
        scratch_shapes=[pltpu.VMEM((pad + NR, R), jnp.float32)],
    )(x_tc, tcol, pool, other.astype(jnp.float32),
      w_init_ext, b_init_ext, cf_w, cf_b, cg_w, cg_b, rs_w, rs_b, col_scale,
      post_w_ext, post_b, w1a, w1b, b1_eff, w2_eff, b2_eff, w3, b3)


# ---------------------------------------------------------------------------
# Pure-JAX reference (mirrors the PyTorch forward in eval mode) for validation.
# Uses the UNfolded parameters, so it also validates the BN folding / fusion.
# ---------------------------------------------------------------------------
def reference_forward(cgm, other, P, dilations, K):
    x = jnp.transpose(cgm, (0, 2, 1)).astype(jnp.float32)               # (B, F, T)
    T = x.shape[-1]
    inv = 1.0 / jnp.sqrt(1.0 + BN_EPS)
    h = jnp.einsum('of,bft->bot', P['w_init'], x) + P['b_init'][None, :, None]
    skip_acc = 0.0
    for i, d in enumerate(dilations):
        def dconv(W, b):
            acc = b[None, :, None]
            for k in range(K):
                s = (K - 1 - k) * d
                h_sh = jnp.pad(h, ((0, 0), (0, 0), (s, 0)))[..., :T] if s else h
                acc = acc + jnp.einsum('oc,bct->bot', W[k], h_sh)
            return acc
        f = dconv(P['filt_w'][i], P['filt_b'][i])
        g = dconv(P['gate_w'][i], P['gate_b'][i])
        f = P['fn_g'][i][None, :, None] * (f * inv) + P['fn_b'][i][None, :, None]
        g = P['gn_g'][i][None, :, None] * (g * inv) + P['gn_b'][i][None, :, None]
        gated = jnp.tanh(f) * jax.nn.sigmoid(g)
        res = jnp.einsum('oc,bct->bot', P['res_w'][i], gated) + P['res_b'][i][None, :, None]
        skip = jnp.einsum('oc,bct->bot', P['skip_w'][i], gated) + P['skip_b'][i][None, :, None]
        skip_acc = skip_acc + skip
        # PyTorch: residual_out = res_proj(gated) + x_original; x = x + residual_out
        h = h + (res + h)
    post = jax.nn.relu(skip_acc)
    post = jnp.einsum('oc,bct->bot', P['post_w'], post) + P['post_b'][None, :, None]
    post = jax.nn.relu(post)
    pooled = post.mean(axis=2)
    feat = jnp.concatenate([pooled, other.astype(jnp.float32)], axis=1)
    h1 = jax.nn.relu(P['g1'] * ((feat @ P['w1'] + P['b1']) * inv) + P['be1'])
    h2 = jax.nn.relu(P['g2'] * ((h1 @ P['w2'] + P['b2']) * inv) + P['be2'])
    return h2 @ P['w3'] + P['b3']


# ---------------------------------------------------------------------------
# Deterministic synthetic parameters.
# ---------------------------------------------------------------------------
def init_params(key, cgm_features, other_dim):
    cfg = WAVENET_CONFIG
    L, K = len(cfg['dilations']), cfg['kernel_size']
    Cinit, R = 32, 32                        # initial_channels == residual_channels
    S = cfg['filters'][-1]                   # skip_channels
    Din = S + other_dim
    keys = iter(jax.random.split(key, 64))

    def w(shape, scale=0.1):
        return scale * jax.random.normal(next(keys), shape, jnp.float32)

    return dict(
        w_init=w((Cinit, cgm_features)), b_init=w((Cinit,)),
        filt_w=w((L, K, R, R)), filt_b=w((L, R)),
        gate_w=w((L, K, R, R)), gate_b=w((L, R)),
        fn_g=1.0 + w((L, R)), fn_b=w((L, R)),
        gn_g=1.0 + w((L, R)), gn_b=w((L, R)),
        res_w=w((L, R, R)), res_b=w((L, R)),
        skip_w=w((L, S, R)), skip_b=w((L, S)),
        post_w=w((S, S)), post_b=w((S,)),
        w1=w((Din, 128)), b1=w((128,)), g1=1.0 + w((128,)), be1=w((128,)),
        w2=w((128, 64)), b2=w((64,)), g2=1.0 + w((64,)), be2=w((64,)),
        w3=w((64, 1)), b3=w((1,)),
    )


if __name__ == "__main__":
    key = jax.random.PRNGKey(0)
    k1, k2, k3 = jax.random.split(key, 3)

    B, T, F = 4, 16, 3            # cgm_shape = (time_steps=16, features=3)
    other_dim = 6                 # other_features_shape = (6,)
    cgm = jax.random.normal(k1, (B, T, F), jnp.float32)
    other = jax.random.normal(k2, (B, other_dim), jnp.float32)
    P = init_params(k3, F, other_dim)

    out = wavenet_forward(cgm, other, P,
                          WAVENET_CONFIG['dilations'], WAVENET_CONFIG['kernel_size'])
    out = jax.block_until_ready(out)

    ref = reference_forward(cgm, other, P,
                            WAVENET_CONFIG['dilations'], WAVENET_CONFIG['kernel_size'])
    assert out.shape == (B, 1), out.shape
    assert jnp.allclose(out, ref, rtol=5e-4, atol=5e-4), (out, ref)
    print("KERNEL_OK")
</pallas_src>

<mosaic_0001>
module attributes {stable_mosaic.version = 11 : i64} {
  func.func @wavenet_fused_kernel(%arg0: memref<64x3xf32, #tpu.memory_space<vmem>>, %arg1: memref<64x1xi32, #tpu.memory_space<vmem>>, %arg2: memref<4x64xf32, #tpu.memory_space<vmem>>, %arg3: memref<4x6xf32, #tpu.memory_space<vmem>>, %arg4: memref<3x96xf32, #tpu.memory_space<vmem>>, %arg5: memref<1x96xf32, #tpu.memory_space<vmem>>, %arg6: memref<3x3x32x32xf32, #tpu.memory_space<vmem>>, %arg7: memref<3x1x32xf32, #tpu.memory_space<vmem>>, %arg8: memref<3x3x32x32xf32, #tpu.memory_space<vmem>>, %arg9: memref<3x1x32xf32, #tpu.memory_space<vmem>>, %arg10: memref<3x32x96xf32, #tpu.memory_space<vmem>>, %arg11: memref<3x1x96xf32, #tpu.memory_space<vmem>>, %arg12: memref<1x96xf32, #tpu.memory_space<vmem>>, %arg13: memref<96x64xf32, #tpu.memory_space<vmem>>, %arg14: memref<1x64xf32, #tpu.memory_space<vmem>>, %arg15: memref<64x128xf32, #tpu.memory_space<vmem>>, %arg16: memref<6x128xf32, #tpu.memory_space<vmem>>, %arg17: memref<1x128xf32, #tpu.memory_space<vmem>>, %arg18: memref<128x64xf32, #tpu.memory_space<vmem>>, %arg19: memref<1x64xf32, #tpu.memory_space<vmem>>, %arg20: memref<64x1xf32, #tpu.memory_space<vmem>>, %arg21: memref<1x1xf32, #tpu.memory_space<vmem>>, %arg22: memref<4x1xf32, #tpu.memory_space<vmem>>, %arg23: memref<72x32xf32, #tpu.memory_space<vmem>>) attributes {dimension_semantics = [], scalar_prefetch = 0 : i64, scratch_operands = 1 : i64, tpu.core_type = #tpu.core_type<tc>} {
    %c0 = arith.constant 0 : index
    %c0_0 = arith.constant 0 : index
    %0 = vector.load %arg0[%c0, %c0_0] : memref<64x3xf32, #tpu.memory_space<vmem>>, vector<64x3xf32>
    %c0_1 = arith.constant 0 : index
    %c0_2 = arith.constant 0 : index
    %1 = vector.load %arg1[%c0_1, %c0_2] : memref<64x1xi32, #tpu.memory_space<vmem>>, vector<64x1xi32>
    %c0_3 = arith.constant 0 : index
    %c0_4 = arith.constant 0 : index
    %2 = vector.load %arg4[%c0_3, %c0_4] : memref<3x96xf32, #tpu.memory_space<vmem>>, vector<3x96xf32>
    %cst = arith.constant dense<0.000000e+00> : vector<64x96xf32>
    %3 = tpu.matmul %0, %2, %cst {dimension_numbers = #tpu.dot_dimension_numbers<[1], [0], [0], [1], [0, 0, 1, 1], [], []>} : vector<64x3xf32>, vector<3x96xf32>, vector<64x96xf32> -> vector<64x96xf32>
    %c0_5 = arith.constant 0 : index
    %c0_6 = arith.constant 0 : index
    %4 = vector.load %arg5[%c0_5, %c0_6] : memref<1x96xf32, #tpu.memory_space<vmem>>, vector<1x96xf32>
    %5 = vector.broadcast %4 : vector<1x96xf32> to vector<64x96xf32>
    %6 = arith.addf %3, %5 : vector<64x96xf32>
    %c0_7 = arith.constant 0 : index
    %c0_8 = arith.constant 0 : index
    %c0_9 = arith.constant 0 : index
    %c0_10 = arith.constant 0 : index
    %7 = vector.load %arg6[%c0_7, %c0_8, %c0_9, %c0_10] : memref<3x3x32x32xf32, #tpu.memory_space<vmem>>, vector<3x3x32x32xf32>
    %c0_11 = arith.constant 0 : index
    %c0_12 = arith.constant 0 : index
    %c0_13 = arith.constant 0 : index
    %8 = vector.load %arg7[%c0_11, %c0_12, %c0_13] : memref<3x1x32xf32, #tpu.memory_space<vmem>>, vector<3x1x32xf32>
    %c0_14 = arith.constant 0 : index
    %c0_15 = arith.constant 0 : index
    %c0_16 = arith.constant 0 : index
    %c0_17 = arith.constant 0 : index
    %9 = vector.load %arg8[%c0_14, %c0_15, %c0_16, %c0_17] : memref<3x3x32x32xf32, #tpu.memory_space<vmem>>, vector<3x3x32x32xf32>
    %c0_18 = arith.constant 0 : index
    %c0_19 = arith.constant 0 : index
    %c0_20 = arith.constant 0 : index
    %10 = vector.load %arg9[%c0_18, %c0_19, %c0_20] : memref<3x1x32xf32, #tpu.memory_space<vmem>>, vector<3x1x32xf32>
    %c0_21 = arith.constant 0 : index
    %c0_22 = arith.constant 0 : index
    %c0_23 = arith.constant 0 : index
    %11 = vector.load %arg10[%c0_21, %c0_22, %c0_23] : memref<3x32x96xf32, #tpu.memory_space<vmem>>, vector<3x32x96xf32>
    %c0_24 = arith.constant 0 : index
    %c0_25 = arith.constant 0 : index
    %c0_26 = arith.constant 0 : index
    %12 = vector.load %arg11[%c0_24, %c0_25, %c0_26] : memref<3x1x96xf32, #tpu.memory_space<vmem>>, vector<3x1x96xf32>
    %c0_27 = arith.constant 0 : index
    %c0_28 = arith.constant 0 : index
    %13 = vector.load %arg12[%c0_27, %c0_28] : memref<1x96xf32, #tpu.memory_space<vmem>>, vector<1x96xf32>
    %cst_29 = arith.constant 0.000000e+00 : f32
    %14 = vector.broadcast %cst_29 : f32 to vector<8x32xf32>
    %c0_30 = arith.constant 0 : index
    %c0_31 = arith.constant 0 : index
    %15 = vector.load %arg23[%c0_30, %c0_31] : memref<72x32xf32, #tpu.memory_space<vmem>>, vector<8x32xf32>
    tpu.vector_store %arg23[%c0_30, %c0_31], %14 {strides = array<i32>} : memref<72x32xf32, #tpu.memory_space<vmem>>, vector<8x32xf32>,
    %16 = vector.extract_strided_slice %6 {offsets = [0, 0], sizes = [64, 32], strides = [1, 1]} : vector<64x96xf32> to vector<64x32xf32>
    %c8 = arith.constant 8 : index
    %c0_32 = arith.constant 0 : index
    %17 = vector.load %arg23[%c8, %c0_32] : memref<72x32xf32, #tpu.memory_space<vmem>>, vector<64x32xf32>
    tpu.vector_store %arg23[%c8, %c0_32], %16 {strides = array<i32>} : memref<72x32xf32, #tpu.memory_space<vmem>>, vector<64x32xf32>,
    %18 = vector.extract_strided_slice %7 {offsets = [0, 0, 0, 0], sizes = [1, 3, 32, 32], strides = [1, 1, 1, 1]} : vector<3x3x32x32xf32> to vector<1x3x32x32xf32>
    %19 = vector.shape_cast %18 : vector<1x3x32x32xf32> to vector<3x32x32xf32>
    %20 = vector.extract_strided_slice %9 {offsets = [0, 0, 0, 0], sizes = [1, 3, 32, 32], strides = [1, 1, 1, 1]} : vector<3x3x32x32xf32> to vector<1x3x32x32xf32>
    %21 = vector.shape_cast %20 : vector<1x3x32x32xf32> to vector<3x32x32xf32>
    %22 = vector.extract_strided_slice %8 {offsets = [0, 0, 0], sizes = [1, 1, 32], strides = [1, 1, 1]} : vector<3x1x32xf32> to vector<1x1x32xf32>
    %23 = vector.shape_cast %22 : vector<1x1x32xf32> to vector<1x32xf32>
    %24 = vector.extract_strided_slice %10 {offsets = [0, 0, 0], sizes = [1, 1, 32], strides = [1, 1, 1]} : vector<3x1x32xf32> to vector<1x1x32xf32>
    %25 = vector.shape_cast %24 : vector<1x1x32xf32> to vector<1x32xf32>
    %c6 = arith.constant 6 : index
    %c0_33 = arith.constant 0 : index
    %26 = vector.load %arg23[%c6, %c0_33] : memref<72x32xf32, #tpu.memory_space<vmem>>, vector<64x32xf32>
    %c2_i32 = arith.constant 2 : i32
    %27 = vector.broadcast %c2_i32 : i32 to vector<64x1xi32>
    %28 = arith.cmpi sge, %1, %27 : vector<64x1xi32>
    %cst_34 = arith.constant 0.000000e+00 : f32
    %29 = vector.shape_cast %28 : vector<64x1xi1> to vector<64x1xi1>
    %30 = vector.broadcast %29 : vector<64x1xi1> to vector<64x32xi1>
    %31 = vector.broadcast %cst_34 : f32 to vector<64x32xf32>
    %32 = arith.select %30, %26, %31 : vector<64x32xi1>, vector<64x32xf32>
    %33 = vector.extract_strided_slice %19 {offsets = [0, 0, 0], sizes = [1, 32, 32], strides = [1, 1, 1]} : vector<3x32x32xf32> to vector<1x32x32xf32>
    %34 = vector.shape_cast %33 : vector<1x32x32xf32> to vector<32x32xf32>
    %cst_35 = arith.constant dense<0.000000e+00> : vector<64x32xf32>
    %35 = tpu.matmul %32, %34, %cst_35 {dimension_numbers = #tpu.dot_dimension_numbers<[1], [0], [0], [1], [0, 0, 1, 1], [], []>} : vector<64x32xf32>, vector<32x32xf32>, vector<64x32xf32> -> vector<64x32xf32>
    %36 = vector.broadcast %23 : vector<1x32xf32> to vector<64x32xf32>
    %37 = arith.addf %36, %35 : vector<64x32xf32>
    %38 = vector.extract_strided_slice %21 {offsets = [0, 0, 0], sizes = [1, 32, 32], strides = [1, 1, 1]} : vector<3x32x32xf32> to vector<1x32x32xf32>
    %39 = vector.shape_cast %38 : vector<1x32x32xf32> to vector<32x32xf32>
    %cst_36 = arith.constant dense<0.000000e+00> : vector<64x32xf32>
    %40 = tpu.matmul %32, %39, %cst_36 {dimension_numbers = #tpu.dot_dimension_numbers<[1], [0], [0], [1], [0, 0, 1, 1], [], []>} : vector<64x32xf32>, vector<32x32xf32>, vector<64x32xf32> -> vector<64x32xf32>
    %41 = vector.broadcast %25 : vector<1x32xf32> to vector<64x32xf32>
    %42 = arith.addf %41, %40 : vector<64x32xf32>
    %c7 = arith.constant 7 : index
    %c0_37 = arith.constant 0 : index
    %43 = vector.load %arg23[%c7, %c0_37] : memref<72x32xf32, #tpu.memory_space<vmem>>, vector<64x32xf32>
    %c1_i32 = arith.constant 1 : i32
    %44 = vector.broadcast %c1_i32 : i32 to vector<64x1xi32>
    %45 = arith.cmpi sge, %1, %44 : vector<64x1xi32>
    %cst_38 = arith.constant 0.000000e+00 : f32
    %46 = vector.shape_cast %45 : vector<64x1xi1> to vector<64x1xi1>
    %47 = vector.broadcast %46 : vector<64x1xi1> to vector<64x32xi1>
    %48 = vector.broadcast %cst_38 : f32 to vector<64x32xf32>
    %49 = arith.select %47, %43, %48 : vector<64x32xi1>, vector<64x32xf32>
    %50 = vector.extract_strided_slice %19 {offsets = [1, 0, 0], sizes = [1, 32, 32], strides = [1, 1, 1]} : vector<3x32x32xf32> to vector<1x32x32xf32>
    %51 = vector.shape_cast %50 : vector<1x32x32xf32> to vector<32x32xf32>
    %cst_39 = arith.constant dense<0.000000e+00> : vector<64x32xf32>
    %52 = tpu.matmul %49, %51, %cst_39 {dimension_numbers = #tpu.dot_dimension_numbers<[1], [0], [0], [1], [0, 0, 1, 1], [], []>} : vector<64x32xf32>, vector<32x32xf32>, vector<64x32xf32> -> vector<64x32xf32>
    %53 = arith.addf %37, %52 : vector<64x32xf32>
    %54 = vector.extract_strided_slice %21 {offsets = [1, 0, 0], sizes = [1, 32, 32], strides = [1, 1, 1]} : vector<3x32x32xf32> to vector<1x32x32xf32>
    %55 = vector.shape_cast %54 : vector<1x32x32xf32> to vector<32x32xf32>
    %cst_40 = arith.constant dense<0.000000e+00> : vector<64x32xf32>
    %56 = tpu.matmul %49, %55, %cst_40 {dimension_numbers = #tpu.dot_dimension_numbers<[1], [0], [0], [1], [0, 0, 1, 1], [], []>} : vector<64x32xf32>, vector<32x32xf32>, vector<64x32xf32> -> vector<64x32xf32>
    %57 = arith.addf %42, %56 : vector<64x32xf32>
    %58 = vector.extract_strided_slice %6 {offsets = [0, 0], sizes = [64, 32], strides = [1, 1]} : vector<64x96xf32> to vector<64x32xf32>
    %59 = vector.extract_strided_slice %19 {offsets = [2, 0, 0], sizes = [1, 32, 32], strides = [1, 1, 1]} : vector<3x32x32xf32> to vector<1x32x32xf32>
    %60 = vector.shape_cast %59 : vector<1x32x32xf32> to vector<32x32xf32>
    %cst_41 = arith.constant dense<0.000000e+00> : vector<64x32xf32>
    %61 = tpu.matmul %58, %60, %cst_41 {dimension_numbers = #tpu.dot_dimension_numbers<[1], [0], [0], [1], [0, 0, 1, 1], [], []>} : vector<64x32xf32>, vector<32x32xf32>, vector<64x32xf32> -> vector<64x32xf32>
    %62 = arith.addf %53, %61 : vector<64x32xf32>
    %63 = vector.extract_strided_slice %21 {offsets = [2, 0, 0], sizes = [1, 32, 32], strides = [1, 1, 1]} : vector<3x32x32xf32> to vector<1x32x32xf32>
    %64 = vector.shape_cast %63 : vector<1x32x32xf32> to vector<32x32xf32>
    %cst_42 = arith.constant dense<0.000000e+00> : vector<64x32xf32>
    %65 = tpu.matmul %58, %64, %cst_42 {dimension_numbers = #tpu.dot_dimension_numbers<[1], [0], [0], [1], [0, 0, 1, 1], [], []>} : vector<64x32xf32>, vector<32x32xf32>, vector<64x32xf32> -> vector<64x32xf32>
    %66 = arith.addf %57, %65 : vector<64x32xf32>
    %67 = math.tanh %62 : vector<64x32xf32>
    %68 = arith.negf %66 : vector<64x32xf32>
    %69 = math.exp %68 : vector<64x32xf32>
    %cst_43 = arith.constant 1.000000e+00 : f32
    %70 = vector.broadcast %cst_43 : f32 to vector<64x32xf32>
    %71 = arith.addf %70, %69 : vector<64x32xf32>
    %72 = arith.divf %70, %71 : vector<64x32xf32>
    %73 = arith.mulf %67, %72 : vector<64x32xf32>
    %74 = vector.extract_strided_slice %11 {offsets = [0, 0, 0], sizes = [1, 32, 96], strides = [1, 1, 1]} : vector<3x32x96xf32> to vector<1x32x96xf32>
    %75 = vector.shape_cast %74 : vector<1x32x96xf32> to vector<32x96xf32>
    %cst_44 = arith.constant dense<0.000000e+00> : vector<64x96xf32>
    %76 = tpu.matmul %73, %75, %cst_44 {dimension_numbers = #tpu.dot_dimension_numbers<[1], [0], [0], [1], [0, 0, 1, 1], [], []>} : vector<64x32xf32>, vector<32x96xf32>, vector<64x96xf32> -> vector<64x96xf32>
    %77 = vector.extract_strided_slice %12 {offsets = [0, 0, 0], sizes = [1, 1, 96], strides = [1, 1, 1]} : vector<3x1x96xf32> to vector<1x1x96xf32>
    %78 = vector.shape_cast %77 : vector<1x1x96xf32> to vector<1x96xf32>
    %79 = vector.broadcast %78 : vector<1x96xf32> to vector<64x96xf32>
    %80 = arith.addf %76, %79 : vector<64x96xf32>
    %81 = vector.broadcast %13 : vector<1x96xf32> to vector<64x96xf32>
    %82 = arith.mulf %6, %81 : vector<64x96xf32>
    %83 = arith.addf %82, %80 : vector<64x96xf32>
    %84 = vector.extract_strided_slice %83 {offsets = [0, 0], sizes = [64, 32], strides = [1, 1]} : vector<64x96xf32> to vector<64x32xf32>
    %c8_45 = arith.constant 8 : index
    %c0_46 = arith.constant 0 : index
    %85 = vector.load %arg23[%c8_45, %c0_46] : memref<72x32xf32, #tpu.memory_space<vmem>>, vector<64x32xf32>
    tpu.vector_store %arg23[%c8_45, %c0_46], %84 {strides = array<i32>} : memref<72x32xf32, #tpu.memory_space<vmem>>, vector<64x32xf32>,
    %86 = vector.extract_strided_slice %7 {offsets = [1, 0, 0, 0], sizes = [1, 3, 32, 32], strides = [1, 1, 1, 1]} : vector<3x3x32x32xf32> to vector<1x3x32x32xf32>
    %87 = vector.shape_cast %86 : vector<1x3x32x32xf32> to vector<3x32x32xf32>
    %88 = vector.extract_strided_slice %9 {offsets = [1, 0, 0, 0], sizes = [1, 3, 32, 32], strides = [1, 1, 1, 1]} : vector<3x3x32x32xf32> to vector<1x3x32x32xf32>
    %89 = vector.shape_cast %88 : vector<1x3x32x32xf32> to vector<3x32x32xf32>
    %90 = vector.extract_strided_slice %8 {offsets = [1, 0, 0], sizes = [1, 1, 32], strides = [1, 1, 1]} : vector<3x1x32xf32> to vector<1x1x32xf32>
    %91 = vector.shape_cast %90 : vector<1x1x32xf32> to vector<1x32xf32>
    %92 = vector.extract_strided_slice %10 {offsets = [1, 0, 0], sizes = [1, 1, 32], strides = [1, 1, 1]} : vector<3x1x32xf32> to vector<1x1x32xf32>
    %93 = vector.shape_cast %92 : vector<1x1x32xf32> to vector<1x32xf32>
    %c4 = arith.constant 4 : index
    %c0_47 = arith.constant 0 : index
    %94 = vector.load %arg23[%c4, %c0_47] : memref<72x32xf32, #tpu.memory_space<vmem>>, vector<64x32xf32>
    %c4_i32 = arith.constant 4 : i32
    %95 = vector.broadcast %c4_i32 : i32 to vector<64x1xi32>
    %96 = arith.cmpi sge, %1, %95 : vector<64x1xi32>
    %cst_48 = arith.constant 0.000000e+00 : f32
    %97 = vector.shape_cast %96 : vector<64x1xi1> to vector<64x1xi1>
    %98 = vector.broadcast %97 : vector<64x1xi1> to vector<64x32xi1>
    %99 = vector.broadcast %cst_48 : f32 to vector<64x32xf32>
    %100 = arith.select %98, %94, %99 : vector<64x32xi1>, vector<64x32xf32>
    %101 = vector.extract_strided_slice %87 {offsets = [0, 0, 0], sizes = [1, 32, 32], strides = [1, 1, 1]} : vector<3x32x32xf32> to vector<1x32x32xf32>
    %102 = vector.shape_cast %101 : vector<1x32x32xf32> to vector<32x32xf32>
    %cst_49 = arith.constant dense<0.000000e+00> : vector<64x32xf32>
    %103 = tpu.matmul %100, %102, %cst_49 {dimension_numbers = #tpu.dot_dimension_numbers<[1], [0], [0], [1], [0, 0, 1, 1], [], []>} : vector<64x32xf32>, vector<32x32xf32>, vector<64x32xf32> -> vector<64x32xf32>
    %104 = vector.broadcast %91 : vector<1x32xf32> to vector<64x32xf32>
    %105 = arith.addf %104, %103 : vector<64x32xf32>
    %106 = vector.extract_strided_slice %89 {offsets = [0, 0, 0], sizes = [1, 32, 32], strides = [1, 1, 1]} : vector<3x32x32xf32> to vector<1x32x32xf32>
    %107 = vector.shape_cast %106 : vector<1x32x32xf32> to vector<32x32xf32>
    %cst_50 = arith.constant dense<0.000000e+00> : vector<64x32xf32>
    %108 = tpu.matmul %100, %107, %cst_50 {dimension_numbers = #tpu.dot_dimension_numbers<[1], [0], [0], [1], [0, 0, 1, 1], [], []>} : vector<64x32xf32>, vector<32x32xf32>, vector<64x32xf32> -> vector<64x32xf32>
    %109 = vector.broadcast %93 : vector<1x32xf32> to vector<64x32xf32>
    %110 = arith.addf %109, %108 : vector<64x32xf32>
    %c6_51 = arith.constant 6 : index
    %c0_52 = arith.constant 0 : index
    %111 = vector.load %arg23[%c6_51, %c0_52] : memref<72x32xf32, #tpu.memory_space<vmem>>, vector<64x32xf32>
    %c2_i32_53 = arith.constant 2 : i32
    %112 = vector.broadcast %c2_i32_53 : i32 to vector<64x1xi32>
    %113 = arith.cmpi sge, %1, %112 : vector<64x1xi32>
    %cst_54 = arith.constant 0.000000e+00 : f32
    %114 = vector.shape_cast %113 : vector<64x1xi1> to vector<64x1xi1>
    %115 = vector.broadcast %114 : vector<64x1xi1> to vector<64x32xi1>
    %116 = vector.broadcast %cst_54 : f32 to vector<64x32xf32>
    %117 = arith.select %115, %111, %116 : vector<64x32xi1>, vector<64x32xf32>
    %118 = vector.extract_strided_slice %87 {offsets = [1, 0, 0], sizes = [1, 32, 32], strides = [1, 1, 1]} : vector<3x32x32xf32> to vector<1x32x32xf32>
    %119 = vector.shape_cast %118 : vector<1x32x32xf32> to vector<32x32xf32>
    %cst_55 = arith.constant dense<0.000000e+00> : vector<64x32xf32>
    %120 = tpu.matmul %117, %119, %cst_55 {dimension_numbers = #tpu.dot_dimension_numbers<[1], [0], [0], [1], [0, 0, 1, 1], [], []>} : vector<64x32xf32>, vector<32x32xf32>, vector<64x32xf32> -> vector<64x32xf32>
    %121 = arith.addf %105, %120 : vector<64x32xf32>
    %122 = vector.extract_strided_slice %89 {offsets = [1, 0, 0], sizes = [1, 32, 32], strides = [1, 1, 1]} : vector<3x32x32xf32> to vector<1x32x32xf32>
    %123 = vector.shape_cast %122 : vector<1x32x32xf32> to vector<32x32xf32>
    %cst_56 = arith.constant dense<0.000000e+00> : vector<64x32xf32>
    %124 = tpu.matmul %117, %123, %cst_56 {dimension_numbers = #tpu.dot_dimension_numbers<[1], [0], [0], [1], [0, 0, 1, 1], [], []>} : vector<64x32xf32>, vector<32x32xf32>, vector<64x32xf32> -> vector<64x32xf32>
    %125 = arith.addf %110, %124 : vector<64x32xf32>
    %126 = vector.extract_strided_slice %83 {offsets = [0, 0], sizes = [64, 32], strides = [1, 1]} : vector<64x96xf32> to vector<64x32xf32>
    %127 = vector.extract_strided_slice %87 {offsets = [2, 0, 0], sizes = [1, 32, 32], strides = [1, 1, 1]} : vector<3x32x32xf32> to vector<1x32x32xf32>
    %128 = vector.shape_cast %127 : vector<1x32x32xf32> to vector<32x32xf32>
    %cst_57 = arith.constant dense<0.000000e+00> : vector<64x32xf32>
    %129 = tpu.matmul %126, %128, %cst_57 {dimension_numbers = #tpu.dot_dimension_numbers<[1], [0], [0], [1], [0, 0, 1, 1], [], []>} : vector<64x32xf32>, vector<32x32xf32>, vector<64x32xf32> -> vector<64x32xf32>
    %130 = arith.addf %121, %129 : vector<64x32xf32>
    %131 = vector.extract_strided_slice %89 {offsets = [2, 0, 0], sizes = [1, 32, 32], strides = [1, 1, 1]} : vector<3x32x32xf32> to vector<1x32x32xf32>
    %132 = vector.shape_cast %131 : vector<1x32x32xf32> to vector<32x32xf32>
    %cst_58 = arith.constant dense<0.000000e+00> : vector<64x32xf32>
    %133 = tpu.matmul %126, %132, %cst_58 {dimension_numbers = #tpu.dot_dimension_numbers<[1], [0], [0], [1], [0, 0, 1, 1], [], []>} : vector<64x32xf32>, vector<32x32xf32>, vector<64x32xf32> -> vector<64x32xf32>
    %134 = arith.addf %125, %133 : vector<64x32xf32>
    %135 = math.tanh %130 : vector<64x32xf32>
    %136 = arith.negf %134 : vector<64x32xf32>
    %137 = math.exp %136 : vector<64x32xf32>
    %cst_59 = arith.constant 1.000000e+00 : f32
    %138 = vector.broadcast %cst_59 : f32 to vector<64x32xf32>
    %139 = arith.addf %138, %137 : vector<64x32xf32>
    %140 = arith.divf %138, %139 : vector<64x32xf32>
    %141 = arith.mulf %135, %140 : vector<64x32xf32>
    %142 = vector.extract_strided_slice %11 {offsets = [1, 0, 0], sizes = [1, 32, 96], strides = [1, 1, 1]} : vector<3x32x96xf32> to vector<1x32x96xf32>
    %143 = vector.shape_cast %142 : vector<1x32x96xf32> to vector<32x96xf32>
    %cst_60 = arith.constant dense<0.000000e+00> : vector<64x96xf32>
    %144 = tpu.matmul %141, %143, %cst_60 {dimension_numbers = #tpu.dot_dimension_numbers<[1], [0], [0], [1], [0, 0, 1, 1], [], []>} : vector<64x32xf32>, vector<32x96xf32>, vector<64x96xf32> -> vector<64x96xf32>
    %145 = vector.extract_strided_slice %12 {offsets = [1, 0, 0], sizes = [1, 1, 96], strides = [1, 1, 1]} : vector<3x1x96xf32> to vector<1x1x96xf32>
    %146 = vector.shape_cast %145 : vector<1x1x96xf32> to vector<1x96xf32>
    %147 = vector.broadcast %146 : vector<1x96xf32> to vector<64x96xf32>
    %148 = arith.addf %144, %147 : vector<64x96xf32>
    %149 = vector.broadcast %13 : vector<1x96xf32> to vector<64x96xf32>
    %150 = arith.mulf %83, %149 : vector<64x96xf32>
    %151 = arith.addf %150, %148 : vector<64x96xf32>
    %152 = vector.extract_strided_slice %151 {offsets = [0, 0], sizes = [64, 32], strides = [1, 1]} : vector<64x96xf32> to vector<64x32xf32>
    %c8_61 = arith.constant 8 : index
    %c0_62 = arith.constant 0 : index
    %153 = vector.load %arg23[%c8_61, %c0_62] : memref<72x32xf32, #tpu.memory_space<vmem>>, vector<64x32xf32>
    tpu.vector_store %arg23[%c8_61, %c0_62], %152 {strides = array<i32>} : memref<72x32xf32, #tpu.memory_space<vmem>>, vector<64x32xf32>,
    %154 = vector.extract_strided_slice %7 {offsets = [2, 0, 0, 0], sizes = [1, 3, 32, 32], strides = [1, 1, 1, 1]} : vector<3x3x32x32xf32> to vector<1x3x32x32xf32>
    %155 = vector.shape_cast %154 : vector<1x3x32x32xf32> to vector<3x32x32xf32>
    %156 = vector.extract_strided_slice %9 {offsets = [2, 0, 0, 0], sizes = [1, 3, 32, 32], strides = [1, 1, 1, 1]} : vector<3x3x32x32xf32> to vector<1x3x32x32xf32>
    %157 = vector.shape_cast %156 : vector<1x3x32x32xf32> to vector<3x32x32xf32>
    %158 = vector.extract_strided_slice %8 {offsets = [2, 0, 0], sizes = [1, 1, 32], strides = [1, 1, 1]} : vector<3x1x32xf32> to vector<1x1x32xf32>
    %159 = vector.shape_cast %158 : vector<1x1x32xf32> to vector<1x32xf32>
    %160 = vector.extract_strided_slice %10 {offsets = [2, 0, 0], sizes = [1, 1, 32], strides = [1, 1, 1]} : vector<3x1x32xf32> to vector<1x1x32xf32>
    %161 = vector.shape_cast %160 : vector<1x1x32xf32> to vector<1x32xf32>
    %c0_63 = arith.constant 0 : index
    %c0_64 = arith.constant 0 : index
    %162 = vector.load %arg23[%c0_63, %c0_64] : memref<72x32xf32, #tpu.memory_space<vmem>>, vector<64x32xf32>
    %c8_i32 = arith.constant 8 : i32
    %163 = vector.broadcast %c8_i32 : i32 to vector<64x1xi32>
    %164 = arith.cmpi sge, %1, %163 : vector<64x1xi32>
    %cst_65 = arith.constant 0.000000e+00 : f32
    %165 = vector.shape_cast %164 : vector<64x1xi1> to vector<64x1xi1>
    %166 = vector.broadcast %165 : vector<64x1xi1> to vector<64x32xi1>
    %167 = vector.broadcast %cst_65 : f32 to vector<64x32xf32>
    %168 = arith.select %166, %162, %167 : vector<64x32xi1>, vector<64x32xf32>
    %169 = vector.extract_strided_slice %155 {offsets = [0, 0, 0], sizes = [1, 32, 32], strides = [1, 1, 1]} : vector<3x32x32xf32> to vector<1x32x32xf32>
    %170 = vector.shape_cast %169 : vector<1x32x32xf32> to vector<32x32xf32>
    %cst_66 = arith.constant dense<0.000000e+00> : vector<64x32xf32>
    %171 = tpu.matmul %168, %170, %cst_66 {dimension_numbers = #tpu.dot_dimension_numbers<[1], [0], [0], [1], [0, 0, 1, 1], [], []>} : vector<64x32xf32>, vector<32x32xf32>, vector<64x32xf32> -> vector<64x32xf32>
    %172 = vector.broadcast %159 : vector<1x32xf32> to vector<64x32xf32>
    %173 = arith.addf %172, %171 : vector<64x32xf32>
    %174 = vector.extract_strided_slice %157 {offsets = [0, 0, 0], sizes = [1, 32, 32], strides = [1, 1, 1]} : vector<3x32x32xf32> to vector<1x32x32xf32>
    %175 = vector.shape_cast %174 : vector<1x32x32xf32> to vector<32x32xf32>
    %cst_67 = arith.constant dense<0.000000e+00> : vector<64x32xf32>
    %176 = tpu.matmul %168, %175, %cst_67 {dimension_numbers = #tpu.dot_dimension_numbers<[1], [0], [0], [1], [0, 0, 1, 1], [], []>} : vector<64x32xf32>, vector<32x32xf32>, vector<64x32xf32> -> vector<64x32xf32>
    %177 = vector.broadcast %161 : vector<1x32xf32> to vector<64x32xf32>
    %178 = arith.addf %177, %176 : vector<64x32xf32>
    %c4_68 = arith.constant 4 : index
    %c0_69 = arith.constant 0 : index
    %179 = vector.load %arg23[%c4_68, %c0_69] : memref<72x32xf32, #tpu.memory_space<vmem>>, vector<64x32xf32>
    %c4_i32_70 = arith.constant 4 : i32
    %180 = vector.broadcast %c4_i32_70 : i32 to vector<64x1xi32>
    %181 = arith.cmpi sge, %1, %180 : vector<64x1xi32>
    %cst_71 = arith.constant 0.000000e+00 : f32
    %182 = vector.shape_cast %181 : vector<64x1xi1> to vector<64x1xi1>
    %183 = vector.broadcast %182 : vector<64x1xi1> to vector<64x32xi1>
    %184 = vector.broadcast %cst_71 : f32 to vector<64x32xf32>
    %185 = arith.select %183, %179, %184 : vector<64x32xi1>, vector<64x32xf32>
    %186 = vector.extract_strided_slice %155 {offsets = [1, 0, 0], sizes = [1, 32, 32], strides = [1, 1, 1]} : vector<3x32x32xf32> to vector<1x32x32xf32>
    %187 = vector.shape_cast %186 : vector<1x32x32xf32> to vector<32x32xf32>
    %cst_72 = arith.constant dense<0.000000e+00> : vector<64x32xf32>
    %188 = tpu.matmul %185, %187, %cst_72 {dimension_numbers = #tpu.dot_dimension_numbers<[1], [0], [0], [1], [0, 0, 1, 1], [], []>} : vector<64x32xf32>, vector<32x32xf32>, vector<64x32xf32> -> vector<64x32xf32>
    %189 = arith.addf %173, %188 : vector<64x32xf32>
    %190 = vector.extract_strided_slice %157 {offsets = [1, 0, 0], sizes = [1, 32, 32], strides = [1, 1, 1]} : vector<3x32x32xf32> to vector<1x32x32xf32>
    %191 = vector.shape_cast %190 : vector<1x32x32xf32> to vector<32x32xf32>
    %cst_73 = arith.constant dense<0.000000e+00> : vector<64x32xf32>
    %192 = tpu.matmul %185, %191, %cst_73 {dimension_numbers = #tpu.dot_dimension_numbers<[1], [0], [0], [1], [0, 0, 1, 1], [], []>} : vector<64x32xf32>, vector<32x32xf32>, vector<64x32xf32> -> vector<64x32xf32>
    %193 = arith.addf %178, %192 : vector<64x32xf32>
    %194 = vector.extract_strided_slice %151 {offsets = [0, 0], sizes = [64, 32], strides = [1, 1]} : vector<64x96xf32> to vector<64x32xf32>
    %195 = vector.extract_strided_slice %155 {offsets = [2, 0, 0], sizes = [1, 32, 32], strides = [1, 1, 1]} : vector<3x32x32xf32> to vector<1x32x32xf32>
    %196 = vector.shape_cast %195 : vector<1x32x32xf32> to vector<32x32xf32>
    %cst_74 = arith.constant dense<0.000000e+00> : vector<64x32xf32>
    %197 = tpu.matmul %194, %196, %cst_74 {dimension_numbers = #tpu.dot_dimension_numbers<[1], [0], [0], [1], [0, 0, 1, 1], [], []>} : vector<64x32xf32>, vector<32x32xf32>, vector<64x32xf32> -> vector<64x32xf32>
    %198 = arith.addf %189, %197 : vector<64x32xf32>
    %199 = vector.extract_strided_slice %157 {offsets = [2, 0, 0], sizes = [1, 32, 32], strides = [1, 1, 1]} : vector<3x32x32xf32> to vector<1x32x32xf32>
    %200 = vector.shape_cast %199 : vector<1x32x32xf32> to vector<32x32xf32>
    %cst_75 = arith.constant dense<0.000000e+00> : vector<64x32xf32>
    %201 = tpu.matmul %194, %200, %cst_75 {dimension_numbers = #tpu.dot_dimension_numbers<[1], [0], [0], [1], [0, 0, 1, 1], [], []>} : vector<64x32xf32>, vector<32x32xf32>, vector<64x32xf32> -> vector<64x32xf32>
    %202 = arith.addf %193, %201 : vector<64x32xf32>
    %203 = math.tanh %198 : vector<64x32xf32>
    %204 = arith.negf %202 : vector<64x32xf32>
    %205 = math.exp %204 : vector<64x32xf32>
    %cst_76 = arith.constant 1.000000e+00 : f32
    %206 = vector.broadcast %cst_76 : f32 to vector<64x32xf32>
    %207 = arith.addf %206, %205 : vector<64x32xf32>
    %208 = arith.divf %206, %207 : vector<64x32xf32>
    %209 = arith.mulf %203, %208 : vector<64x32xf32>
    %210 = vector.extract_strided_slice %11 {offsets = [2, 0, 0], sizes = [1, 32, 96], strides = [1, 1, 1]} : vector<3x32x96xf32> to vector<1x32x96xf32>
    %211 = vector.shape_cast %210 : vector<1x32x96xf32> to vector<32x96xf32>
    %cst_77 = arith.constant dense<0.000000e+00> : vector<64x96xf32>
    %212 = tpu.matmul %209, %211, %cst_77 {dimension_numbers = #tpu.dot_dimension_numbers<[1], [0], [0], [1], [0, 0, 1, 1], [], []>} : vector<64x32xf32>, vector<32x96xf32>, vector<64x96xf32> -> vector<64x96xf32>
    %213 = vector.extract_strided_slice %12 {offsets = [2, 0, 0], sizes = [1, 1, 96], strides = [1, 1, 1]} : vector<3x1x96xf32> to vector<1x1x96xf32>
    %214 = vector.shape_cast %213 : vector<1x1x96xf32> to vector<1x96xf32>
    %215 = vector.broadcast %214 : vector<1x96xf32> to vector<64x96xf32>
    %216 = arith.addf %212, %215 : vector<64x96xf32>
    %217 = vector.broadcast %13 : vector<1x96xf32> to vector<64x96xf32>
    %218 = arith.mulf %151, %217 : vector<64x96xf32>
    %219 = arith.addf %218, %216 : vector<64x96xf32>
    %cst_78 = arith.constant 0.000000e+00 : f32
    %220 = vector.broadcast %cst_78 : f32 to vector<64x96xf32>
    %221 = arith.maximumf %219, %220 : vector<64x96xf32>
    %c0_79 = arith.constant 0 : index
    %c0_80 = arith.constant 0 : index
    %222 = vector.load %arg13[%c0_79, %c0_80] : memref<96x64xf32, #tpu.memory_space<vmem>>, vector<96x64xf32>
    %cst_81 = arith.constant dense<0.000000e+00> : vector<64x64xf32>
    %223 = tpu.matmul %221, %222, %cst_81 {dimension_numbers = #tpu.dot_dimension_numbers<[1], [0], [0], [1], [0, 0, 1, 1], [], []>} : vector<64x96xf32>, vector<96x64xf32>, vector<64x64xf32> -> vector<64x64xf32>
    %c0_82 = arith.constant 0 : index
    %c0_83 = arith.constant 0 : index
    %224 = vector.load %arg14[%c0_82, %c0_83] : memref<1x64xf32, #tpu.memory_space<vmem>>, vector<1x64xf32>
    %225 = vector.broadcast %224 : vector<1x64xf32> to vector<64x64xf32>
    %226 = arith.addf %223, %225 : vector<64x64xf32>
    %cst_84 = arith.constant 0.000000e+00 : f32
    %227 = vector.broadcast %cst_84 : f32 to vector<64x64xf32>
    %228 = arith.maximumf %226, %227 : vector<64x64xf32>
    %c0_85 = arith.constant 0 : index
    %c0_86 = arith.constant 0 : index
    %229 = vector.load %arg2[%c0_85, %c0_86] : memref<4x64xf32, #tpu.memory_space<vmem>>, vector<4x64xf32>
    %cst_87 = arith.constant dense<0.000000e+00> : vector<4x64xf32>
    %230 = tpu.matmul %229, %228, %cst_87 {dimension_numbers = #tpu.dot_dimension_numbers<[1], [0], [0], [1], [0, 0, 1, 1], [], []>} : vector<4x64xf32>, vector<64x64xf32>, vector<4x64xf32> -> vector<4x64xf32>
    %c0_88 = arith.constant 0 : index
    %c0_89 = arith.constant 0 : index
    %231 = vector.load %arg15[%c0_88, %c0_89] : memref<64x128xf32, #tpu.memory_space<vmem>>, vector<64x128xf32>
    %cst_90 = arith.constant dense<0.000000e+00> : vector<4x128xf32>
    %232 = tpu.matmul %230, %231, %cst_90 {dimension_numbers = #tpu.dot_dimension_numbers<[1], [0], [0], [1], [0, 0, 1, 1], [], []>} : vector<4x64xf32>, vector<64x128xf32>, vector<4x128xf32> -> vector<4x128xf32>
    %c0_91 = arith.constant 0 : index
    %c0_92 = arith.constant 0 : index
    %233 = vector.load %arg3[%c0_91, %c0_92] : memref<4x6xf32, #tpu.memory_space<vmem>>, vector<4x6xf32>
    %c0_93 = arith.constant 0 : index
    %c0_94 = arith.constant 0 : index
    %234 = vector.load %arg16[%c0_93, %c0_94] : memref<6x128xf32, #tpu.memory_space<vmem>>, vector<6x128xf32>
    %cst_95 = arith.constant dense<0.000000e+00> : vector<4x128xf32>
    %235 = tpu.matmul %233, %234, %cst_95 {dimension_numbers = #tpu.dot_dimension_numbers<[1], [0], [0], [1], [0, 0, 1, 1], [], []>} : vector<4x6xf32>, vector<6x128xf32>, vector<4x128xf32> -> vector<4x128xf32>
    %236 = arith.addf %232, %235 : vector<4x128xf32>
    %c0_96 = arith.constant 0 : index
    %c0_97 = arith.constant 0 : index
    %237 = vector.load %arg17[%c0_96, %c0_97] : memref<1x128xf32, #tpu.memory_space<vmem>>, vector<1x128xf32>
    %238 = vector.broadcast %237 : vector<1x128xf32> to vector<4x128xf32>
    %239 = arith.addf %236, %238 : vector<4x128xf32>
    %cst_98 = arith.constant 0.000000e+00 : f32
    %240 = vector.broadcast %cst_98 : f32 to vector<4x128xf32>
    %241 = arith.maximumf %239, %240 : vector<4x128xf32>
    %c0_99 = arith.constant 0 : index
    %c0_100 = arith.constant 0 : index
    %242 = vector.load %arg18[%c0_99, %c0_100] : memref<128x64xf32, #tpu.memory_space<vmem>>, vector<128x64xf32>
    %cst_101 = arith.constant dense<0.000000e+00> : vector<4x64xf32>
    %243 = tpu.matmul %241, %242, %cst_101 {dimension_numbers = #tpu.dot_dimension_numbers<[1], [0], [0], [1], [0, 0, 1, 1], [], []>} : vector<4x128xf32>, vector<128x64xf32>, vector<4x64xf32> -> vector<4x64xf32>
    %c0_102 = arith.constant 0 : index
    %c0_103 = arith.constant 0 : index
    %244 = vector.load %arg19[%c0_102, %c0_103] : memref<1x64xf32, #tpu.memory_space<vmem>>, vector<1x64xf32>
    %245 = vector.broadcast %244 : vector<1x64xf32> to vector<4x64xf32>
    %246 = arith.addf %243, %245 : vector<4x64xf32>
    %cst_104 = arith.constant 0.000000e+00 : f32
    %247 = vector.broadcast %cst_104 : f32 to vector<4x64xf32>
    %248 = arith.maximumf %246, %247 : vector<4x64xf32>
    %c0_105 = arith.constant 0 : index
    %c0_106 = arith.constant 0 : index
    %249 = vector.load %arg20[%c0_105, %c0_106] : memref<64x1xf32, #tpu.memory_space<vmem>>, vector<64x1xf32>
    %cst_107 = arith.constant dense<0.000000e+00> : vector<4x1xf32>
    %250 = tpu.matmul %248, %249, %cst_107 {dimension_numbers = #tpu.dot_dimension_numbers<[1], [0], [0], [1], [0, 0, 1, 1], [], []>} : vector<4x64xf32>, vector<64x1xf32>, vector<4x1xf32> -> vector<4x1xf32>
    %c0_108 = arith.constant 0 : index
    %c0_109 = arith.constant 0 : index
    %251 = vector.load %arg21[%c0_108, %c0_109] : memref<1x1xf32, #tpu.memory_space<vmem>>, vector<1x1xf32>
    %252 = vector.broadcast %251 : vector<1x1xf32> to vector<4x1xf32>
    %253 = arith.addf %250, %252 : vector<4x1xf32>
    %c0_110 = arith.constant 0 : index
    %c0_111 = arith.constant 0 : index
    %254 = vector.load %arg22[%c0_110, %c0_111] : memref<4x1xf32, #tpu.memory_space<vmem>>, vector<4x1xf32>
    tpu.vector_store %arg22[%c0_110, %c0_111], %253 {strides = array<i32>} : memref<4x1xf32, #tpu.memory_space<vmem>>, vector<4x1xf32>,
    return
  }
}

</mosaic_0001>

<bundles_post_ra>
// kernel: tpu_custom_call.1
= control target key start
LH: loop header
LB: loop body
LE: loop exit
PB: predicated region body
PF: predicated region fallthrough
CT: control target
= control target key end

     0   :  { %s4543_s0 = inlined_call_operand.vmem [shape: f32[64,3], index: 0, kind: input, shape index: {}]   ;;  %s4544_s1 = inlined_call_operand.vmem [shape: s32[64,1], index: 1, kind: input, shape index: {}]   ;;  %s4545_s2 = inlined_call_operand.vmem [shape: f32[4,64], index: 2, kind: input, shape index: {}]   ;;  %s4546_s3 = inlined_call_operand.vmem [shape: f32[4,6], index: 3, kind: input, shape index: {}]   ;;  %s4547_s4 = inlined_call_operand.vmem [shape: f32[3,96], index: 4, kind: input, shape index: {}]   ;;  %s4548_s5 = inlined_call_operand.vmem [shape: f32[1,96], index: 5, kind: input, shape index: {}]   ;;  %s4549_s6 = inlined_call_operand.vmem [shape: f32[3,3,32,32], index: 6, kind: input, shape index: {}]   ;;  %s4550_s7 = inlined_call_operand.vmem [shape: f32[3,1,32], index: 7, kind: input, shape index: {}]   ;;  %s4551_s8 = inlined_call_operand.hbm [shape: f32[3,3,32,32], index: 8, kind: input, shape index: {}]   ;;  %s4552_s9 = inlined_call_operand.vmem [shape: f32[3,1,32], index: 9, kind: input, shape index: {}]   ;;  %s4553_s10 = inlined_call_operand.hbm [shape: f32[3,32,96], index: 10, kind: input, shape index: {}]   ;;  %s4554_s11 = inlined_call_operand.vmem [shape: f32[3,1,96], index: 11, kind: input, shape index: {}]   ;;  %s4555_s12 = inlined_call_operand.vmem [shape: f32[1,96], index: 12, kind: input, shape index: {}]   ;;  %s4556_s13 = inlined_call_operand.vmem [shape: f32[96,64], index: 13, kind: input, shape index: {}]   ;;  %s4557_s14 = inlined_call_operand.vmem [shape: f32[1,64], index: 14, kind: input, shape index: {}]   ;;  %s4558_s15 = inlined_call_operand.vmem [shape: f32[64,128], index: 15, kind: input, shape index: {}]   ;;  %s4559_s16 = inlined_call_operand.vmem [shape: f32[6,128], index: 16, kind: input, shape index: {}]   ;;  %s4560_s17 = inlined_call_operand.vmem [shape: f32[1,128], index: 17, kind: input, shape index: {}]   ;;  %s4561_s18 = inlined_call_operand.vmem [shape: f32[128,64], index: 18, kind: input, shape index: {}]   ;;  %s4562_s19 = inlined_call_operand.vmem [shape: f32[1,64], index: 19, kind: input, shape index: {}]   ;;  %s4563_s20 = inlined_call_operand.vmem [shape: f32[64,1], index: 20, kind: input, shape index: {}]   ;;  %s4564_s21 = inlined_call_operand.<no memory space> [shape: f32[1,1], index: 21, kind: input, shape index: {}]   ;;  %s4565_s22 = inlined_call_operand.vmem [shape: f32[4,1], index: 22, kind: output, shape index: {}]  }
   0x1   :  { %4569 = sst [smem:[#allocation10_spill]] %s4543_s0  ;;  %v27_v0 = vstv %s4564_s21 }
   0x2   :  { %4570 = sst [smem:[#allocation11_spill]] %s4544_s1  ;;  %28 = vst [vmem:[#allocation3] sm:$0x1] %v27_v0 }
   0x3   :  { %4571 = sst [smem:[#allocation12_spill]] %s4545_s2 }
   0x4   :  { %4572 = sst [smem:[#allocation13_spill]] %s4546_s3 }
   0x5   :  { %4573 = sst [smem:[#allocation14_spill]] %s4547_s4 }
   0x6   :  { %4574 = sst [smem:[#allocation15_spill]] %s4548_s5 }
   0x7   :  { %4575 = sst [smem:[#allocation16_spill]] %s4549_s6 }
   0x8   :  { %29 = vsyncpa [#allocation5], 0  ;;  %s51_s4 = sshll.u32 %s4551_s8, 4  ;;  %s52_s4 = int_to_ptr.hbm [resolvable:$true] %s51_s4 }
   0x9   :  { %30 = vsyncpa [#allocation7], 0  ;;  %s3188_s0 = smov [#allocation4]   ;;  %s66_s24 = sshll.u32 %s4553_s10, 4  ;;  %s67_s24 = int_to_ptr.hbm [resolvable:$true] %s66_s24 }
   0xa   :  { %s53_s23 = sshll.u32 %s3188_s0, 4  ;;  %s3189_s6 = smov 128   ;;  %s54_s23 = int_to_ptr.vmem [resolvable:$true] %s53_s23 }
   0xb   :  { %s3190_s25 = smov 8   ;;  %s3191_s21 = smov [#allocation6]  }
   0xc   :  { %59 = dma.hbm_to_vmem [thread:$0]  %s52_s4, 4608, %s54_s23, [#allocation5], %s3189_s6, %s3189_s6, %s3190_s25  }
   0xd   :  { %s68_s26 = sshll.u32 %s3191_s21, 4  ;;  %s69_s26 = int_to_ptr.vmem [resolvable:$true] %s68_s26 }
   0xe   :  { %74 = dma.hbm_to_vmem [thread:$0]  %s67_s24, 1536, %s69_s26, [#allocation7], %s3189_s6, %s3189_s6, %s3190_s25  }
   0xf   :  { %3184 = dma.done.wait [#allocation5], 4608  }
  0x10   :  { %3185 = vsyncadd [#allocation5], 4294962688 }
  0x11   :  { %3186 = dma.done.wait [#allocation7], 1536  }
  0x12   :  { %3187 = vsyncadd [#allocation7], 4294965760  ;;  %v3192_v1 = vmov 0   ;;  %vm151_vm0 = vcmask 1042432   ;;  %vm126_vm1 = vcmask 23552   ;;  %s4576_s2 = sld [smem:[#allocation14_spill]] }
  0x13   :  { %2974 = vset.pattern.permute.xlu1 %v3192_v1  ;;  %2973 = vset.pattern.permute.xlu0 %v3192_v1  ;;  %s4577_s28 = sld [smem:[#allocation10_spill]]  ;;  %v238_v52 = vld [vmem:[#allocation4 + $0x18] sm:$0xff]  ;;  %v3193_v55 = vmov 0.0   ;;  %v237_v57 = vld [vmem:[#allocation4 + $0x10] sm:$0xff]  ;;  %v236_v61 = vld [vmem:[#allocation4 + $0x8] sm:$0xff] }
  0x14   :  { %2975 = vset.pattern.permute.xlu2 %v3192_v1  ;;  %s4578_s4 = sld [smem:[#allocation11_spill]]  ;;  %452 = vmatpush.msra.mxu2 %v238_v52  ;;  %v242_v54 = vld [vmem:[#allocation4 + $0x38] sm:$0xff]  ;;  %v241_v59 = vld [vmem:[#allocation4 + $0x30] sm:$0xff]  ;;  %v240_v63 = vld [vmem:[#allocation4 + $0x28] sm:$0xff] }
  0x15   :  { %s4579_s27 = sld [smem:[#allocation16_spill]] }
  0x16   :  { %453 = vmatpush.msra.mxu2 %v237_v57  ;;  %v243_v57 = vld [vmem:[#allocation4 + $0x40] sm:$0xff]  ;;  %s4581_s25 = sld [smem:[#allocation12_spill]] }
  0x17   :  { %s4582_s0 = sld [smem:[#allocation13_spill]] }
  0x18   :  { %v121_v2 = vld [vmem:[%s4576_s2] sm:$0x7]  ;;  %454 = vmatpush.msra.mxu2 %v236_v61  ;;  %s4580_s2 = sld [smem:[#allocation15_spill]] }
  0x19   :  { %v105_v3 = vld [vmem:[%s4577_s28] sm:$0xff]  ;;  %2753 = vmatpush.msk.msra.mxu0 %vm151_vm0, %v121_v2  ;;  %v106_v13 = vld [vmem:[%s4577_s28 + $0x8] sm:$0xff]  ;;  %v107_v19 = vld [vmem:[%s4577_s28 + $0x10] sm:$0xff] }
  0x1a   :  { %v3330_v4 = vld [vmem:[%s4578_s4 + $0x10] sm:$0xff]  ;;  %v3336_v5 = vld [vmem:[%s4578_s4] sm:$0xff]  ;;  %2754 = vmatmul.msk.f32.vlgmr.msra.gmra.mxu0 %vm126_vm1, %v105_v3  ;;  %v3350_v8 = vld [vmem:[%s4578_s4 + $0x18] sm:$0xff] }
  0x1b   :  { %vm310_vm2 = vcmp.ge.s32.totalorder %v3330_v4, 2  ;;  %v3341_v6 = vld [vmem:[%s4578_s4 + $0x20] sm:$0xff]  ;;  %vm308_vm3 = vcmp.ge.s32.totalorder %v3336_v5, 2  ;;  %v3357_v11 = vld [vmem:[%s4578_s4 + $0x8] sm:$0xff]  ;;  %vm311_vm5 = vcmp.ge.s32.totalorder %v3350_v8, 2  ;;  %v3377_v17 = vld [vmem:[%s4578_s4 + $0x38] sm:$0xff]  ;;  %641 = vmatpush.msrb.mxu0 %v242_v54 }
  0x1c   :  { %v318_v7 = vsel %vm310_vm2, 1, %v3192_v1  ;;  %vm312_vm4 = vcmp.ge.s32.totalorder %v3341_v6, 2  ;;  %v316_v9 = vsel %vm308_vm3, 1, %v3192_v1  ;;  %v3362_v12 = vld [vmem:[%s4578_s4 + $0x28] sm:$0xff]  ;;  %vm309_vm6 = vcmp.ge.s32.totalorder %v3357_v11, 2  ;;  %v3382_v18 = vld [vmem:[%s4578_s4 + $0x30] sm:$0xff] }
  0x1d   :  { %331 = vperm.xlu1 %2974, %v318_v7   ;;  %v320_v10 = vsel %vm312_vm4, 1, %v3192_v1  ;;  %325 = vperm.xlu0 %2973, %v316_v9   ;;  %vm313_vm7 = vcmp.ge.s32.totalorder %v3362_v12, 2  ;;  %v319_v14 = vsel %vm311_vm5, 1, %v3192_v1  ;;  %v317_v15 = vsel %vm309_vm6, 1, %v3192_v1  ;;  %v108_v23 = vld [vmem:[%s4577_s28 + $0x18] sm:$0xff]  ;;  %v109_v27 = vld [vmem:[%s4577_s28 + $0x20] sm:$0xff] }
  0x1e   :  { %337 = vperm.xlu2 %2975, %v320_v10   ;;  %v321_v16 = vsel %vm313_vm7, 1, %v3192_v1  ;;  %vm315_vm8 = vcmp.ge.s32.totalorder %v3377_v17, 2  ;;  %vm314_vm9 = vcmp.ge.s32.totalorder %v3382_v18, 2  ;;  %vm500_vm10 = vcmp.ge.s32.totalorder %v3336_v5, 1  ;;  %v110_v34 = vld [vmem:[%s4577_s28 + $0x28] sm:$0xff]  ;;  %v111_v41 = vld [vmem:[%s4577_s28 + $0x30] sm:$0xff]  ;;  %642 = vmatpush.msrb.mxu0 %v241_v59 }
  0x1f   :  { %v323_v20 = vsel %vm315_vm8, 1, %v3192_v1  ;;  %v322_v21 = vsel %vm314_vm9, 1, %v3192_v1  ;;  %v508_v22 = vsel %vm500_vm10, 1, %v3192_v1  ;;  %vm502_vm11 = vcmp.ge.s32.totalorder %v3330_v4, 1  ;;  %v112_v46 = vld [vmem:[%s4577_s28 + $0x38] sm:$0xff]  ;;  %v198_v56 = vld [vmem:[%s4579_s27 + $0x10] sm:$0xff] }
  0x20   :  { %vm501_vm12 = vcmp.ge.s32.totalorder %v3357_v11, 1  ;;  %vm503_vm13 = vcmp.ge.s32.totalorder %v3350_v8, 1  ;;  %v510_v24 = vsel %vm502_vm11, 1, %v3192_v1  ;;  %vm505_vm14 = vcmp.ge.s32.totalorder %v3362_v12, 1  ;;  %v199_v51 = vld [vmem:[%s4579_s27 + $0x18] sm:$0xff]  ;;  %v202_v58 = vld [vmem:[%s4579_s27 + $0x30] sm:$0xff]  ;;  %643 = vmatpush.msrb.mxu0 %v240_v63 }
  0x21   :  { %v509_v25 = vsel %vm501_vm12, 1, %v3192_v1  ;;  %v511_v26 = vsel %vm503_vm13, 1, %v3192_v1  ;;  %vm504_vm15 = vcmp.ge.s32.totalorder %v3341_v6, 1  ;;  %vm506_vm0 = vcmp.ge.s32.totalorder %v3382_v18, 1  ;;  %v203_v53 = vld [vmem:[%s4579_s27 + $0x38] sm:$0xff]  ;;  %400 = vmatpush.msra.mxu1 %v199_v51  ;;  %v197_v60 = vld [vmem:[%s4579_s27 + $0x8] sm:$0xff] }
  0x22   :  { %2755 = vmatmul.msk.f32.gmra.mxu0 %vm126_vm1, %v106_v13  ;;  %v513_v28 = vsel %vm505_vm14, 1, %v3192_v1  ;;  %v512_v29 = vsel %vm504_vm15, 1, %v3192_v1  ;;  %v514_v30 = vsel %vm506_vm0, 1, %v3192_v1  ;;  %vm1783_vm2 = vcmp.ge.s32.totalorder %v3336_v5, 8  ;;  %592 = vmatpush.msra.mxu3 %v203_v53  ;;  %v201_v62 = vld [vmem:[%s4579_s27 + $0x28] sm:$0xff]  ;;  %v196_v0 = vld [vmem:[%s4579_s27] sm:$0xff] }
  0x23   :  { %v1791_v31 = vsel %vm1783_vm2, 1, %v3192_v1  ;;  %vm1785_vm3 = vcmp.ge.s32.totalorder %v3330_v4, 8  ;;  %vm1787_vm4 = vcmp.ge.s32.totalorder %v3341_v6, 8  ;;  %vm1071_vm5 = vcmp.ge.s32.totalorder %v3336_v5, 4  ;;  %401 = vmatpush.msra.mxu1 %v198_v56  ;;  %v200_v2 = vld [vmem:[%s4579_s27 + $0x20] sm:$0xff]  ;;  %v239_v3 = vld [vmem:[#allocation4 + $0x20] sm:$0xff] }
  0x24   :  { %v1793_v32 = vsel %vm1785_vm3, 1, %v3192_v1  ;;  %v1795_v33 = vsel %vm1787_vm4, 1, %v3192_v1  ;;  %vm507_vm6 = vcmp.ge.s32.totalorder %v3377_v17, 1  ;;  %vm1072_vm7 = vcmp.ge.s32.totalorder %v3357_v11, 4  ;;  %593 = vmatpush.msra.mxu3 %v202_v58  ;;  %644 = vmatpush.msrb.mxu0 %v239_v3  ;;  %v204_v56 = vld [vmem:[%s4579_s27 + $0x40] sm:$0xff] }
  0x25   :  { %334 = vperm.xlu1 %2974, %v319_v14   ;;  %328 = vperm.xlu0 %2973, %v317_v15   ;;  %v1079_v35 = vsel %vm1071_vm5, 1, %v3192_v1  ;;  %v515_v36 = vsel %vm507_vm6, 1, %v3192_v1  ;;  %v1080_v37 = vsel %vm1072_vm7, 1, %v3192_v1  ;;  %vm1786_vm8 = vcmp.ge.s32.totalorder %v3350_v8, 8 }
  0x26   :  { %340 = vperm.xlu2 %2975, %v321_v16   ;;  %v1794_v38 = vsel %vm1786_vm8, 1, %v3192_v1  ;;  %vm1788_vm9 = vcmp.ge.s32.totalorder %v3362_v12, 8  ;;  %vm1790_vm10 = vcmp.ge.s32.totalorder %v3377_v17, 8  ;;  %vm1074_vm11 = vcmp.ge.s32.totalorder %v3350_v8, 4  ;;  %402 = vmatpush.msra.mxu1 %v197_v60  ;;  %v3496_v8 = vld [vmem:[%s4580_s2] ss:$0 sm:$0xff] }
  0x27   :  { %v1796_v39 = vsel %vm1788_vm9, 1, %v3192_v1  ;;  %v1798_v40 = vsel %vm1790_vm10, 1, %v3192_v1  ;;  %vm1073_vm12 = vcmp.ge.s32.totalorder %v3330_v4, 4  ;;  %vm1075_vm13 = vcmp.ge.s32.totalorder %v3341_v6, 4  ;;  %594 = vmatpush.msra.mxu3 %v201_v62 }
  0x28   :  { %v1082_v42 = vsel %vm1074_vm11, 1, %v3192_v1  ;;  %v1081_v43 = vsel %vm1073_vm12, 1, %v3192_v1  ;;  %v1083_v44 = vsel %vm1075_vm13, 1, %v3192_v1  ;;  %vm1789_vm14 = vcmp.ge.s32.totalorder %v3382_v18, 8  ;;  %403 = vmatpush.msra.mxu1 %v196_v0 }
  0x29   :  { %v1797_v45 = vsel %vm1789_vm14, 1, %v3192_v1  ;;  %vm1077_vm15 = vcmp.ge.s32.totalorder %v3382_v18, 4  ;;  %vm1076_vm0 = vcmp.ge.s32.totalorder %v3362_v12, 4  ;;  %vm1078_vm2 = vcmp.ge.s32.totalorder %v3377_v17, 4  ;;  %595 = vmatpush.msra.mxu3 %v200_v2 }
  0x2a   :  { %2756 = vmatmul.msk.f32.gmra.mxu0 %vm126_vm1, %v107_v19  ;;  %v1085_v47 = vsel %vm1077_vm15, 1, %v3192_v1  ;;  %v1084_v48 = vsel %vm1076_vm0, 1, %v3192_v1  ;;  %v1086_v49 = vsel %vm1078_vm2, 1, %v3192_v1  ;;  %vm1784_vm3 = vcmp.ge.s32.totalorder %v3357_v11, 8 }
  0x2b   :  { %v1792_v50 = vsel %vm1784_vm3, 1, %v3192_v1  ;;  %vm290_vm4 = vcmask 261120   ;;  %v235_v1 = vld [vmem:[#allocation4] sm:$0xff] }
  0x2c   :  { %291 = vst.msk [vmem:[#allocation2] sm:$0xff] %vm290_vm4, %v3193_v55  ;;  %455 = vmatpush.msra.mxu2 %v235_v1 }
  0x2d   :  { %346 = vperm.xlu1 %2974, %v323_v20   ;;  %343 = vperm.xlu0 %2973, %v322_v21  }
  0x2e   :  { %517 = vperm.xlu2 %2975, %v508_v22  }
  0x32   :  { %2757 = vmatmul.msk.f32.gmra.mxu0 %vm126_vm1, %v108_v23 }
  0x35   :  { %523 = vperm.xlu1 %2974, %v510_v24   ;;  %520 = vperm.xlu0 %2973, %v509_v25  }
  0x36   :  { %526 = vperm.xlu2 %2975, %v511_v26  }
  0x3a   :  { %2758 = vmatmul.msk.f32.gmra.mxu0 %vm126_vm1, %v109_v27 }
  0x3d   :  { %532 = vperm.xlu1 %2974, %v513_v28   ;;  %529 = vperm.xlu0 %2973, %v512_v29  }
  0x3e   :  { %535 = vperm.xlu2 %2975, %v514_v30  }
  0x42   :  { %2759 = vmatmul.msk.f32.gmra.mxu0 %vm126_vm1, %v110_v34 }
  0x45   :  { %1088 = vperm.xlu1 %2974, %v1079_v35   ;;  %538 = vperm.xlu0 %2973, %v515_v36   ;;  %v246_v36 = vld [vmem:[#allocation4 + $0x58] sm:$0xff] }
  0x46   :  { %1091 = vperm.xlu2 %2975, %v1080_v37   ;;  %763 = vmatpush.msrb.mxu2 %v246_v36 }
  0x4a   :  { %2760 = vmatmul.msk.f32.gmra.mxu0 %vm126_vm1, %v111_v41 }
  0x4d   :  { %1097 = vperm.xlu1 %2974, %v1082_v42   ;;  %1094 = vperm.xlu0 %2973, %v1081_v43  }
  0x4e   :  { %1100 = vperm.xlu2 %2975, %v1083_v44   ;;  %v207_v44 = vld [vmem:[%s4579_s27 + $0x58] sm:$0xff] }
  0x4f   :  { %714 = vmatpush.msrb.mxu1 %v207_v44 }
  0x52   :  { %2761 = vmatmul.msk.f32.gmra.mxu0 %vm126_vm1, %v112_v46  ;;  %v206_v46 = vld [vmem:[%s4579_s27 + $0x50] sm:$0xff] }
  0x53   :  { %715 = vmatpush.msrb.mxu1 %v206_v46  ;;  %v277_v46 = vld [vmem:[#allocation6 + $0x18] sm:$0xff] }
  0x54   :  { %1007 = vmatpush.msrb.mxu3 %v277_v46 }
  0x55   :  { %1106 = vperm.xlu1 %2974, %v1085_v47   ;;  %1103 = vperm.xlu0 %2973, %v1084_v48   ;;  %v245_v47 = vld [vmem:[#allocation4 + $0x50] sm:$0xff] }
  0x56   :  { %1109 = vperm.xlu2 %2975, %v1086_v49   ;;  %764 = vmatpush.msrb.mxu2 %v245_v47  ;;  %v205_v49 = vld [vmem:[%s4579_s27 + $0x48] sm:$0xff]  ;;  %v276_v47 = vld [vmem:[#allocation6 + $0x10] sm:$0xff] }
  0x57   :  { %716 = vmatpush.msrb.mxu1 %v205_v49  ;;  %1008 = vmatpush.msrb.mxu3 %v276_v47  ;;  %v275_v49 = vld [vmem:[#allocation6 + $0x8] sm:$0xff] }
  0x59   :  { %717 = vmatpush.msrb.mxu1 %v204_v56  ;;  %1009 = vmatpush.msrb.mxu3 %v275_v49 }
  0x5d   :  { %1803 = vperm.xlu1 %2974, %v1792_v50   ;;  %1800 = vperm.xlu0 %2973, %v1791_v31   ;;  %v244_v50 = vld [vmem:[#allocation4 + $0x48] sm:$0xff] }
  0x5e   :  { %1806 = vperm.xlu2 %2975, %v1793_v32   ;;  %765 = vmatpush.msrb.mxu2 %v244_v50 }
  0x60   :  { %766 = vmatpush.msrb.mxu2 %v243_v57 }
  0x65   :  { %1812 = vperm.xlu1 %2974, %v1795_v33   ;;  %1809 = vperm.xlu0 %2973, %v1794_v38  }
  0x66   :  { %1815 = vperm.xlu2 %2975, %v1796_v39  }
  0x6d   :  { %1821 = vperm.xlu1 %2974, %v1798_v40   ;;  %1818 = vperm.xlu0 %2973, %v1797_v45  }
  0x78   :  { %v3485_v4 = vpop.permute.xlu2 %337 }
  0x79   :  { %vm352_vm12 = vcmp.eq.s32.totalorder %v3485_v4, 1 }
  0x80   :  { %v3491_v7 = vpop.permute.xlu2 %340 }
  0x81   :  { %vm353_vm14 = vcmp.eq.s32.totalorder %v3491_v7, 1 }
  0x88   :  { %v518_v13 = vpop.permute.xlu2 %517 }
  0x89   :  { %vm540_vm1 = vcmp.eq.s32.totalorder %v518_v13, 1 }
  0x8f   :  { %v3487_v5 = vpop.permute.xlu0 %325  ;;  %v3489_v6 = vpop.permute.xlu1 %331 }
  0x90   :  { %vm348_vm5 = vcmp.eq.s32.totalorder %v3487_v5, 1  ;;  %vm350_vm8 = vcmp.eq.s32.totalorder %v3489_v6, 1  ;;  %v527_v37 = vpop.permute.xlu2 %526 }
  0x91   :  { %vm543_vm10 = vcmp.eq.s32.totalorder %v527_v37, 1 }
  0x97   :  { %v3498_v9 = vpop.permute.xlu0 %328  ;;  %v172_v10 = vpop.f32.mrf.mxu0 }
  0x98   :  { %v3501_v11 = vadd.f32 %v3496_v8, %v172_v10  ;;  %v3503_v12 = vpop.permute.xlu1 %334  ;;  %vm349_vm6 = vcmp.eq.s32.totalorder %v3498_v9, 1  ;;  %v536_v2 = vpop.permute.xlu2 %535 }
  0x99   :  { %vm351_vm11 = vcmp.eq.s32.totalorder %v3503_v12, 1  ;;  %vm546_vm0 = vcmp.eq.s32.totalorder %v536_v2, 1  ;;  %v218_v12 = vld [vmem:[%s4579_s27 + $0xb0] sm:$0xff] }
  0x9a   :  { %292 = vst.msk [vmem:[#allocation2 + $0x8] sm:$0xff] %vm290_vm4, %v3501_v11 }
  0x9f   :  { %v3507_v14 = vpop.permute.xlu0 %343  ;;  %v175_v15 = vpop.f32.mrf.mxu0 }
  0xa0   :  { %v3511_v16 = vadd.f32 %v3496_v8, %v175_v15  ;;  %v3519_v21 = vpop.permute.xlu1 %346  ;;  %vm354_vm2 = vcmp.eq.s32.totalorder %v3507_v14, 1 }
  0xa1   :  { %v300_v17 = vld [vmem:[#allocation2 + $0x6] sm:$0xff]  ;;  %vm355_vm3 = vcmp.eq.s32.totalorder %v3519_v21, 1 }
  0xa2   :  { %v492_v18 = vld [vmem:[#allocation2 + $0x7] sm:$0xff]  ;;  %293 = vst.msk [vmem:[#allocation2 + $0x10] sm:$0xff] %vm290_vm4, %v3511_v16  ;;  %v356_v19 = vsel %vm348_vm5, %v300_v17, 0.0 }
  0xa3   :  { %v548_v20 = vsel %vm540_vm1, %v492_v18, 0.0  ;;  %2762 = vmatmul.msk.f32.vlgmr.msra.gmra.mxu1 %vm290_vm4, %v356_v19  ;;  %2770 = vmatmul.msk.f32.vlgmr.msra.gmra.mxu2 %vm290_vm4, %v356_v19  ;;  %v262_v21 = vld [vmem:[#allocation4 + $0xd8] sm:$0xff] }
  0xa4   :  { %2778 = vmatmul.msk.f32.vlgmr.msra.gmra.mxu3 %vm290_vm4, %v548_v20  ;;  %2786 = vmatmul.msk.f32.vlgmr.msrb.gmra.mxu0 %vm290_vm4, %v548_v20 }
  0xa7   :  { %v521_v22 = vpop.permute.xlu0 %520  ;;  %v178_v23 = vpop.f32.mrf.mxu0 }
  0xa8   :  { %v3524_v24 = vadd.f32 %v3496_v8, %v178_v23  ;;  %vm541_vm7 = vcmp.eq.s32.totalorder %v521_v22, 1  ;;  %v524_v29 = vpop.permute.xlu1 %523 }
  0xa9   :  { %v493_v25 = vld [vmem:[#allocation2 + $0xf] sm:$0xff]  ;;  %vm542_vm9 = vcmp.eq.s32.totalorder %v524_v29, 1 }
  0xaa   :  { %v301_v26 = vld [vmem:[#allocation2 + $0xe] sm:$0xff]  ;;  %v549_v27 = vsel %vm541_vm7, %v493_v25, 0.0  ;;  %294 = vst.msk [vmem:[#allocation2 + $0x18] sm:$0xff] %vm290_vm4, %v3524_v24 }
  0xab   :  { %v357_v28 = vsel %vm349_vm6, %v301_v26, 0.0 }
  0xac   :  { %2763 = vmatmul.msk.f32.gmra.mxu1 %vm290_vm4, %v357_v28  ;;  %2771 = vmatmul.msk.f32.gmra.mxu2 %vm290_vm4, %v357_v28 }
  0xad   :  { %2779 = vmatmul.msk.f32.gmra.mxu3 %vm290_vm4, %v549_v27  ;;  %2787 = vmatmul.msk.f32.gmra.mxu0 %vm290_vm4, %v549_v27 }
  0xaf   :  { %v181_v30 = vpop.f32.mrf.mxu0  ;;  %v530_v45 = vpop.permute.xlu0 %529 }
  0xb0   :  { %v3537_v31 = vadd.f32 %v3496_v8, %v181_v30  ;;  %vm544_vm13 = vcmp.eq.s32.totalorder %v530_v45, 1  ;;  %v533_v59 = vpop.permute.xlu1 %532 }
  0xb1   :  { %v302_v32 = vld [vmem:[#allocation2 + $0x16] sm:$0xff]  ;;  %vm545_vm15 = vcmp.eq.s32.totalorder %v533_v59, 1 }
  0xb2   :  { %v494_v33 = vld [vmem:[#allocation2 + $0x17] sm:$0xff]  ;;  %295 = vst.msk [vmem:[#allocation2 + $0x20] sm:$0xff] %vm290_vm4, %v3537_v31  ;;  %v358_v34 = vsel %vm350_vm8, %v302_v32, 0.0 }
  0xb3   :  { %v550_v35 = vsel %vm542_vm9, %v494_v33, 0.0 }
  0xb4   :  { %2764 = vmatmul.msk.f32.gmra.mxu1 %vm290_vm4, %v358_v34  ;;  %2772 = vmatmul.msk.f32.gmra.mxu2 %vm290_vm4, %v358_v34 }
  0xb5   :  { %2780 = vmatmul.msk.f32.gmra.mxu3 %vm290_vm4, %v550_v35  ;;  %2788 = vmatmul.msk.f32.gmra.mxu0 %vm290_vm4, %v550_v35 }
  0xb7   :  { %v184_v38 = vpop.f32.mrf.mxu0 }
  0xb8   :  { %v3548_v39 = vadd.f32 %v3496_v8, %v184_v38 }
  0xb9   :  { %v303_v40 = vld [vmem:[#allocation2 + $0x1e] sm:$0xff] }
  0xba   :  { %v495_v41 = vld [vmem:[#allocation2 + $0x1f] sm:$0xff]  ;;  %296 = vst.msk [vmem:[#allocation2 + $0x28] sm:$0xff] %vm290_vm4, %v3548_v39  ;;  %v359_v42 = vsel %vm351_vm11, %v303_v40, 0.0 }
  0xbb   :  { %v551_v43 = vsel %vm543_vm10, %v495_v41, 0.0  ;;  %v3667_v41 = vld [vmem:[%s4552_s9] ss:$0 sm:$0xff] }
  0xbc   :  { %2765 = vmatmul.msk.f32.gmra.mxu1 %vm290_vm4, %v359_v42  ;;  %2773 = vmatmul.msk.f32.gmra.mxu2 %vm290_vm4, %v359_v42 }
  0xbd   :  { %2781 = vmatmul.msk.f32.gmra.mxu3 %vm290_vm4, %v551_v43  ;;  %2789 = vmatmul.msk.f32.gmra.mxu0 %vm290_vm4, %v551_v43 }
  0xbf   :  { %v187_v48 = vpop.f32.mrf.mxu0 }
  0xc0   :  { %v3570_v51 = vadd.f32 %v3496_v8, %v187_v48 }
  0xc1   :  { %v304_v52 = vld [vmem:[#allocation2 + $0x26] sm:$0xff] }
  0xc2   :  { %v496_v53 = vld [vmem:[#allocation2 + $0x27] sm:$0xff]  ;;  %297 = vst.msk [vmem:[#allocation2 + $0x30] sm:$0xff] %vm290_vm4, %v3570_v51  ;;  %v360_v54 = vsel %vm352_vm12, %v304_v52, 0.0 }
  0xc3   :  { %v552_v55 = vsel %vm544_vm13, %v496_v53, 0.0 }
  0xc4   :  { %2766 = vmatmul.msk.f32.gmra.mxu1 %vm290_vm4, %v360_v54  ;;  %2774 = vmatmul.msk.f32.gmra.mxu2 %vm290_vm4, %v360_v54  ;;  %v274_v54 = vld [vmem:[#allocation6] sm:$0xff] }
  0xc5   :  { %2782 = vmatmul.msk.f32.gmra.mxu3 %vm290_vm4, %v552_v55  ;;  %2790 = vmatmul.msk.f32.gmra.mxu0 %vm290_vm4, %v552_v55 }
  0xc6   :  { %1010 = vmatpush.msrb.mxu3 %v274_v54 }
  0xc7   :  { %v190_v58 = vpop.f32.mrf.mxu0 }
  0xc8   :  { %v3584_v60 = vadd.f32 %v3496_v8, %v190_v58 }
  0xc9   :  { %v305_v61 = vld [vmem:[#allocation2 + $0x2e] sm:$0xff] }
  0xca   :  { %v497_v62 = vld [vmem:[#allocation2 + $0x2f] sm:$0xff]  ;;  %298 = vst.msk [vmem:[#allocation2 + $0x38] sm:$0xff] %vm290_vm4, %v3584_v60  ;;  %v361_v63 = vsel %vm353_vm14, %v305_v61, 0.0 }
  0xcb   :  { %v553_v0 = vsel %vm545_vm15, %v497_v62, 0.0 }
  0xcc   :  { %2767 = vmatmul.msk.f32.gmra.mxu1 %vm290_vm4, %v361_v63  ;;  %2775 = vmatmul.msk.f32.gmra.mxu2 %vm290_vm4, %v361_v63 }
  0xcd   :  { %2783 = vmatmul.msk.f32.gmra.mxu3 %vm290_vm4, %v553_v0  ;;  %2791 = vmatmul.msk.f32.gmra.mxu0 %vm290_vm4, %v553_v0 }
  0xcf   :  { %v193_v1 = vpop.f32.mrf.mxu0 }
  0xd0   :  { %v3596_v3 = vadd.f32 %v3496_v8, %v193_v1  ;;  %v539_v8 = vpop.permute.xlu0 %538 }
  0xd1   :  { %v306_v10 = vld [vmem:[#allocation2 + $0x36] sm:$0xff]  ;;  %vm547_vm1 = vcmp.eq.s32.totalorder %v539_v8, 1 }
  0xd2   :  { %v498_v13 = vld [vmem:[#allocation2 + $0x37] sm:$0xff]  ;;  %299 = vst.msk [vmem:[#allocation2 + $0x40] sm:$0xff] %vm290_vm4, %v3596_v3  ;;  %v362_v15 = vsel %vm354_vm2, %v306_v10, 0.0  ;;  %v3679_v10 = vld [vmem:[%s4550_s7] ss:$0 sm:$0xff] }
  0xd3   :  { %v554_v17 = vsel %vm546_vm0, %v498_v13, 0.0 }
  0xd4   :  { %2768 = vmatmul.msk.f32.gmra.mxu1 %vm290_vm4, %v362_v15  ;;  %2776 = vmatmul.msk.f32.gmra.mxu2 %vm290_vm4, %v362_v15 }
  0xd5   :  { %2784 = vmatmul.msk.f32.gmra.mxu3 %vm290_vm4, %v554_v17  ;;  %2792 = vmatmul.msk.f32.gmra.mxu0 %vm290_vm4, %v554_v17 }
  0xd9   :  { %v307_v18 = vld [vmem:[#allocation2 + $0x3e] sm:$0xff] }
  0xda   :  { %v499_v19 = vld [vmem:[#allocation2 + $0x3f] sm:$0xff]  ;;  %v363_v20 = vsel %vm355_vm3, %v307_v18, 0.0 }
  0xdb   :  { %v555_v22 = vsel %vm547_vm1, %v499_v19, 0.0 }
  0xdc   :  { %2769 = vmatmul.msk.f32.gmra.mxu1 %vm290_vm4, %v363_v20  ;;  %2777 = vmatmul.msk.f32.gmra.mxu2 %vm290_vm4, %v363_v20 }
  0xdd   :  { %2785 = vmatmul.msk.f32.gmra.mxu3 %vm290_vm4, %v555_v22  ;;  %2793 = vmatmul.msk.f32.gmra.mxu0 %vm290_vm4, %v555_v22 }
  0xe4   :  { %2794 = vmatmul.msk.f32.vlgmr.msrb.gmra.mxu1 %vm290_vm4, %v3501_v11  ;;  %2802 = vmatmul.msk.f32.vlgmr.msrb.gmra.mxu2 %vm290_vm4, %v3501_v11 }
  0xec   :  { %2795 = vmatmul.msk.f32.gmra.mxu1 %vm290_vm4, %v3511_v16  ;;  %2803 = vmatmul.msk.f32.gmra.mxu2 %vm290_vm4, %v3511_v16 }
  0xf4   :  { %2796 = vmatmul.msk.f32.gmra.mxu1 %vm290_vm4, %v3524_v24  ;;  %2804 = vmatmul.msk.f32.gmra.mxu2 %vm290_vm4, %v3524_v24 }
  0xfc   :  { %2797 = vmatmul.msk.f32.gmra.mxu1 %vm290_vm4, %v3537_v31  ;;  %2805 = vmatmul.msk.f32.gmra.mxu2 %vm290_vm4, %v3537_v31 }
 0x104   :  { %2798 = vmatmul.msk.f32.gmra.mxu1 %vm290_vm4, %v3548_v39  ;;  %2806 = vmatmul.msk.f32.gmra.mxu2 %vm290_vm4, %v3548_v39 }
 0x10c   :  { %2799 = vmatmul.msk.f32.gmra.mxu1 %vm290_vm4, %v3570_v51  ;;  %2807 = vmatmul.msk.f32.gmra.mxu2 %vm290_vm4, %v3570_v51 }
 0x114   :  { %2800 = vmatmul.msk.f32.gmra.mxu1 %vm290_vm4, %v3584_v60  ;;  %2808 = vmatmul.msk.f32.gmra.mxu2 %vm290_vm4, %v3584_v60 }
 0x11c   :  { %2801 = vmatmul.msk.f32.gmra.mxu1 %vm290_vm4, %v3596_v3  ;;  %2809 = vmatmul.msk.f32.gmra.mxu2 %vm290_vm4, %v3596_v3 }
 0x120   :  { %v405_v23 = vpop.f32.mrf.mxu1 }
 0x121   :  { %v646_v38 = vpop.f32.mrf.mxu0  ;;  %v432_v18 = vadd.f32 %v3679_v10, %v405_v23 }
 0x126   :  { %v457_v25 = vpop.f32.mrf.mxu2 }
 0x127   :  { %v484_v45 = vadd.f32 %v3667_v41, %v457_v25  ;;  %v597_v52 = vpop.f32.mrf.mxu3 }
 0x128   :  { %v621_v22 = vadd.f32 %v597_v52, %v432_v18 }
 0x129   :  { %v3646_v26 = vpop.f32.mrf.mxu1  ;;  %v670_v48 = vadd.f32 %v646_v38, %v484_v45 }
 0x12a   :  { %v649_v44 = vpop.f32.mrf.mxu0  ;;  %v433_v23 = vadd.f32 %v3679_v10, %v3646_v26 }
 0x12f   :  { %v460_v27 = vpop.f32.mrf.mxu2 }
 0x130   :  { %v485_v55 = vadd.f32 %v3667_v41, %v460_v27  ;;  %v600_v0 = vpop.f32.mrf.mxu3 }
 0x131   :  { %v3648_v28 = vpop.f32.mrf.mxu1 }
 0x132   :  { %v652_v58 = vpop.f32.mrf.mxu0  ;;  %v671_v59 = vadd.f32 %v649_v44, %v485_v55 }
 0x137   :  { %v463_v29 = vpop.f32.mrf.mxu2 }
 0x138   :  { %v486_v1 = vadd.f32 %v3667_v41, %v463_v29  ;;  %v603_v46 = vpop.f32.mrf.mxu3 }
 0x139   :  { %v3650_v30 = vpop.f32.mrf.mxu1 }
 0x13a   :  { %v655_v17 = vpop.f32.mrf.mxu0  ;;  %v672_v8 = vadd.f32 %v652_v58, %v486_v1 }
 0x13f   :  { %v466_v32 = vpop.f32.mrf.mxu2 }
 0x140   :  { %v487_v27 = vadd.f32 %v3667_v41, %v466_v32 }
 0x141   :  { %v3652_v33 = vpop.f32.mrf.mxu1 }
 0x142   :  { %v658_v52 = vpop.f32.mrf.mxu0 }
 0x147   :  { %v3654_v34 = vpop.f32.mrf.mxu2 }
 0x149   :  { %v3656_v35 = vpop.f32.mrf.mxu1 }
 0x14f   :  { %v3658_v36 = vpop.f32.mrf.mxu2 }
 0x151   :  { %v3660_v37 = vpop.f32.mrf.mxu1 }
 0x157   :  { %v3662_v40 = vpop.f32.mrf.mxu2 }
 0x159   :  { %v3671_v43 = vpop.f32.mrf.mxu1 }
 0x15f   :  { %v3669_v42 = vpop.f32.mrf.mxu2 }
 0x161   :  { %v719_v56 = vpop.f32.mrf.mxu1 }
 0x162   :  { %v743_v44 = vadd.f32 %v719_v56, %v621_v22 }
 0x167   :  { %v768_v50 = vpop.f32.mrf.mxu2 }
 0x168   :  { %v792_v53 = vadd.f32 %v768_v50, %v670_v48  ;;  %v673_v50 = vadd.f32 %v655_v17, %v487_v27 }
 0x169   :  { %v722_v15 = vpop.f32.mrf.mxu1 }
 0x16a   :  { %v2810_v57 = vmul.f32 -1.442695, %v792_v53 }
 0x16c   :  { %2991 = vpow2.f32 %v2810_v57  ;;  %v622_v57 = vadd.f32 %v600_v0, %v433_v23  ;;  %v489_v23 = vadd.f32 %v3667_v41, %v3658_v36 }
 0x16e   :  { %v744_v1 = vadd.f32 %v722_v15, %v622_v57 }
 0x16f   :  { %v771_v61 = vpop.f32.mrf.mxu2 }
 0x170   :  { %v793_v62 = vadd.f32 %v771_v61, %v671_v59  ;;  %v488_v59 = vadd.f32 %v3667_v41, %v3654_v34 }
 0x171   :  { %v725_v49 = vpop.f32.mrf.mxu1 }
 0x172   :  { %v2992_v63 = vpop.eup %2991  ;;  %v2811_v2 = vmul.f32 -1.442695, %v793_v62  ;;  %v674_v34 = vadd.f32 %v658_v52, %v488_v59 }
 0x173   :  { %v832_v13 = vadd.f32 1.0, %v2992_v63 }
 0x174   :  { %2993 = vpow2.f32 %v2811_v2 }
 0x175   :  { %2995 = vrcp.f32 %v832_v13  ;;  %v851_v32 = vand.u32 2147483648, %v832_v13  ;;  %v849_v56 = vand.u32 2147483647, %v832_v13  ;;  %vm845_vm9 = vweird.f32 %v832_v13 }
 0x177   :  { %v774_v19 = vpop.f32.mrf.mxu2  ;;  %v852_v26 = vor.u32 1.1754944e-38, %v851_v32  ;;  %vm850_vm13 = vcmp.eq.f32.partialorder %v849_v56, 8.507059e+37 }
 0x178   :  { %v794_v20 = vadd.f32 %v774_v19, %v672_v8  ;;  %v606_v19 = vpop.f32.mrf.mxu3 }
 0x179   :  { %v728_v27 = vpop.f32.mrf.mxu1 }
 0x17a   :  { %v2994_v25 = vpop.eup %2993  ;;  %v2812_v29 = vmul.f32 -1.442695, %v794_v20 }
 0x17b   :  { %v2996_v38 = vpop.eup %2995  ;;  %v3683_v45 = vadd.f32 1.0, %v2994_v25 }
 0x17c   :  { %v841_v47 = vmul.f32 %v2996_v38, %v832_v13  ;;  %2997 = vpow2.f32 %v2812_v29  ;;  %vm846_vm7 = vweird.f32 %v2996_v38  ;;  %v434_v13 = vadd.f32 %v3679_v10, %v3648_v28 }
 0x17d   :  { %2999 = vrcp.f32 %v3683_v45  ;;  %vm847_vm10 = vmor %vm845_vm9, %vm846_vm7  ;;  %v866_v25 = vand.u32 2147483648, %v3683_v45  ;;  %vm860_vm0 = vweird.f32 %v3683_v45 }
 0x17e   :  { %v842_v48 = vsub.f32 1.0, %v841_v47  ;;  %3001 = vtanh.f32 %v743_v44  ;;  %v864_v44 = vand.u32 2147483647, %v3683_v45  ;;  %v623_v47 = vadd.f32 %v603_v46, %v434_v13 }
 0x17f   :  { %v777_v53 = vpop.f32.mrf.mxu2 }
 0x180   :  { %v795_v54 = vadd.f32 %v777_v53, %v673_v50  ;;  %v843_v55 = vmul.f32 %v2996_v38, %v842_v48  ;;  %v661_v48 = vpop.f32.mrf.mxu0  ;;  %v745_v32 = vadd.f32 %v725_v49, %v623_v47  ;;  %vm865_vm7 = vcmp.eq.f32.partialorder %v864_v44, 8.507059e+37 }
 0x181   :  { %v675_v36 = vadd.f32 %v661_v48, %v489_v23 }
 0x182   :  { %v2998_v58 = vpop.eup %2997  ;;  %v2813_v61 = vmul.f32 -1.442695, %v795_v54  ;;  %v844_v62 = vadd.f32 %v2996_v38, %v843_v55  ;;  %v867_v55 = vor.u32 1.1754944e-38, %v866_v25 }
 0x183   :  { %v3000_v63 = vpop.eup %2999  ;;  %v3690_v2 = vadd.f32 1.0, %v2998_v58 }
 0x184   :  { %3003 = vpow2.f32 %v2813_v61  ;;  %v848_v17 = vsel %vm847_vm10, %v2996_v38, %v844_v62  ;;  %v856_v8 = vmul.f32 %v3000_v63, %v3683_v45  ;;  %v3002_v18 = vpop.eup %3001  ;;  %vm861_vm15 = vweird.f32 %v3000_v63 }
 0x185   :  { %3005 = vrcp.f32 %v3690_v2  ;;  %v853_v0 = vsel %vm850_vm13, %v852_v26, %v848_v17  ;;  %vm862_vm1 = vmor %vm860_vm0, %vm861_vm15  ;;  %v435_v45 = vadd.f32 %v3679_v10, %v3650_v30  ;;  %v881_v62 = vand.u32 2147483648, %v3690_v2 }
 0x186   :  { %v960_v20 = vmul.f32 %v3002_v18, %v853_v0  ;;  %v857_v22 = vsub.f32 1.0, %v856_v8  ;;  %3007 = vtanh.f32 %v744_v1  ;;  %v609_v1 = vpop.f32.mrf.mxu3  ;;  %v879_v17 = vand.u32 2147483647, %v3690_v2 }
 0x187   :  { %v780_v15 = vpop.f32.mrf.mxu2  ;;  %v624_v8 = vadd.f32 %v606_v19, %v435_v45  ;;  %v490_v0 = vadd.f32 %v3667_v41, %v3662_v40  ;;  %vm875_vm10 = vweird.f32 %v3690_v2 }
 0x188   :  { %v796_v29 = vadd.f32 %v780_v15, %v674_v34  ;;  %2818 = vmatmul.msk.f32.vlgmr.msrb.gmra.mxu3 %vm290_vm4, %v960_v20  ;;  %v858_v38 = vmul.f32 %v3000_v63, %v857_v22  ;;  %v731_v34 = vpop.f32.mrf.mxu1  ;;  %v664_v13 = vpop.f32.mrf.mxu0  ;;  %vm880_vm15 = vcmp.eq.f32.partialorder %v879_v17, 8.507059e+37  ;;  %v437_v17 = vadd.f32 %v3679_v10, %v3656_v35 }
 0x189   :  { %v746_v15 = vadd.f32 %v728_v27, %v624_v8  ;;  %v676_v47 = vadd.f32 %v664_v13, %v490_v0 }
 0x18a   :  { %v3004_v50 = vpop.eup %3003  ;;  %v2814_v52 = vmul.f32 -1.442695, %v796_v29  ;;  %v859_v28 = vadd.f32 %v3000_v63, %v858_v38  ;;  %v882_v29 = vor.u32 1.1754944e-38, %v881_v62 }
 0x18b   :  { %v3006_v53 = vpop.eup %3005  ;;  %v3702_v54 = vadd.f32 1.0, %v3004_v50 }
 0x18c   :  { %3009 = vpow2.f32 %v2814_v52  ;;  %v863_v56 = vsel %vm862_vm1, %v3000_v63, %v859_v28  ;;  %v871_v46 = vmul.f32 %v3006_v53, %v3690_v2  ;;  %v3008_v57 = vpop.eup %3007  ;;  %vm876_vm9 = vweird.f32 %v3006_v53 }
 0x18d   :  { %3011 = vrcp.f32 %v3702_v54  ;;  %v868_v58 = vsel %vm865_vm7, %v867_v55, %v863_v56  ;;  %vm877_vm13 = vmor %vm875_vm10, %vm876_vm9  ;;  %v436_v2 = vadd.f32 %v3679_v10, %v3652_v33  ;;  %v896_v23 = vand.u32 2147483648, %v3702_v54 }
 0x18e   :  { %v961_v59 = vmul.f32 %v3008_v57, %v868_v58  ;;  %v872_v61 = vsub.f32 1.0, %v871_v46  ;;  %3013 = vtanh.f32 %v745_v32  ;;  %v612_v56 = vpop.f32.mrf.mxu3  ;;  %v491_v46 = vadd.f32 %v3667_v41, %v3669_v42 }
 0x18f   :  { %v783_v49 = vpop.f32.mrf.mxu2  ;;  %v625_v32 = vadd.f32 %v609_v1, %v436_v2  ;;  %vm890_vm1 = vweird.f32 %v3702_v54 }
 0x190   :  { %v797_v26 = vadd.f32 %v783_v49, %v675_v36  ;;  %2819 = vmatmul.msk.f32.gmra.mxu3 %vm290_vm4, %v961_v59  ;;  %v873_v63 = vmul.f32 %v3006_v53, %v872_v61  ;;  %v897_v61 = vor.u32 1.1754944e-38, %v896_v23  ;;  %v734_v45 = vpop.f32.mrf.mxu1 }
 0x191   :  { %v747_v36 = vadd.f32 %v731_v34, %v625_v32 }
 0x192   :  { %v3010_v18 = vpop.eup %3009  ;;  %v2815_v20 = vmul.f32 -1.442695, %v797_v26  ;;  %v874_v30 = vadd.f32 %v3006_v53, %v873_v63  ;;  %v667_v26 = vpop.f32.mrf.mxu0 }
 0x193   :  { %v3012_v22 = vpop.eup %3011  ;;  %v3714_v25 = vadd.f32 1.0, %v3010_v18  ;;  %v677_v42 = vadd.f32 %v667_v26, %v491_v46 }
 0x194   :  { %3015 = vpow2.f32 %v2815_v20  ;;  %v878_v38 = vsel %vm877_vm13, %v3006_v53, %v874_v30  ;;  %v886_v19 = vmul.f32 %v3012_v22, %v3702_v54  ;;  %v3014_v44 = vpop.eup %3013  ;;  %vm891_vm0 = vweird.f32 %v3012_v22  ;;  %v250_v30 = vld [vmem:[#allocation4 + $0x78] sm:$0xff] }
 0x195   :  { %3017 = vrcp.f32 %v3714_v25  ;;  %v883_v40 = vsel %vm880_vm15, %v882_v29, %v878_v38  ;;  %v894_v53 = vand.u32 2147483647, %v3702_v54  ;;  %vm892_vm7 = vmor %vm890_vm1, %vm891_vm0  ;;  %v911_v18 = vand.u32 2147483648, %v3714_v25  ;;  %1215 = vmatpush.msra.mxu1 %v250_v30 }
 0x196   :  { %v962_v48 = vmul.f32 %v3014_v44, %v883_v40  ;;  %v887_v50 = vsub.f32 1.0, %v886_v19  ;;  %3019 = vtanh.f32 %v746_v15  ;;  %v909_v20 = vand.u32 2147483647, %v3714_v25  ;;  %v615_v40 = vpop.f32.mrf.mxu3 }
 0x197   :  { %v786_v27 = vpop.f32.mrf.mxu2  ;;  %vm895_vm9 = vcmp.eq.f32.partialorder %v894_v53, 8.507059e+37  ;;  %vm905_vm13 = vweird.f32 %v3714_v25  ;;  %v912_v44 = vor.u32 1.1754944e-38, %v911_v18 }
 0x198   :  { %v798_v52 = vadd.f32 %v786_v27, %v676_v47  ;;  %2820 = vmatmul.msk.f32.gmra.mxu3 %vm290_vm4, %v962_v48  ;;  %v888_v28 = vmul.f32 %v3012_v22, %v887_v50  ;;  %vm910_vm0 = vcmp.eq.f32.partialorder %v909_v20, 8.507059e+37  ;;  %v737_v27 = vpop.f32.mrf.mxu1 }
 0x19a   :  { %v3016_v55 = vpop.eup %3015  ;;  %v2816_v57 = vmul.f32 -1.442695, %v798_v52  ;;  %v889_v58 = vadd.f32 %v3012_v22, %v888_v28 }
 0x19b   :  { %v3018_v33 = vpop.eup %3017  ;;  %v3726_v59 = vadd.f32 1.0, %v3016_v55 }
 0x19c   :  { %3021 = vpow2.f32 %v2816_v57  ;;  %v893_v49 = vsel %vm892_vm7, %v3012_v22, %v889_v58  ;;  %v901_v62 = vmul.f32 %v3018_v33, %v3714_v25  ;;  %v3020_v1 = vpop.eup %3019  ;;  %vm906_vm10 = vweird.f32 %v3018_v33 }
 0x19d   :  { %3023 = vrcp.f32 %v3726_v59  ;;  %v898_v41 = vsel %vm895_vm9, %v897_v61, %v893_v49  ;;  %v626_v22 = vadd.f32 %v612_v56, %v437_v17  ;;  %vm907_vm15 = vmor %vm905_vm13, %vm906_vm10  ;;  %v438_v25 = vadd.f32 %v3679_v10, %v3660_v37 }
 0x19e   :  { %v963_v63 = vmul.f32 %v3020_v1, %v898_v41  ;;  %v902_v54 = vsub.f32 1.0, %v901_v62  ;;  %3025 = vtanh.f32 %v747_v36  ;;  %v926_v28 = vand.u32 2147483648, %v3726_v59  ;;  %v618_v62 = vpop.f32.mrf.mxu3 }
 0x19f   :  { %v789_v8 = vpop.f32.mrf.mxu2  ;;  %v748_v38 = vadd.f32 %v734_v45, %v626_v22  ;;  %v924_v32 = vand.u32 2147483647, %v3726_v59  ;;  %v627_v55 = vadd.f32 %v615_v40, %v438_v25  ;;  %vm920_vm7 = vweird.f32 %v3726_v59  ;;  %v214_v25 = vld [vmem:[%s4579_s27 + $0x90] sm:$0xff] }
 0x1a0   :  { %v799_v0 = vadd.f32 %v789_v8, %v677_v42  ;;  %2821 = vmatmul.msk.f32.gmra.mxu3 %vm290_vm4, %v963_v63  ;;  %v903_v34 = vmul.f32 %v3018_v33, %v902_v54  ;;  %v927_v36 = vor.u32 1.1754944e-38, %v926_v28  ;;  %v439_v41 = vadd.f32 %v3679_v10, %v3671_v43  ;;  %v253_v28 = vld [vmem:[#allocation4 + $0x90] sm:$0xff] }
 0x1a1   :  { %v749_v58 = vadd.f32 %v737_v27, %v627_v55  ;;  %vm925_vm10 = vcmp.eq.f32.partialorder %v924_v32, 8.507059e+37  ;;  %v254_v27 = vld [vmem:[#allocation4 + $0x98] sm:$0xff]  ;;  %v248_v32 = vld [vmem:[#allocation4 + $0x68] sm:$0xff] }
 0x1a2   :  { %v3022_v13 = vpop.eup %3021  ;;  %v2817_v15 = vmul.f32 -1.442695, %v799_v0  ;;  %v904_v29 = vadd.f32 %v3018_v33, %v903_v34  ;;  %v628_v17 = vadd.f32 %v618_v62, %v439_v41  ;;  %1356 = vmatpush.msra.mxu3 %v254_v27  ;;  %v213_v55 = vld [vmem:[%s4579_s27 + $0x88] sm:$0xff] }
 0x1a3   :  { %v3024_v35 = vpop.eup %3023  ;;  %v838_v19 = vadd.f32 1.0, %v3022_v13 }
 0x1a4   :  { %3027 = vpow2.f32 %v2817_v15  ;;  %v908_v47 = vsel %vm907_vm15, %v3018_v33, %v904_v29  ;;  %v916_v48 = vmul.f32 %v3024_v35, %v3726_v59  ;;  %v3026_v50 = vpop.eup %3025  ;;  %vm921_vm1 = vweird.f32 %v3024_v35  ;;  %v740_v59 = vpop.f32.mrf.mxu1  ;;  %1357 = vmatpush.msra.mxu3 %v253_v28  ;;  %v222_v28 = vld [vmem:[%s4579_s27 + $0xd0] sm:$0xff] }
 0x1a5   :  { %3029 = vrcp.f32 %v838_v19  ;;  %v913_v2 = vsel %vm910_vm0, %v912_v44, %v908_v47  ;;  %vm922_vm9 = vmor %vm920_vm7, %vm921_vm1  ;;  %v941_v42 = vand.u32 2147483648, %v838_v19  ;;  %v939_v54 = vand.u32 2147483647, %v838_v19 }
 0x1a6   :  { %v964_v23 = vmul.f32 %v3026_v50, %v913_v2  ;;  %v917_v52 = vsub.f32 1.0, %v916_v48  ;;  %3031 = vtanh.f32 %v748_v38  ;;  %vm935_vm15 = vweird.f32 %v838_v19  ;;  %v211_v50 = vld [vmem:[%s4579_s27 + $0x78] sm:$0xff] }
 0x1a7   :  { %v750_v0 = vadd.f32 %v740_v59, %v628_v17  ;;  %v942_v34 = vor.u32 1.1754944e-38, %v941_v42  ;;  %vm940_vm1 = vcmp.eq.f32.partialorder %v939_v54, 8.507059e+37  ;;  %v215_v2 = vld [vmem:[%s4579_s27 + $0x98] sm:$0xff]  ;;  %1163 = vmatpush.msra.mxu0 %v211_v50 }
 0x1a8   :  { %2822 = vmatmul.msk.f32.gmra.mxu3 %vm290_vm4, %v964_v23  ;;  %v918_v53 = vmul.f32 %v3024_v35, %v917_v52  ;;  %1307 = vmatpush.msra.mxu2 %v215_v2  ;;  %v210_v23 = vld [vmem:[%s4579_s27 + $0x70] sm:$0xff]  ;;  %v249_v52 = vld [vmem:[#allocation4 + $0x70] sm:$0xff] }
 0x1a9   :  { %1164 = vmatpush.msra.mxu0 %v210_v23  ;;  %1216 = vmatpush.msra.mxu1 %v249_v52  ;;  %v223_v23 = vld [vmem:[%s4579_s27 + $0xd8] sm:$0xff] }
 0x1aa   :  { %v3028_v56 = vpop.eup %3027  ;;  %v919_v46 = vadd.f32 %v3024_v35, %v918_v53  ;;  %1308 = vmatpush.msra.mxu2 %v214_v25  ;;  %v209_v53 = vld [vmem:[%s4579_s27 + $0x68] sm:$0xff]  ;;  %v257_v25 = vld [vmem:[#allocation4 + $0xb0] sm:$0xff] }
 0x1ab   :  { %v3030_v57 = vpop.eup %3029  ;;  %v839_v33 = vadd.f32 1.0, %v3028_v56  ;;  %1165 = vmatpush.msra.mxu0 %v209_v53  ;;  %1217 = vmatpush.msra.mxu1 %v248_v32  ;;  %v252_v56 = vld [vmem:[#allocation4 + $0x88] sm:$0xff] }
 0x1ac   :  { %v923_v37 = vsel %vm922_vm9, %v3024_v35, %v919_v46  ;;  %v931_v61 = vmul.f32 %v3030_v57, %v838_v19  ;;  %v3032_v45 = vpop.eup %3031  ;;  %vm936_vm13 = vweird.f32 %v3030_v57  ;;  %v208_v46 = vld [vmem:[%s4579_s27 + $0x60] sm:$0xff]  ;;  %1309 = vmatpush.msra.mxu2 %v213_v55  ;;  %1358 = vmatpush.msra.mxu3 %v252_v56  ;;  %v217_v55 = vld [vmem:[%s4579_s27 + $0xa8] sm:$0xff]  ;;  %v256_v56 = vld [vmem:[#allocation4 + $0xa8] sm:$0xff] }
 0x1ad   :  { %3033 = vrcp.f32 %v839_v33  ;;  %v928_v49 = vsel %vm925_vm10, %v927_v36, %v923_v37  ;;  %vm937_vm0 = vmor %vm935_vm15, %vm936_vm13  ;;  %v956_v15 = vand.u32 2147483648, %v839_v33  ;;  %v954_v35 = vand.u32 2147483647, %v839_v33  ;;  %1166 = vmatpush.msra.mxu0 %v208_v46  ;;  %v3775_v36 = vld [vmem:[%s4554_s11] ss:$0 sm:$0xff]  ;;  %v221_v46 = vld [vmem:[%s4579_s27 + $0xc8] sm:$0xff] }
 0x1ae   :  { %v965_v1 = vmul.f32 %v3032_v45, %v928_v49  ;;  %v932_v26 = vsub.f32 1.0, %v931_v61  ;;  %3035 = vtanh.f32 %v749_v58  ;;  %vm950_vm9 = vweird.f32 %v839_v33  ;;  %v212_v58 = vld [vmem:[%s4579_s27 + $0x80] sm:$0xff] }
 0x1af   :  { %3037 = vtanh.f32 %v750_v0  ;;  %v957_v19 = vor.u32 1.1754944e-38, %v956_v15  ;;  %vm955_vm13 = vcmp.eq.f32.partialorder %v954_v35, 8.507059e+37  ;;  %1310 = vmatpush.msra.mxu2 %v212_v58  ;;  %v3780_v37 = vld [vmem:[%s4555_s12] ss:$0 sm:$0xff]  ;;  %v3810_v0 = vpop.permute.xlu2 %1091 }
 0x1b0   :  { %2823 = vmatmul.msk.f32.gmra.mxu3 %vm290_vm4, %v965_v1  ;;  %v933_v63 = vmul.f32 %v3030_v57, %v932_v26  ;;  %v1039_v49 = vmul.f32 %v3780_v37, %v3501_v11  ;;  %v3789_v26 = vpop.permute.xlu1 %1088  ;;  %v1040_v42 = vmul.f32 %v3780_v37, %v3511_v16  ;;  %v1044_v32 = vmul.f32 %v3780_v37, %v3570_v51 }
 0x1b1   :  { %vm1111_vm15 = vcmp.eq.s32.totalorder %v3789_v26, 1 }
 0x1b2   :  { %v934_v8 = vadd.f32 %v3030_v57, %v933_v63 }
 0x1b3   :  { %v3034_v18 = vpop.eup %3033 }
 0x1b4   :  { %v938_v20 = vsel %vm937_vm0, %v3030_v57, %v934_v8  ;;  %v946_v30 = vmul.f32 %v3034_v18, %v839_v33  ;;  %v3036_v22 = vpop.eup %3035  ;;  %vm951_vm7 = vweird.f32 %v3034_v18  ;;  %v247_v57 = vld [vmem:[#allocation4 + $0x60] sm:$0xff] }
 0x1b5   :  { %v943_v43 = vsel %vm940_vm1, %v942_v34, %v938_v20  ;;  %vm952_vm10 = vmor %vm950_vm9, %vm951_vm7  ;;  %v3038_v40 = vpop.eup %3037  ;;  %v251_v33 = vld [vmem:[#allocation4 + $0x80] sm:$0xff]  ;;  %1218 = vmatpush.msra.mxu1 %v247_v57 }
 0x1b6   :  { %v966_v10 = vmul.f32 %v3036_v22, %v943_v43  ;;  %v947_v13 = vsub.f32 1.0, %v946_v30  ;;  %1359 = vmatpush.msra.mxu3 %v251_v33  ;;  %v3825_v43 = vpop.permute.xlu0 %1094  ;;  %v255_v57 = vld [vmem:[#allocation4 + $0xa0] sm:$0xff] }
 0x1b7   :  { %v3882_v58 = vpop.permute.xlu2 %1100 }
 0x1b8   :  { %2824 = vmatmul.msk.f32.gmra.mxu3 %vm290_vm4, %v966_v10  ;;  %v948_v29 = vmul.f32 %v3034_v18, %v947_v13  ;;  %v1042_v13 = vmul.f32 %v3780_v37, %v3537_v31  ;;  %v258_v31 = vld [vmem:[#allocation4 + $0xb8] sm:$0xff] }
 0x1b9   :  { %1478 = vmatpush.msrb.mxu1 %v258_v31  ;;  %1875 = vmatpush.msrb.mxu3 %v223_v23 }
 0x1ba   :  { %v949_v38 = vadd.f32 %v3034_v18, %v948_v29 }
 0x1bb   :  { %1479 = vmatpush.msrb.mxu1 %v257_v25  ;;  %1876 = vmatpush.msrb.mxu3 %v222_v28 }
 0x1bc   :  { %v953_v44 = vsel %vm952_vm10, %v3034_v18, %v949_v38  ;;  %v1041_v18 = vmul.f32 %v3780_v37, %v3524_v24 }
 0x1bd   :  { %v958_v47 = vsel %vm955_vm13, %v957_v19, %v953_v44  ;;  %v3843_v44 = vpop.permute.xlu1 %1097  ;;  %1480 = vmatpush.msrb.mxu1 %v256_v56  ;;  %1877 = vmatpush.msrb.mxu3 %v221_v46 }
 0x1be   :  { %v967_v48 = vmul.f32 %v3038_v40, %v958_v47  ;;  %v1043_v47 = vmul.f32 %v3780_v37, %v3548_v39  ;;  %v219_v39 = vld [vmem:[%s4579_s27 + $0xb8] sm:$0xff]  ;;  %v3903_v4 = vpop.permute.xlu0 %1103 }
 0x1bf   :  { %1429 = vmatpush.msrb.mxu0 %v219_v39  ;;  %1481 = vmatpush.msrb.mxu1 %v255_v57 }
 0x1c0   :  { %2825 = vmatmul.msk.f32.gmra.mxu3 %vm290_vm4, %v967_v48 }
 0x1c1   :  { %1430 = vmatpush.msrb.mxu0 %v218_v12 }
 0x1c3   :  { %1431 = vmatpush.msrb.mxu0 %v217_v55 }
 0x20b   :  { %v1012_v61 = vpop.f32.mrf.mxu3 }
 0x20c   :  { %v1013_v45 = vadd.f32 %v3775_v36, %v1012_v61 }
 0x20e   :  { %v3785_v62 = vadd.f32 %v1039_v49, %v1013_v45 }
 0x210   :  { %1055 = vst.msk [vmem:[#allocation2 + $0x8] sm:$0xff] %vm290_vm4, %v3785_v62 }
 0x213   :  { %v1015_v1 = vpop.f32.mrf.mxu3 }
 0x214   :  { %v1016_v41 = vadd.f32 %v3775_v36, %v1015_v1  ;;  %v216_v1 = vld [vmem:[%s4579_s27 + $0xa0] sm:$0xff] }
 0x215   :  { %1432 = vmatpush.msrb.mxu0 %v216_v1 }
 0x216   :  { %v3794_v59 = vadd.f32 %v1040_v42, %v1016_v41  ;;  %v220_v41 = vld [vmem:[%s4579_s27 + $0xc0] sm:$0xff] }
 0x217   :  { %v1063_v63 = vld [vmem:[#allocation2 + $0x4] sm:$0xff]  ;;  %1878 = vmatpush.msrb.mxu3 %v220_v41  ;;  %v280_v41 = vld [vmem:[#allocation6 + $0x30] sm:$0xff] }
 0x218   :  { %v1255_v54 = vld [vmem:[#allocation2 + $0x6] sm:$0xff]  ;;  %1056 = vst.msk [vmem:[#allocation2 + $0x10] sm:$0xff] %vm290_vm4, %v3794_v59  ;;  %v1119_v11 = vsel %vm1111_vm15, %v1063_v63, 0.0 }
 0x219   :  { %v1263_v17 = vsel %vm348_vm5, %v1255_v54, 0.0  ;;  %2826 = vmatmul.msk.f32.vlgmr.msra.gmra.mxu0 %vm290_vm4, %v1119_v11  ;;  %2834 = vmatmul.msk.f32.vlgmr.msra.gmra.mxu1 %vm290_vm4, %v1119_v11  ;;  %vm1112_vm5 = vcmp.eq.s32.totalorder %v3810_v0, 1  ;;  %v1045_v54 = vmul.f32 %v3780_v37, %v3584_v60 }
 0x21a   :  { %2842 = vmatmul.msk.f32.vlgmr.msra.gmra.mxu2 %vm290_vm4, %v1263_v17  ;;  %2850 = vmatmul.msk.f32.vlgmr.msra.gmra.mxu3 %vm290_vm4, %v1263_v17 }
 0x21b   :  { %v1018_v16 = vpop.f32.mrf.mxu3  ;;  %1927 = vmatpush.msra.mxu0 %v262_v21 }
 0x21c   :  { %v1019_v8 = vadd.f32 %v3775_v36, %v1018_v16 }
 0x21e   :  { %v3812_v34 = vadd.f32 %v1041_v18, %v1019_v8 }
 0x21f   :  { %v1064_v5 = vld [vmem:[#allocation2 + $0xc] sm:$0xff] }
 0x220   :  { %v1256_v20 = vld [vmem:[#allocation2 + $0xe] sm:$0xff]  ;;  %1057 = vst.msk [vmem:[#allocation2 + $0x18] sm:$0xff] %vm290_vm4, %v3812_v34  ;;  %v1120_v30 = vsel %vm1112_vm5, %v1064_v5, 0.0  ;;  %v3921_v5 = vpop.permute.xlu1 %1106 }
 0x221   :  { %v1264_v22 = vsel %vm349_vm6, %v1256_v20, 0.0  ;;  %2827 = vmatmul.msk.f32.gmra.mxu0 %vm290_vm4, %v1120_v30  ;;  %2835 = vmatmul.msk.f32.gmra.mxu1 %vm290_vm4, %v1120_v30  ;;  %vm1113_vm6 = vcmp.eq.s32.totalorder %v3825_v43, 1  ;;  %v1046_v30 = vmul.f32 %v3780_v37, %v3596_v3  ;;  %v3939_v3 = vpop.permute.xlu2 %1109  ;;  %v268_v43 = vld [vmem:[#allocation4 + $0x108] sm:$0xff] }
 0x222   :  { %2843 = vmatmul.msk.f32.gmra.mxu2 %vm290_vm4, %v1264_v22  ;;  %2851 = vmatmul.msk.f32.gmra.mxu3 %vm290_vm4, %v1264_v22  ;;  %vm1118_vm0 = vcmp.eq.s32.totalorder %v3939_v3, 1 }
 0x223   :  { %v1021_v24 = vpop.f32.mrf.mxu3 }
 0x224   :  { %v1022_v10 = vadd.f32 %v3775_v36, %v1021_v24 }
 0x226   :  { %v3830_v15 = vadd.f32 %v1042_v13, %v1022_v10 }
 0x227   :  { %v1065_v9 = vld [vmem:[#allocation2 + $0x14] sm:$0xff] }
 0x228   :  { %v1257_v29 = vld [vmem:[#allocation2 + $0x16] sm:$0xff]  ;;  %1058 = vst.msk [vmem:[#allocation2 + $0x20] sm:$0xff] %vm290_vm4, %v3830_v15  ;;  %v1121_v35 = vsel %vm1113_vm6, %v1065_v9, 0.0 }
 0x229   :  { %v1265_v38 = vsel %vm350_vm8, %v1257_v29, 0.0  ;;  %2828 = vmatmul.msk.f32.gmra.mxu0 %vm290_vm4, %v1121_v35  ;;  %2836 = vmatmul.msk.f32.gmra.mxu1 %vm290_vm4, %v1121_v35  ;;  %vm1114_vm8 = vcmp.eq.s32.totalorder %v3843_v44, 1  ;;  %v1801_v35 = vpop.permute.xlu0 %1800 }
 0x22a   :  { %2844 = vmatmul.msk.f32.gmra.mxu2 %vm290_vm4, %v1265_v38  ;;  %2852 = vmatmul.msk.f32.gmra.mxu3 %vm290_vm4, %v1265_v38  ;;  %v1775_v38 = vld [vmem:[#allocation2] sm:$0xff] }
 0x22b   :  { %v1024_v19 = vpop.f32.mrf.mxu3 }
 0x22c   :  { %v1025_v40 = vadd.f32 %v3775_v36, %v1024_v19  ;;  %v261_v19 = vld [vmem:[#allocation4 + $0xd0] sm:$0xff] }
 0x22d   :  { %1928 = vmatpush.msra.mxu0 %v261_v19 }
 0x22e   :  { %v3848_v6 = vadd.f32 %v1043_v47, %v1025_v40  ;;  %v260_v40 = vld [vmem:[#allocation4 + $0xc8] sm:$0xff]  ;;  %v259_v47 = vld [vmem:[#allocation4 + $0xc0] sm:$0xff] }
 0x22f   :  { %v1066_v48 = vld [vmem:[#allocation2 + $0x1c] sm:$0xff]  ;;  %1929 = vmatpush.msra.mxu0 %v260_v40 }
 0x230   :  { %v1258_v50 = vld [vmem:[#allocation2 + $0x1e] sm:$0xff]  ;;  %1059 = vst.msk [vmem:[#allocation2 + $0x28] sm:$0xff] %vm290_vm4, %v3848_v6  ;;  %v1122_v2 = vsel %vm1114_vm8, %v1066_v48, 0.0 }
 0x231   :  { %v1266_v27 = vsel %vm351_vm11, %v1258_v50, 0.0  ;;  %2829 = vmatmul.msk.f32.gmra.mxu0 %vm290_vm4, %v1122_v2  ;;  %2837 = vmatmul.msk.f32.gmra.mxu1 %vm290_vm4, %v1122_v2  ;;  %vm1115_vm11 = vcmp.eq.s32.totalorder %v3882_v58, 1 }
 0x232   :  { %2845 = vmatmul.msk.f32.gmra.mxu2 %vm290_vm4, %v1266_v27  ;;  %2853 = vmatmul.msk.f32.gmra.mxu3 %vm290_vm4, %v1266_v27 }
 0x233   :  { %v1027_v52 = vpop.f32.mrf.mxu3  ;;  %1930 = vmatpush.msra.mxu0 %v259_v47 }
 0x234   :  { %v1028_v53 = vadd.f32 %v3775_v36, %v1027_v52 }
 0x236   :  { %v3884_v33 = vadd.f32 %v1044_v32, %v1028_v53 }
 0x237   :  { %v1067_v51 = vld [vmem:[#allocation2 + $0x24] sm:$0xff] }
 0x238   :  { %v1259_v61 = vld [vmem:[#allocation2 + $0x26] sm:$0xff]  ;;  %1060 = vst.msk [vmem:[#allocation2 + $0x30] sm:$0xff] %vm290_vm4, %v3884_v33  ;;  %v1123_v45 = vsel %vm1115_vm11, %v1067_v51, 0.0 }
 0x239   :  { %v1267_v49 = vsel %vm352_vm12, %v1259_v61, 0.0  ;;  %2830 = vmatmul.msk.f32.gmra.mxu0 %vm290_vm4, %v1123_v45  ;;  %2838 = vmatmul.msk.f32.gmra.mxu1 %vm290_vm4, %v1123_v45  ;;  %vm1116_vm12 = vcmp.eq.s32.totalorder %v3903_v4, 1  ;;  %v4007_v61 = vld [vmem:[%s4552_s9 + $0x1] ss:$0 sm:$0xff] }
 0x23a   :  { %2846 = vmatmul.msk.f32.gmra.mxu2 %vm290_vm4, %v1267_v49  ;;  %2854 = vmatmul.msk.f32.gmra.mxu3 %vm290_vm4, %v1267_v49  ;;  %v281_v49 = vld [vmem:[#allocation6 + $0x38] sm:$0xff] }
 0x23b   :  { %v1030_v42 = vpop.f32.mrf.mxu3  ;;  %1722 = vmatpush.msrb.mxu2 %v281_v49 }
 0x23c   :  { %v1031_v63 = vadd.f32 %v3775_v36, %v1030_v42 }
 0x23d   :  { %1723 = vmatpush.msrb.mxu2 %v280_v41 }
 0x23e   :  { %v3908_v11 = vadd.f32 %v1045_v54, %v1031_v63  ;;  %v279_v63 = vld [vmem:[#allocation6 + $0x28] sm:$0xff] }
 0x23f   :  { %v1068_v17 = vld [vmem:[#allocation2 + $0x2c] sm:$0xff]  ;;  %1724 = vmatpush.msrb.mxu2 %v279_v63 }
 0x240   :  { %v1260_v16 = vld [vmem:[#allocation2 + $0x2e] sm:$0xff]  ;;  %1061 = vst.msk [vmem:[#allocation2 + $0x38] sm:$0xff] %vm290_vm4, %v3908_v11  ;;  %v1124_v8 = vsel %vm1116_vm12, %v1068_v17, 0.0 }
 0x241   :  { %v1268_v18 = vsel %vm353_vm14, %v1260_v16, 0.0  ;;  %2831 = vmatmul.msk.f32.gmra.mxu0 %vm290_vm4, %v1124_v8  ;;  %2839 = vmatmul.msk.f32.gmra.mxu1 %vm290_vm4, %v1124_v8  ;;  %vm1117_vm14 = vcmp.eq.s32.totalorder %v3921_v5, 1  ;;  %v278_v8 = vld [vmem:[#allocation6 + $0x20] sm:$0xff] }
 0x242   :  { %2847 = vmatmul.msk.f32.gmra.mxu2 %vm290_vm4, %v1268_v18  ;;  %2855 = vmatmul.msk.f32.gmra.mxu3 %vm290_vm4, %v1268_v18 }
 0x243   :  { %v1033_v60 = vpop.f32.mrf.mxu3  ;;  %1725 = vmatpush.msrb.mxu2 %v278_v8 }
 0x244   :  { %v1034_v20 = vadd.f32 %v3775_v36, %v1033_v60 }
 0x246   :  { %v3926_v22 = vadd.f32 %v1046_v30, %v1034_v20 }
 0x247   :  { %v1069_v7 = vld [vmem:[#allocation2 + $0x34] sm:$0xff] }
 0x248   :  { %v1261_v24 = vld [vmem:[#allocation2 + $0x36] sm:$0xff]  ;;  %1062 = vst.msk [vmem:[#allocation2 + $0x40] sm:$0xff] %vm290_vm4, %v3926_v22  ;;  %v1125_v10 = vsel %vm1117_vm14, %v1069_v7, 0.0 }
 0x249   :  { %v1269_v13 = vsel %vm354_vm2, %v1261_v24, 0.0  ;;  %2832 = vmatmul.msk.f32.gmra.mxu0 %vm290_vm4, %v1125_v10  ;;  %2840 = vmatmul.msk.f32.gmra.mxu1 %vm290_vm4, %v1125_v10  ;;  %vm1823_vm2 = vcmp.eq.s32.totalorder %v1801_v35, 1 }
 0x24a   :  { %2848 = vmatmul.msk.f32.gmra.mxu2 %vm290_vm4, %v1269_v13  ;;  %2856 = vmatmul.msk.f32.gmra.mxu3 %vm290_vm4, %v1269_v13  ;;  %v1831_v31 = vsel %vm1823_vm2, %v1775_v38, 0.0 }
 0x24f   :  { %v1070_v36 = vld [vmem:[#allocation2 + $0x3c] sm:$0xff] }
 0x250   :  { %v1262_v9 = vld [vmem:[#allocation2 + $0x3e] sm:$0xff]  ;;  %v1126_v29 = vsel %vm1118_vm0, %v1070_v36, 0.0 }
 0x251   :  { %v1270_v14 = vsel %vm355_vm3, %v1262_v9, 0.0  ;;  %2833 = vmatmul.msk.f32.gmra.mxu0 %vm290_vm4, %v1126_v29  ;;  %2841 = vmatmul.msk.f32.gmra.mxu1 %vm290_vm4, %v1126_v29  ;;  %v4016_v29 = vld [vmem:[%s4550_s7 + $0x1] ss:$0 sm:$0xff] }
 0x252   :  { %2849 = vmatmul.msk.f32.gmra.mxu2 %vm290_vm4, %v1270_v14  ;;  %2857 = vmatmul.msk.f32.gmra.mxu3 %vm290_vm4, %v1270_v14 }
 0x259   :  { %2858 = vmatmul.msk.f32.vlgmr.msrb.gmra.mxu0 %vm290_vm4, %v3785_v62  ;;  %2866 = vmatmul.msk.f32.vlgmr.msrb.gmra.mxu1 %vm290_vm4, %v3785_v62 }
 0x25a   :  { %2890 = vmatmul.msk.f32.vlgmr.msrb.gmra.mxu3 %vm290_vm4, %v1831_v31 }
 0x261   :  { %2859 = vmatmul.msk.f32.gmra.mxu0 %vm290_vm4, %v3794_v59  ;;  %2867 = vmatmul.msk.f32.gmra.mxu1 %vm290_vm4, %v3794_v59 }
 0x269   :  { %2860 = vmatmul.msk.f32.gmra.mxu0 %vm290_vm4, %v3812_v34  ;;  %2868 = vmatmul.msk.f32.gmra.mxu1 %vm290_vm4, %v3812_v34 }
 0x271   :  { %2861 = vmatmul.msk.f32.gmra.mxu0 %vm290_vm4, %v3830_v15  ;;  %2869 = vmatmul.msk.f32.gmra.mxu1 %vm290_vm4, %v3830_v15 }
 0x279   :  { %2862 = vmatmul.msk.f32.gmra.mxu0 %vm290_vm4, %v3848_v6  ;;  %2870 = vmatmul.msk.f32.gmra.mxu1 %vm290_vm4, %v3848_v6 }
 0x281   :  { %2863 = vmatmul.msk.f32.gmra.mxu0 %vm290_vm4, %v3884_v33  ;;  %2871 = vmatmul.msk.f32.gmra.mxu1 %vm290_vm4, %v3884_v33 }
 0x289   :  { %2864 = vmatmul.msk.f32.gmra.mxu0 %vm290_vm4, %v3908_v11  ;;  %2872 = vmatmul.msk.f32.gmra.mxu1 %vm290_vm4, %v3908_v11 }
 0x291   :  { %2865 = vmatmul.msk.f32.gmra.mxu0 %vm290_vm4, %v3926_v22  ;;  %2873 = vmatmul.msk.f32.gmra.mxu1 %vm290_vm4, %v3926_v22 }
 0x296   :  { %v1168_v48 = vpop.f32.mrf.mxu0  ;;  %v1220_v50 = vpop.f32.mrf.mxu1 }
 0x297   :  { %v1247_v1 = vadd.f32 %v4007_v61, %v1220_v50  ;;  %v1195_v19 = vadd.f32 %v4016_v29, %v1168_v48 }
 0x299   :  { %2898 = vmatmul.msk.f32.vlgmr.msra.gmra.mxu0 %vm290_vm4, %v1831_v31 }
 0x29d   :  { %v1361_v55 = vpop.f32.mrf.mxu3  ;;  %v1312_v17 = vpop.f32.mrf.mxu2 }
 0x29e   :  { %v3984_v2 = vpop.f32.mrf.mxu0  ;;  %v1223_v27 = vpop.f32.mrf.mxu1  ;;  %v1385_v42 = vadd.f32 %v1361_v55, %v1247_v1  ;;  %v1336_v50 = vadd.f32 %v1312_v17, %v1195_v19 }
 0x29f   :  { %v1248_v30 = vadd.f32 %v4007_v61, %v1223_v27  ;;  %v1196_v17 = vadd.f32 %v4016_v29, %v3984_v2 }
 0x2a5   :  { %v1364_v57 = vpop.f32.mrf.mxu3  ;;  %v1315_v36 = vpop.f32.mrf.mxu2 }
 0x2a6   :  { %v3986_v39 = vpop.f32.mrf.mxu0  ;;  %v1226_v23 = vpop.f32.mrf.mxu1  ;;  %v1386_v7 = vadd.f32 %v1364_v57, %v1248_v30 }
 0x2a7   :  { %v1249_v38 = vadd.f32 %v4007_v61, %v1226_v23 }
 0x2ad   :  { %v1367_v18 = vpop.f32.mrf.mxu3  ;;  %v1318_v41 = vpop.f32.mrf.mxu2 }
 0x2ae   :  { %v3988_v12 = vpop.f32.mrf.mxu0  ;;  %v1229_v52 = vpop.f32.mrf.mxu1  ;;  %v1387_v21 = vadd.f32 %v1367_v18, %v1249_v38 }
 0x2b5   :  { %v1370_v14 = vpop.f32.mrf.mxu3 }
 0x2b6   :  { %v3990_v25 = vpop.f32.mrf.mxu0  ;;  %v3992_v28 = vpop.f32.mrf.mxu1 }
 0x2bd   :  { %v1373_v23 = vpop.f32.mrf.mxu3 }
 0x2be   :  { %v3994_v53 = vpop.f32.mrf.mxu0  ;;  %v3996_v32 = vpop.f32.mrf.mxu1 }
 0x2c6   :  { %v3998_v56 = vpop.f32.mrf.mxu0  ;;  %v4000_v46 = vpop.f32.mrf.mxu1 }
 0x2ce   :  { %v4002_v51 = vpop.f32.mrf.mxu1  ;;  %v4009_v45 = vpop.f32.mrf.mxu0 }
 0x2d6   :  { %v1483_v54 = vpop.f32.mrf.mxu1  ;;  %v1434_v60 = vpop.f32.mrf.mxu0 }
 0x2d7   :  { %v1507_v16 = vadd.f32 %v1483_v54, %v1385_v42  ;;  %v1458_v49 = vadd.f32 %v1434_v60, %v1336_v50  ;;  %v1250_v42 = vadd.f32 %v4007_v61, %v1229_v52 }
 0x2d9   :  { %v2874_v20 = vmul.f32 -1.442695, %v1507_v16  ;;  %v1388_v54 = vadd.f32 %v1370_v14, %v1250_v42 }
 0x2db   :  { %3039 = vpow2.f32 %v2874_v20 }
 0x2de   :  { %v1486_v24 = vpop.f32.mrf.mxu1  ;;  %v1437_v31 = vpop.f32.mrf.mxu0 }
 0x2df   :  { %v1508_v10 = vadd.f32 %v1486_v24, %v1386_v7  ;;  %v1337_v7 = vadd.f32 %v1315_v36, %v1196_v17 }
 0x2e1   :  { %v3040_v13 = vpop.eup %3039  ;;  %v2875_v9 = vmul.f32 -1.442695, %v1508_v10  ;;  %v1459_v38 = vadd.f32 %v1437_v31, %v1337_v7 }
 0x2e2   :  { %v1547_v35 = vadd.f32 1.0, %v3040_v13 }
 0x2e3   :  { %3041 = vpow2.f32 %v2875_v9  ;;  %v1251_v9 = vadd.f32 %v4007_v61, %v3992_v28  ;;  %v1197_v28 = vadd.f32 %v4016_v29, %v3986_v39 }
 0x2e4   :  { %3043 = vrcp.f32 %v1547_v35  ;;  %v1566_v8 = vand.u32 2147483648, %v1547_v35  ;;  %v1564_v20 = vand.u32 2147483647, %v1547_v35  ;;  %vm1560_vm1 = vweird.f32 %v1547_v35 }
 0x2e6   :  { %v1489_v40 = vpop.f32.mrf.mxu1  ;;  %v1440_v48 = vpop.f32.mrf.mxu0  ;;  %v1567_v14 = vor.u32 1.1754944e-38, %v1566_v8  ;;  %vm1565_vm9 = vcmp.eq.f32.partialorder %v1564_v20, 8.507059e+37 }
 0x2e7   :  { %v1509_v47 = vadd.f32 %v1489_v40, %v1387_v21 }
 0x2e9   :  { %v3042_v27 = vpop.eup %3041  ;;  %v2876_v55 = vmul.f32 -1.442695, %v1509_v47  ;;  %v1389_v47 = vadd.f32 %v1373_v23, %v1251_v9 }
 0x2ea   :  { %v3044_v57 = vpop.eup %3043  ;;  %v4020_v1 = vadd.f32 1.0, %v3042_v27 }
 0x2eb   :  { %v1556_v63 = vmul.f32 %v3044_v57, %v1547_v35  ;;  %3045 = vpow2.f32 %v2876_v55  ;;  %vm1561_vm3 = vweird.f32 %v3044_v57  ;;  %v1321_v35 = vpop.f32.mrf.mxu2  ;;  %v1376_v55 = vpop.f32.mrf.mxu3 }
 0x2ec   :  { %3047 = vrcp.f32 %v4020_v1  ;;  %vm1562_vm7 = vmor %vm1560_vm1, %vm1561_vm3  ;;  %vm1575_vm13 = vweird.f32 %v4020_v1 }
 0x2ed   :  { %v1557_v16 = vsub.f32 1.0, %v1556_v63  ;;  %3049 = vtanh.f32 %v1458_v49 }
 0x2ee   :  { %v1492_v18 = vpop.f32.mrf.mxu1  ;;  %v1443_v49 = vpop.f32.mrf.mxu0 }
 0x2ef   :  { %v1558_v60 = vmul.f32 %v3044_v57, %v1557_v16  ;;  %v1510_v30 = vadd.f32 %v1492_v18, %v1388_v54  ;;  %v1579_v54 = vand.u32 2147483647, %v4020_v1  ;;  %v1338_v16 = vadd.f32 %v1318_v41, %v1197_v28 }
 0x2f0   :  { %v1252_v18 = vadd.f32 %v4007_v61, %v3996_v32  ;;  %v1198_v32 = vadd.f32 %v4016_v29, %v3988_v12 }
 0x2f1   :  { %v3046_v52 = vpop.eup %3045  ;;  %v1559_v24 = vadd.f32 %v3044_v57, %v1558_v60  ;;  %v2877_v10 = vmul.f32 -1.442695, %v1510_v30  ;;  %v1460_v60 = vadd.f32 %v1440_v48, %v1338_v16  ;;  %vm1580_vm3 = vcmp.eq.f32.partialorder %v1579_v54, 8.507059e+37 }
 0x2f2   :  { %v3048_v13 = vpop.eup %3047  ;;  %v4028_v2 = vadd.f32 1.0, %v3046_v52 }
 0x2f3   :  { %v1563_v21 = vsel %vm1562_vm7, %v3044_v57, %v1559_v24  ;;  %v1571_v19 = vmul.f32 %v3048_v13, %v4020_v1  ;;  %3051 = vpow2.f32 %v2877_v10  ;;  %v3050_v40 = vpop.eup %3049  ;;  %v1581_v57 = vand.u32 2147483648, %v4020_v1 }
 0x2f4   :  { %3053 = vrcp.f32 %v4028_v2  ;;  %v1568_v36 = vsel %vm1565_vm9, %v1567_v14, %v1563_v21  ;;  %vm1576_vm10 = vweird.f32 %v3048_v13  ;;  %v1390_v10 = vadd.f32 %v1376_v55, %v1252_v18 }
 0x2f5   :  { %v1572_v50 = vsub.f32 1.0, %v1571_v19  ;;  %v1675_v27 = vmul.f32 %v3050_v40, %v1568_v36  ;;  %3055 = vtanh.f32 %v1459_v38  ;;  %vm1577_vm2 = vmor %vm1575_vm13, %vm1576_vm10  ;;  %v1582_v30 = vor.u32 1.1754944e-38, %v1581_v57  ;;  %v1324_v38 = vpop.f32.mrf.mxu2  ;;  %v1379_v36 = vpop.f32.mrf.mxu3 }
 0x2f6   :  { %v1495_v31 = vpop.f32.mrf.mxu1  ;;  %v1596_v14 = vand.u32 2147483648, %v4028_v2  ;;  %v1594_v19 = vand.u32 2147483647, %v4028_v2  ;;  %v1339_v40 = vadd.f32 %v1321_v35, %v1198_v32  ;;  %vm1590_vm7 = vweird.f32 %v4028_v2 }
 0x2f7   :  { %v1511_v42 = vadd.f32 %v1495_v31, %v1389_v47  ;;  %2882 = vmatmul.msk.f32.vlgmr.msrb.gmra.mxu2 %vm290_vm4, %v1675_v27  ;;  %v1573_v63 = vmul.f32 %v3048_v13, %v1572_v50  ;;  %v1446_v50 = vpop.f32.mrf.mxu0  ;;  %v1253_v55 = vadd.f32 %v4007_v61, %v4000_v46  ;;  %v1199_v46 = vadd.f32 %v4016_v29, %v3990_v25 }
 0x2f8   :  { %v1461_v31 = vadd.f32 %v1443_v49, %v1339_v40  ;;  %vm1595_vm10 = vcmp.eq.f32.partialorder %v1594_v19, 8.507059e+37  ;;  %v1254_v25 = vadd.f32 %v4007_v61, %v4002_v51  ;;  %v1200_v51 = vadd.f32 %v4016_v29, %v3994_v53 }
 0x2f9   :  { %v3052_v23 = vpop.eup %3051  ;;  %v2878_v17 = vmul.f32 -1.442695, %v1511_v42  ;;  %v1574_v8 = vadd.f32 %v3048_v13, %v1573_v63  ;;  %v1597_v42 = vor.u32 1.1754944e-38, %v1596_v14 }
 0x2fa   :  { %v3054_v39 = vpop.eup %3053  ;;  %v4040_v20 = vadd.f32 1.0, %v3052_v23  ;;  %v1391_v23 = vadd.f32 %v1379_v36, %v1253_v55 }
 0x2fb   :  { %v1586_v7 = vmul.f32 %v3054_v39, %v4028_v2  ;;  %3057 = vpow2.f32 %v2878_v17  ;;  %v1578_v52 = vsel %vm1577_vm2, %v3048_v13, %v1574_v8  ;;  %v3056_v41 = vpop.eup %3055  ;;  %vm1591_vm1 = vweird.f32 %v3054_v39 }
 0x2fc   :  { %3059 = vrcp.f32 %v4040_v20  ;;  %v1583_v24 = vsel %vm1580_vm3, %v1582_v30, %v1578_v52  ;;  %vm1592_vm9 = vmor %vm1590_vm7, %vm1591_vm1  ;;  %v1611_v8 = vand.u32 2147483648, %v4040_v20  ;;  %v1340_v30 = vadd.f32 %v1324_v38, %v1199_v46 }
 0x2fd   :  { %v1587_v1 = vsub.f32 1.0, %v1586_v7  ;;  %v1676_v9 = vmul.f32 %v3056_v41, %v1583_v24  ;;  %3061 = vtanh.f32 %v1460_v60  ;;  %v1327_v52 = vpop.f32.mrf.mxu2  ;;  %vm1605_vm2 = vweird.f32 %v4040_v20 }
 0x2fe   :  { %v1498_v48 = vpop.f32.mrf.mxu1 }
 0x2ff   :  { %v1512_v21 = vadd.f32 %v1498_v48, %v1390_v10  ;;  %2883 = vmatmul.msk.f32.gmra.mxu2 %vm290_vm4, %v1676_v9  ;;  %v1588_v13 = vmul.f32 %v3054_v39, %v1587_v1  ;;  %v1382_v1 = vpop.f32.mrf.mxu3  ;;  %v1462_v9 = vadd.f32 %v1446_v50, %v1340_v30  ;;  %v1612_v48 = vor.u32 1.1754944e-38, %v1611_v8 }
 0x300   :  { %v1392_v19 = vadd.f32 %v1382_v1, %v1254_v25 }
 0x301   :  { %v3058_v47 = vpop.eup %3057  ;;  %v2879_v27 = vmul.f32 -1.442695, %v1512_v21  ;;  %v1589_v28 = vadd.f32 %v3054_v39, %v1588_v13  ;;  %v1449_v21 = vpop.f32.mrf.mxu0 }
 0x302   :  { %v3060_v12 = vpop.eup %3059  ;;  %v4052_v57 = vadd.f32 1.0, %v3058_v47 }
 0x303   :  { %v1601_v63 = vmul.f32 %v3060_v12, %v4040_v20  ;;  %3063 = vpow2.f32 %v2879_v27  ;;  %v1593_v35 = vsel %vm1592_vm9, %v3054_v39, %v1589_v28  ;;  %v3062_v54 = vpop.eup %3061  ;;  %vm1606_vm13 = vweird.f32 %v3060_v12 }
 0x304   :  { %3065 = vrcp.f32 %v4052_v57  ;;  %v1598_v16 = vsel %vm1595_vm10, %v1597_v42, %v1593_v35  ;;  %v1609_v39 = vand.u32 2147483647, %v4040_v20  ;;  %vm1607_vm3 = vmor %vm1605_vm2, %vm1606_vm13  ;;  %v1626_v47 = vand.u32 2147483648, %v4052_v57 }
 0x305   :  { %v1602_v2 = vsub.f32 1.0, %v1601_v63  ;;  %v1677_v17 = vmul.f32 %v3062_v54, %v1598_v16  ;;  %3067 = vtanh.f32 %v1461_v31  ;;  %v1624_v28 = vand.u32 2147483647, %v4052_v57  ;;  %v1330_v16 = vpop.f32.mrf.mxu2 }
 0x306   :  { %v1501_v49 = vpop.f32.mrf.mxu1  ;;  %vm1610_vm1 = vcmp.eq.f32.partialorder %v1609_v39, 8.507059e+37  ;;  %vm1620_vm9 = vweird.f32 %v4052_v57  ;;  %v1627_v54 = vor.u32 1.1754944e-38, %v1626_v47 }
 0x307   :  { %v1513_v18 = vadd.f32 %v1501_v49, %v1391_v23  ;;  %2884 = vmatmul.msk.f32.gmra.mxu2 %vm290_vm4, %v1677_v17  ;;  %v1603_v60 = vmul.f32 %v3060_v12, %v1602_v2  ;;  %vm1625_vm13 = vcmp.eq.f32.partialorder %v1624_v28, 8.507059e+37  ;;  %v1880_v3 = vpop.f32.mrf.mxu3 }
 0x309   :  { %v3064_v7 = vpop.eup %3063  ;;  %v2880_v41 = vmul.f32 -1.442695, %v1513_v18  ;;  %v1604_v24 = vadd.f32 %v3060_v12, %v1603_v60  ;;  %v1452_v8 = vpop.f32.mrf.mxu0 }
 0x30a   :  { %v3066_v10 = vpop.eup %3065  ;;  %v4064_v32 = vadd.f32 1.0, %v3064_v7 }
 0x30b   :  { %v1616_v14 = vmul.f32 %v3066_v10, %v4052_v57  ;;  %3069 = vpow2.f32 %v2880_v41  ;;  %v1608_v38 = vsel %vm1607_vm3, %v3060_v12, %v1604_v24  ;;  %v3068_v13 = vpop.eup %3067  ;;  %vm1621_vm7 = vweird.f32 %v3066_v10 }
 0x30c   :  { %3071 = vrcp.f32 %v4064_v32  ;;  %v1613_v20 = vsel %vm1610_vm1, %v1612_v48, %v1608_v38  ;;  %v1341_v12 = vadd.f32 %v1327_v52, %v1200_v51  ;;  %vm1622_vm10 = vmor %vm1620_vm9, %vm1621_vm7  ;;  %v1201_v57 = vadd.f32 %v4016_v29, %v3998_v56 }
 0x30d   :  { %v1617_v40 = vsub.f32 1.0, %v1616_v14  ;;  %v1678_v36 = vmul.f32 %v3068_v13, %v1613_v20  ;;  %3073 = vtanh.f32 %v1462_v9  ;;  %v1641_v60 = vand.u32 2147483648, %v4064_v32 }
 0x30e   :  { %v1504_v61 = vpop.f32.mrf.mxu1  ;;  %v1463_v35 = vadd.f32 %v1449_v21, %v1341_v12  ;;  %v1639_v30 = vand.u32 2147483647, %v4064_v32  ;;  %v1342_v7 = vadd.f32 %v1330_v16, %v1201_v57  ;;  %vm1635_vm3 = vweird.f32 %v4064_v32  ;;  %v1333_v21 = vpop.f32.mrf.mxu2  ;;  %v225_v57 = vld [vmem:[%s4579_s27 + $0xe8] sm:$0xff] }
 0x30f   :  { %v1514_v50 = vadd.f32 %v1504_v61, %v1392_v19  ;;  %2885 = vmatmul.msk.f32.gmra.mxu2 %vm290_vm4, %v1678_v36  ;;  %v1618_v27 = vmul.f32 %v3066_v10, %v1617_v40  ;;  %v1642_v1 = vor.u32 1.1754944e-38, %v1641_v60  ;;  %v1202_v20 = vadd.f32 %v4016_v29, %v4009_v45  ;;  %v264_v60 = vld [vmem:[#allocation4 + $0xe8] sm:$0xff] }
 0x310   :  { %vm1640_vm7 = vcmp.eq.f32.partialorder %v1639_v30, 8.507059e+37  ;;  %v263_v30 = vld [vmem:[#allocation4 + $0xe0] sm:$0xff] }
 0x311   :  { %v3070_v55 = vpop.eup %3069  ;;  %v2881_v31 = vmul.f32 -1.442695, %v1514_v50  ;;  %v1619_v42 = vadd.f32 %v3066_v10, %v1618_v27  ;;  %v1343_v51 = vadd.f32 %v1333_v21, %v1202_v20  ;;  %v1753_v20 = vmul.f32 %v3780_v37, %v3812_v34 }
 0x312   :  { %v3072_v63 = vpop.eup %3071  ;;  %v1553_v53 = vadd.f32 1.0, %v3070_v55 }
 0x313   :  { %v1631_v23 = vmul.f32 %v3072_v63, %v4064_v32  ;;  %3075 = vpow2.f32 %v2881_v31  ;;  %v1623_v2 = vsel %vm1622_vm10, %v3066_v10, %v1619_v42  ;;  %v3074_v17 = vpop.eup %3073  ;;  %vm1636_vm2 = vweird.f32 %v3072_v63  ;;  %v1455_v32 = vpop.f32.mrf.mxu0 }
 0x314   :  { %3077 = vrcp.f32 %v1553_v53  ;;  %v1628_v46 = vsel %vm1625_vm13, %v1627_v54, %v1623_v2  ;;  %v1464_v10 = vadd.f32 %v1452_v8, %v1342_v7  ;;  %vm1637_vm1 = vmor %vm1635_vm3, %vm1636_vm2  ;;  %v1656_v19 = vand.u32 2147483648, %v1553_v53  ;;  %v226_v8 = vld [vmem:[%s4579_s27 + $0xf0] sm:$0xff]  ;;  %v4101_v7 = vld [vmem:[%s4554_s11 + $0x1] ss:$0 sm:$0xff] }
 0x315   :  { %v1632_v49 = vsub.f32 1.0, %v1631_v23  ;;  %v1679_v18 = vmul.f32 %v3074_v17, %v1628_v46  ;;  %3079 = vtanh.f32 %v1463_v35  ;;  %v1654_v36 = vand.u32 2147483647, %v1553_v53  ;;  %v227_v46 = vld [vmem:[%s4579_s27 + $0xf8] sm:$0xff] }
 0x316   :  { %vm1650_vm10 = vweird.f32 %v1553_v53  ;;  %v1465_v50 = vadd.f32 %v1455_v32, %v1343_v51  ;;  %v1657_v27 = vor.u32 1.1754944e-38, %v1656_v19  ;;  %2019 = vmatpush.msra.mxu1 %v227_v46  ;;  %v1807_v19 = vpop.permute.xlu2 %1806 }
 0x317   :  { %2886 = vmatmul.msk.f32.gmra.mxu2 %vm290_vm4, %v1679_v18  ;;  %v1633_v39 = vmul.f32 %v3072_v63, %v1632_v49  ;;  %vm1655_vm2 = vcmp.eq.f32.partialorder %v1654_v36, 8.507059e+37  ;;  %v266_v49 = vld [vmem:[#allocation4 + $0xf8] sm:$0xff]  ;;  %v265_v18 = vld [vmem:[#allocation4 + $0xf0] sm:$0xff] }
 0x318   :  { %2068 = vmatpush.msra.mxu2 %v266_v49  ;;  %2020 = vmatpush.msra.mxu1 %v226_v8  ;;  %v228_v49 = vld [vmem:[%s4579_s27 + $0x100] sm:$0xff] }
 0x319   :  { %v3076_v52 = vpop.eup %3075  ;;  %v1634_v41 = vadd.f32 %v3072_v63, %v1633_v39  ;;  %v224_v39 = vld [vmem:[%s4579_s27 + $0xe0] sm:$0xff] }
 0x31a   :  { %v3078_v24 = vpop.eup %3077  ;;  %v1554_v25 = vadd.f32 1.0, %v3076_v52  ;;  %2069 = vmatpush.msra.mxu2 %v265_v18  ;;  %2021 = vmatpush.msra.mxu1 %v225_v57 }
 0x31b   :  { %v1646_v56 = vmul.f32 %v3078_v24, %v1553_v53  ;;  %v1638_v9 = vsel %vm1637_vm1, %v3072_v63, %v1634_v41  ;;  %v3080_v48 = vpop.eup %3079  ;;  %vm1651_vm9 = vweird.f32 %v3078_v24  ;;  %v1932_v5 = vpop.f32.mrf.mxu0 }
 0x31c   :  { %3081 = vrcp.f32 %v1554_v25  ;;  %v1643_v14 = vsel %vm1640_vm7, %v1642_v1, %v1638_v9  ;;  %vm1652_vm13 = vmor %vm1650_vm10, %vm1651_vm9  ;;  %v1671_v42 = vand.u32 2147483648, %v1554_v25  ;;  %v1669_v35 = vand.u32 2147483647, %v1554_v25  ;;  %2070 = vmatpush.msra.mxu2 %v264_v60  ;;  %2022 = vmatpush.msra.mxu1 %v224_v39  ;;  %v1804_v1 = vpop.permute.xlu1 %1803 }
 0x31d   :  { %v1647_v38 = vsub.f32 1.0, %v1646_v56  ;;  %v1680_v13 = vmul.f32 %v3080_v48, %v1643_v14  ;;  %3083 = vtanh.f32 %v1464_v10  ;;  %vm1665_vm1 = vweird.f32 %v1554_v25 }
 0x31e   :  { %3085 = vtanh.f32 %v1465_v50  ;;  %v1672_v53 = vor.u32 1.1754944e-38, %v1671_v42  ;;  %vm1670_vm9 = vcmp.eq.f32.partialorder %v1669_v35, 8.507059e+37  ;;  %2071 = vmatpush.msra.mxu2 %v263_v30  ;;  %v1752_v9 = vmul.f32 %v3780_v37, %v3794_v59  ;;  %v4140_v50 = vld [vmem:[%s4555_s12] ss:$0 sm:$0xff]  ;;  %v1816_v18 = vpop.permute.xlu2 %1815 }
 0x31f   :  { %2887 = vmatmul.msk.f32.gmra.mxu2 %vm290_vm4, %v1680_v13  ;;  %v1648_v40 = vmul.f32 %v3078_v24, %v1647_v38  ;;  %vm1824_vm10 = vcmp.eq.s32.totalorder %v1804_v1, 1  ;;  %v1754_v0 = vmul.f32 %v4140_v50, %v3830_v15  ;;  %v231_v15 = vld [vmem:[%s4579_s27 + $0x118] sm:$0xff]  ;;  %v1756_v44 = vmul.f32 %v4140_v50, %v3884_v33 }
 0x320   :  { %2141 = vmatpush.msra.mxu3 %v231_v15  ;;  %v1757_v1 = vmul.f32 %v4140_v50, %v3908_v11 }
 0x321   :  { %v1649_v61 = vadd.f32 %v3078_v24, %v1648_v40 }
 0x322   :  { %v3082_v47 = vpop.eup %3081 }
 0x323   :  { %v1661_v28 = vmul.f32 %v3082_v47, %v1554_v25  ;;  %v1653_v12 = vsel %vm1652_vm13, %v3078_v24, %v1649_v61  ;;  %v3084_v55 = vpop.eup %3083  ;;  %vm1666_vm3 = vweird.f32 %v3082_v47  ;;  %v1751_v24 = vmul.f32 %v3780_v37, %v3785_v62  ;;  %v270_v37 = vld [vmem:[#allocation4 + $0x118] sm:$0xff]  ;;  %v1810_v61 = vpop.permute.xlu0 %1809 }
 0x324   :  { %v1658_v45 = vsel %vm1655_vm2, %v1657_v27, %v1653_v12  ;;  %vm1667_vm7 = vmor %vm1665_vm1, %vm1666_vm3  ;;  %v3086_v23 = vpop.eup %3085  ;;  %vm1825_vm13 = vcmp.eq.s32.totalorder %v1807_v19, 1  ;;  %2190 = vmatpush.msrb.mxu0 %v270_v37 }
 0x325   :  { %v1662_v29 = vsub.f32 1.0, %v1661_v28  ;;  %v1681_v31 = vmul.f32 %v3084_v55, %v1658_v45 }
 0x327   :  { %2888 = vmatmul.msk.f32.gmra.mxu2 %vm290_vm4, %v1681_v31  ;;  %v1663_v63 = vmul.f32 %v3082_v47, %v1662_v29  ;;  %v230_v29 = vld [vmem:[%s4579_s27 + $0x110] sm:$0xff]  ;;  %v269_v31 = vld [vmem:[#allocation4 + $0x110] sm:$0xff] }
 0x328   :  { %2191 = vmatpush.msrb.mxu0 %v269_v31  ;;  %2142 = vmatpush.msra.mxu3 %v230_v29 }
 0x329   :  { %v1664_v54 = vadd.f32 %v3082_v47, %v1663_v63  ;;  %v1813_v63 = vpop.permute.xlu1 %1812 }
 0x32a   :  { %2192 = vmatpush.msrb.mxu0 %v268_v43  ;;  %v285_v43 = vld [vmem:[#allocation6 + $0x58] sm:$0xff] }
 0x32b   :  { %v1668_v16 = vsel %vm1667_vm7, %v3082_v47, %v1664_v54  ;;  %v1755_v54 = vmul.f32 %v4140_v50, %v3848_v6  ;;  %2434 = vmatpush.msrb.mxu1 %v285_v43 }
 0x32c   :  { %v1673_v2 = vsel %vm1670_vm9, %v1672_v53, %v1668_v16  ;;  %v229_v53 = vld [vmem:[%s4579_s27 + $0x108] sm:$0xff] }
 0x32d   :  { %v1682_v17 = vmul.f32 %v3086_v23, %v1673_v2  ;;  %v267_v16 = vld [vmem:[#allocation4 + $0x100] sm:$0xff]  ;;  %2143 = vmatpush.msra.mxu3 %v229_v53 }
 0x32e   :  { %2193 = vmatpush.msrb.mxu0 %v267_v16  ;;  %v283_v16 = vld [vmem:[#allocation6 + $0x48] sm:$0xff] }
 0x32f   :  { %2889 = vmatmul.msk.f32.gmra.mxu2 %vm290_vm4, %v1682_v17  ;;  %2144 = vmatpush.msra.mxu3 %v228_v49 }
 0x37a   :  { %v1727_v52 = vpop.f32.mrf.mxu2 }
 0x37b   :  { %v1728_v41 = vadd.f32 %v4101_v7, %v1727_v52 }
 0x37d   :  { %v4106_v10 = vadd.f32 %v1751_v24, %v1728_v41  ;;  %v1819_v24 = vpop.permute.xlu0 %1818 }
 0x37f   :  { %1767 = vst.msk [vmem:[#allocation2 + $0x8] sm:$0xff] %vm290_vm4, %v4106_v10 }
 0x382   :  { %v1730_v25 = vpop.f32.mrf.mxu2 }
 0x383   :  { %v1731_v56 = vadd.f32 %v4101_v7, %v1730_v25 }
 0x385   :  { %v4113_v48 = vadd.f32 %v1752_v9, %v1731_v56 }
 0x386   :  { %v1776_v14 = vld [vmem:[#allocation2 + $0x8] sm:$0xff] }
 0x387   :  { %v1967_v21 = vld [vmem:[#allocation2 + $0x4] sm:$0xff]  ;;  %1768 = vst.msk [vmem:[#allocation2 + $0x10] sm:$0xff] %vm290_vm4, %v4113_v48  ;;  %v1832_v62 = vsel %vm1824_vm10, %v1776_v14, 0.0 }
 0x388   :  { %v1975_v38 = vsel %vm1111_vm15, %v1967_v21, 0.0  ;;  %2891 = vmatmul.msk.f32.gmra.mxu3 %vm290_vm4, %v1832_v62  ;;  %2899 = vmatmul.msk.f32.gmra.mxu0 %vm290_vm4, %v1832_v62  ;;  %vm1826_vm15 = vcmp.eq.s32.totalorder %v1810_v61, 1  ;;  %v1822_v62 = vpop.permute.xlu1 %1821 }
 0x389   :  { %2906 = vmatmul.msk.f32.vlgmr.msra.gmra.mxu1 %vm290_vm4, %v1975_v38  ;;  %2914 = vmatmul.msk.f32.vlgmr.msra.gmra.mxu2 %vm290_vm4, %v1975_v38 }
 0x38a   :  { %v1733_v59 = vpop.f32.mrf.mxu2 }
 0x38b   :  { %v1734_v13 = vadd.f32 %v4101_v7, %v1733_v59  ;;  %v1758_v59 = vmul.f32 %v4140_v50, %v3926_v22 }
 0x38d   :  { %v4126_v32 = vadd.f32 %v1753_v20, %v1734_v13 }
 0x38e   :  { %v1777_v26 = vld [vmem:[#allocation2 + $0x10] sm:$0xff] }
 0x38f   :  { %v1968_v40 = vld [vmem:[#allocation2 + $0xc] sm:$0xff]  ;;  %1769 = vst.msk [vmem:[#allocation2 + $0x18] sm:$0xff] %vm290_vm4, %v4126_v32  ;;  %v1833_v36 = vsel %vm1825_vm13, %v1777_v26, 0.0 }
 0x390   :  { %v1976_v51 = vsel %vm1112_vm5, %v1968_v40, 0.0  ;;  %2892 = vmatmul.msk.f32.gmra.mxu3 %vm290_vm4, %v1833_v36  ;;  %2900 = vmatmul.msk.f32.gmra.mxu0 %vm290_vm4, %v1833_v36  ;;  %vm1827_vm5 = vcmp.eq.s32.totalorder %v1813_v63, 1 }
 0x391   :  { %2907 = vmatmul.msk.f32.gmra.mxu1 %vm290_vm4, %v1976_v51  ;;  %2915 = vmatmul.msk.f32.gmra.mxu2 %vm290_vm4, %v1976_v51 }
 0x392   :  { %v1736_v34 = vpop.f32.mrf.mxu2 }
 0x393   :  { %v1737_v47 = vadd.f32 %v4101_v7, %v1736_v34 }
 0x395   :  { %v4144_v27 = vadd.f32 %v1754_v0, %v1737_v47 }
 0x396   :  { %v1778_v28 = vld [vmem:[#allocation2 + $0x18] sm:$0xff] }
 0x397   :  { %v1969_v12 = vld [vmem:[#allocation2 + $0x14] sm:$0xff]  ;;  %1770 = vst.msk [vmem:[#allocation2 + $0x20] sm:$0xff] %vm290_vm4, %v4144_v27  ;;  %v1834_v55 = vsel %vm1826_vm15, %v1778_v28, 0.0 }
 0x398   :  { %v1977_v45 = vsel %vm1113_vm6, %v1969_v12, 0.0  ;;  %2893 = vmatmul.msk.f32.gmra.mxu3 %vm290_vm4, %v1834_v55  ;;  %2901 = vmatmul.msk.f32.gmra.mxu0 %vm290_vm4, %v1834_v55  ;;  %vm1828_vm6 = vcmp.eq.s32.totalorder %v1816_v18, 1 }
 0x399   :  { %2908 = vmatmul.msk.f32.gmra.mxu1 %vm290_vm4, %v1977_v45  ;;  %2916 = vmatmul.msk.f32.gmra.mxu2 %vm290_vm4, %v1977_v45 }
 0x39a   :  { %v1739_v42 = vpop.f32.mrf.mxu2 }
 0x39b   :  { %v1740_v35 = vadd.f32 %v4101_v7, %v1739_v42  ;;  %v4275_v42 = vld [vmem:[%s4552_s9 + $0x2] ss:$0 sm:$0xff] }
 0x39c   :  { %v1959_v63 = vadd.f32 %v4275_v42, %v1932_v5 }
 0x39d   :  { %v4166_v23 = vadd.f32 %v1755_v54, %v1740_v35  ;;  %v284_v35 = vld [vmem:[#allocation6 + $0x50] sm:$0xff] }
 0x39e   :  { %v1779_v2 = vld [vmem:[#allocation2 + $0x20] sm:$0xff]  ;;  %2435 = vmatpush.msrb.mxu1 %v284_v35 }
 0x39f   :  { %v1970_v17 = vld [vmem:[#allocation2 + $0x1c] sm:$0xff]  ;;  %1771 = vst.msk [vmem:[#allocation2 + $0x28] sm:$0xff] %vm290_vm4, %v4166_v23  ;;  %v1835_v46 = vsel %vm1827_vm5, %v1779_v2, 0.0 }
 0x3a0   :  { %v1978_v6 = vsel %vm1114_vm8, %v1970_v17, 0.0  ;;  %2894 = vmatmul.msk.f32.gmra.mxu3 %vm290_vm4, %v1835_v46  ;;  %2902 = vmatmul.msk.f32.gmra.mxu0 %vm290_vm4, %v1835_v46  ;;  %vm1829_vm8 = vcmp.eq.s32.totalorder %v1819_v24, 1  ;;  %v4284_v24 = vld [vmem:[%s4550_s7 + $0x2] ss:$0 sm:$0xff] }
 0x3a1   :  { %2909 = vmatmul.msk.f32.gmra.mxu1 %vm290_vm4, %v1978_v6  ;;  %2917 = vmatmul.msk.f32.gmra.mxu2 %vm290_vm4, %v1978_v6  ;;  %v282_v6 = vld [vmem:[#allocation6 + $0x40] sm:$0xff] }
 0x3a2   :  { %v1742_v8 = vpop.f32.mrf.mxu2  ;;  %2436 = vmatpush.msrb.mxu1 %v283_v16 }
 0x3a3   :  { %v1743_v57 = vadd.f32 %v4101_v7, %v1742_v8 }
 0x3a4   :  { %2437 = vmatpush.msrb.mxu1 %v282_v6 }
 0x3a5   :  { %v4182_v60 = vadd.f32 %v1756_v44, %v1743_v57 }
 0x3a6   :  { %v1780_v39 = vld [vmem:[#allocation2 + $0x28] sm:$0xff] }
 0x3a7   :  { %v1971_v30 = vld [vmem:[#allocation2 + $0x24] sm:$0xff]  ;;  %1772 = vst.msk [vmem:[#allocation2 + $0x30] sm:$0xff] %vm290_vm4, %v4182_v60  ;;  %v1836_v52 = vsel %vm1828_vm6, %v1780_v39, 0.0 }
 0x3a8   :  { %v1979_v41 = vsel %vm1115_vm11, %v1971_v30, 0.0  ;;  %2895 = vmatmul.msk.f32.gmra.mxu3 %vm290_vm4, %v1836_v52  ;;  %2903 = vmatmul.msk.f32.gmra.mxu0 %vm290_vm4, %v1836_v52  ;;  %vm1830_vm11 = vcmp.eq.s32.totalorder %v1822_v62, 1 }
 0x3a9   :  { %2910 = vmatmul.msk.f32.gmra.mxu1 %vm290_vm4, %v1979_v41  ;;  %2918 = vmatmul.msk.f32.gmra.mxu2 %vm290_vm4, %v1979_v41 }
 0x3aa   :  { %v1745_v33 = vpop.f32.mrf.mxu2 }
 0x3ab   :  { %v1746_v25 = vadd.f32 %v4101_v7, %v1745_v33 }
 0x3ad   :  { %v4195_v56 = vadd.f32 %v1757_v1, %v1746_v25 }
 0x3ae   :  { %v1781_v58 = vld [vmem:[#allocation2 + $0x30] sm:$0xff] }
 0x3af   :  { %v1972_v9 = vld [vmem:[#allocation2 + $0x2c] sm:$0xff]  ;;  %1773 = vst.msk [vmem:[#allocation2 + $0x38] sm:$0xff] %vm290_vm4, %v4195_v56  ;;  %v1837_v14 = vsel %vm1829_vm8, %v1781_v58, 0.0 }
 0x3b0   :  { %v1980_v21 = vsel %vm1116_vm12, %v1972_v9, 0.0  ;;  %2896 = vmatmul.msk.f32.gmra.mxu3 %vm290_vm4, %v1837_v14  ;;  %2904 = vmatmul.msk.f32.gmra.mxu0 %vm290_vm4, %v1837_v14 }
 0x3b1   :  { %2911 = vmatmul.msk.f32.gmra.mxu1 %vm290_vm4, %v1980_v21  ;;  %2919 = vmatmul.msk.f32.gmra.mxu2 %vm290_vm4, %v1980_v21  ;;  %v1907_v21 = vadd.f32 %v4284_v24, %v1880_v3 }
 0x3b2   :  { %v1748_v11 = vpop.f32.mrf.mxu2 }
 0x3b3   :  { %v1749_v38 = vadd.f32 %v4101_v7, %v1748_v11 }
 0x3b5   :  { %v4208_v13 = vadd.f32 %v1758_v59, %v1749_v38 }
 0x3b6   :  { %v1782_v4 = vld [vmem:[#allocation2 + $0x38] sm:$0xff] }
 0x3b7   :  { %v1973_v20 = vld [vmem:[#allocation2 + $0x34] sm:$0xff]  ;;  %1774 = vst.msk [vmem:[#allocation2 + $0x40] sm:$0xff] %vm290_vm4, %v4208_v13  ;;  %v1838_v19 = vsel %vm1830_vm11, %v1782_v4, 0.0 }
 0x3b8   :  { %v1981_v26 = vsel %vm1117_vm14, %v1973_v20, 0.0  ;;  %2897 = vmatmul.msk.f32.gmra.mxu3 %vm290_vm4, %v1838_v19  ;;  %2905 = vmatmul.msk.f32.gmra.mxu0 %vm290_vm4, %v1838_v19 }
 0x3b9   :  { %2912 = vmatmul.msk.f32.gmra.mxu1 %vm290_vm4, %v1981_v26  ;;  %2920 = vmatmul.msk.f32.gmra.mxu2 %vm290_vm4, %v1981_v26 }
 0x3be   :  { %v1974_v22 = vld [vmem:[#allocation2 + $0x3c] sm:$0xff] }
 0x3bf   :  { %v1982_v7 = vsel %vm1118_vm0, %v1974_v22, 0.0 }
 0x3c0   :  { %2922 = vmatmul.msk.f32.vlgmr.msra.gmra.mxu3 %vm290_vm4, %v4106_v10  ;;  %2930 = vmatmul.msk.f32.vlgmr.msrb.gmra.mxu0 %vm290_vm4, %v4106_v10 }
 0x3c1   :  { %2913 = vmatmul.msk.f32.gmra.mxu1 %vm290_vm4, %v1982_v7  ;;  %2921 = vmatmul.msk.f32.gmra.mxu2 %vm290_vm4, %v1982_v7 }
 0x3c8   :  { %2923 = vmatmul.msk.f32.gmra.mxu3 %vm290_vm4, %v4113_v48  ;;  %2931 = vmatmul.msk.f32.gmra.mxu0 %vm290_vm4, %v4113_v48 }
 0x3d0   :  { %2924 = vmatmul.msk.f32.gmra.mxu3 %vm290_vm4, %v4126_v32  ;;  %2932 = vmatmul.msk.f32.gmra.mxu0 %vm290_vm4, %v4126_v32 }
 0x3d8   :  { %2925 = vmatmul.msk.f32.gmra.mxu3 %vm290_vm4, %v4144_v27  ;;  %2933 = vmatmul.msk.f32.gmra.mxu0 %vm290_vm4, %v4144_v27 }
 0x3e0   :  { %2926 = vmatmul.msk.f32.gmra.mxu3 %vm290_vm4, %v4166_v23  ;;  %2934 = vmatmul.msk.f32.gmra.mxu0 %vm290_vm4, %v4166_v23 }
 0x3e8   :  { %2927 = vmatmul.msk.f32.gmra.mxu3 %vm290_vm4, %v4182_v60  ;;  %2935 = vmatmul.msk.f32.gmra.mxu0 %vm290_vm4, %v4182_v60 }
 0x3f0   :  { %2928 = vmatmul.msk.f32.gmra.mxu3 %vm290_vm4, %v4195_v56  ;;  %2936 = vmatmul.msk.f32.gmra.mxu0 %vm290_vm4, %v4195_v56 }
 0x3f8   :  { %2929 = vmatmul.msk.f32.gmra.mxu3 %vm290_vm4, %v4208_v13  ;;  %2937 = vmatmul.msk.f32.gmra.mxu0 %vm290_vm4, %v4208_v13 }
 0x405   :  { %v1935_v40 = vpop.f32.mrf.mxu0 }
 0x406   :  { %v2024_v17 = vpop.f32.mrf.mxu1  ;;  %v1960_v18 = vadd.f32 %v4275_v42, %v1935_v40 }
 0x407   :  { %v2048_v38 = vadd.f32 %v2024_v17, %v1907_v21 }
 0x40b   :  { %v1883_v36 = vpop.f32.mrf.mxu3 }
 0x40c   :  { %v2073_v12 = vpop.f32.mrf.mxu2  ;;  %v1908_v40 = vadd.f32 %v4284_v24, %v1883_v36 }
 0x40d   :  { %v1938_v51 = vpop.f32.mrf.mxu0  ;;  %v2097_v53 = vadd.f32 %v2073_v12, %v1959_v63 }
 0x40e   :  { %v2027_v41 = vpop.f32.mrf.mxu1  ;;  %v1961_v58 = vadd.f32 %v4275_v42, %v1938_v51 }
 0x413   :  { %v4254_v37 = vpop.f32.mrf.mxu3 }
 0x414   :  { %v2076_v29 = vpop.f32.mrf.mxu2 }
 0x415   :  { %v1941_v34 = vpop.f32.mrf.mxu0  ;;  %v2098_v44 = vadd.f32 %v2076_v29, %v1960_v18 }
 0x416   :  { %v1962_v22 = vadd.f32 %v4275_v42, %v1941_v34  ;;  %v2030_v7 = vpop.f32.mrf.mxu1 }
 0x41b   :  { %v4256_v61 = vpop.f32.mrf.mxu3 }
 0x41c   :  { %v2079_v49 = vpop.f32.mrf.mxu2 }
 0x41d   :  { %v4258_v47 = vpop.f32.mrf.mxu0  ;;  %v2099_v14 = vadd.f32 %v2079_v49, %v1961_v58 }
 0x41e   :  { %v1963_v36 = vadd.f32 %v4275_v42, %v4258_v47 }
 0x423   :  { %v4260_v0 = vpop.f32.mrf.mxu3 }
 0x424   :  { %v2082_v25 = vpop.f32.mrf.mxu2 }
 0x425   :  { %v4262_v28 = vpop.f32.mrf.mxu0  ;;  %v2100_v3 = vadd.f32 %v2082_v25, %v1962_v22 }
 0x42b   :  { %v4264_v55 = vpop.f32.mrf.mxu3 }
 0x42c   :  { %v2085_v51 = vpop.f32.mrf.mxu2 }
 0x42d   :  { %v4266_v45 = vpop.f32.mrf.mxu0 }
 0x433   :  { %v4268_v15 = vpop.f32.mrf.mxu3 }
 0x435   :  { %v4270_v31 = vpop.f32.mrf.mxu0 }
 0x43b   :  { %v4278_v54 = vpop.f32.mrf.mxu3 }
 0x43d   :  { %v2195_v2 = vpop.f32.mrf.mxu0 }
 0x43e   :  { %v2219_v46 = vadd.f32 %v2195_v2, %v2097_v53  ;;  %v2049_v2 = vadd.f32 %v2027_v41, %v1908_v40  ;;  %v2033_v41 = vpop.f32.mrf.mxu1 }
 0x440   :  { %v2938_v8 = vmul.f32 -1.442695, %v2219_v46 }
 0x442   :  { %3087 = vpow2.f32 %v2938_v8 }
 0x443   :  { %v2146_v57 = vpop.f32.mrf.mxu3 }
 0x444   :  { %v2170_v19 = vadd.f32 %v2146_v57, %v2048_v38 }
 0x445   :  { %v2198_v39 = vpop.f32.mrf.mxu0 }
 0x446   :  { %v2220_v30 = vadd.f32 %v2198_v39, %v2098_v44 }
 0x448   :  { %v3088_v52 = vpop.eup %3087  ;;  %v2939_v33 = vmul.f32 -1.442695, %v2220_v30  ;;  %v1909_v30 = vadd.f32 %v4284_v24, %v4254_v37 }
 0x449   :  { %v2259_v1 = vadd.f32 1.0, %v3088_v52 }
 0x44a   :  { %3089 = vpow2.f32 %v2939_v33  ;;  %v2101_v33 = vadd.f32 %v2085_v51, %v1963_v36 }
 0x44b   :  { %3091 = vrcp.f32 %v2259_v1  ;;  %v2149_v9 = vpop.f32.mrf.mxu3  ;;  %v2278_v43 = vand.u32 2147483648, %v2259_v1  ;;  %v2276_v53 = vand.u32 2147483647, %v2259_v1  ;;  %vm2272_vm14 = vweird.f32 %v2259_v1 }
 0x44c   :  { %v2171_v8 = vadd.f32 %v2149_v9, %v2049_v2 }
 0x44d   :  { %v2201_v11 = vpop.f32.mrf.mxu0  ;;  %v2279_v49 = vor.u32 1.1754944e-38, %v2278_v43  ;;  %vm2277_vm2 = vcmp.eq.f32.partialorder %v2276_v53, 8.507059e+37  ;;  %v2036_v53 = vpop.f32.mrf.mxu1 }
 0x44e   :  { %v2221_v62 = vadd.f32 %v2201_v11, %v2099_v14 }
 0x450   :  { %v3090_v59 = vpop.eup %3089  ;;  %v2940_v4 = vmul.f32 -1.442695, %v2221_v62  ;;  %v2050_v62 = vadd.f32 %v2030_v7, %v1909_v30 }
 0x451   :  { %v3092_v20 = vpop.eup %3091  ;;  %v4288_v26 = vadd.f32 1.0, %v3090_v59 }
 0x452   :  { %v2268_v5 = vmul.f32 %v3092_v20, %v2259_v1  ;;  %3093 = vpow2.f32 %v2940_v4  ;;  %vm2273_vm12 = vweird.f32 %v3092_v20  ;;  %v2088_v1 = vpop.f32.mrf.mxu2 }
 0x453   :  { %3095 = vrcp.f32 %v4288_v26  ;;  %v2152_v29 = vpop.f32.mrf.mxu3  ;;  %vm2274_vm0 = vmor %vm2272_vm14, %vm2273_vm12  ;;  %v2293_v9 = vand.u32 2147483648, %v4288_v26  ;;  %v2291_v37 = vand.u32 2147483647, %v4288_v26  ;;  %vm2287_vm1 = vweird.f32 %v4288_v26 }
 0x454   :  { %v2269_v12 = vsub.f32 1.0, %v2268_v5  ;;  %3097 = vtanh.f32 %v2170_v19  ;;  %v1964_v19 = vadd.f32 %v4275_v42, %v4262_v28  ;;  %v2172_v22 = vadd.f32 %v2152_v29, %v2050_v62 }
 0x455   :  { %v2204_v63 = vpop.f32.mrf.mxu0  ;;  %v2294_v40 = vor.u32 1.1754944e-38, %v2293_v9  ;;  %vm2292_vm9 = vcmp.eq.f32.partialorder %v2291_v37, 8.507059e+37 }
 0x456   :  { %v2270_v35 = vmul.f32 %v3092_v20, %v2269_v12  ;;  %v2222_v16 = vadd.f32 %v2204_v63, %v2100_v3  ;;  %v1910_v12 = vadd.f32 %v4284_v24, %v4256_v61  ;;  %v2102_v43 = vadd.f32 %v2088_v1, %v1964_v19 }
 0x458   :  { %v3094_v34 = vpop.eup %3093  ;;  %v2271_v17 = vadd.f32 %v3092_v20, %v2270_v35  ;;  %v2941_v46 = vmul.f32 -1.442695, %v2222_v16 }
 0x459   :  { %v3096_v6 = vpop.eup %3095  ;;  %v4295_v18 = vadd.f32 1.0, %v3094_v34 }
 0x45a   :  { %v2275_v57 = vsel %vm2274_vm0, %v3092_v20, %v2271_v17  ;;  %v2283_v44 = vmul.f32 %v3096_v6, %v4288_v26  ;;  %3099 = vpow2.f32 %v2941_v46  ;;  %v3098_v39 = vpop.eup %3097  ;;  %vm2288_vm3 = vweird.f32 %v3096_v6  ;;  %v2091_v61 = vpop.f32.mrf.mxu2 }
 0x45b   :  { %v2280_v52 = vsel %vm2277_vm2, %v2279_v49, %v2275_v57  ;;  %3101 = vrcp.f32 %v4295_v18  ;;  %v2155_v14 = vpop.f32.mrf.mxu3  ;;  %vm2289_vm7 = vmor %vm2287_vm1, %vm2288_vm3  ;;  %v2308_v35 = vand.u32 2147483648, %v4295_v18  ;;  %v2306_v34 = vand.u32 2147483647, %v4295_v18 }
 0x45c   :  { %v2387_v47 = vmul.f32 %v3098_v39, %v2280_v52  ;;  %v2284_v25 = vsub.f32 1.0, %v2283_v44  ;;  %3103 = vtanh.f32 %v2171_v8  ;;  %v2051_v17 = vadd.f32 %v2033_v41, %v1910_v12 }
 0x45d   :  { %v2207_v58 = vpop.f32.mrf.mxu0  ;;  %vm2302_vm13 = vweird.f32 %v4295_v18  ;;  %v1965_v57 = vadd.f32 %v4275_v42, %v4266_v45  ;;  %v2309_v30 = vor.u32 1.1754944e-38, %v2308_v35  ;;  %vm2307_vm5 = vcmp.eq.f32.partialorder %v2306_v34, 8.507059e+37 }
 0x45e   :  { %v2223_v21 = vadd.f32 %v2207_v58, %v2101_v33  ;;  %2946 = vmatmul.msk.f32.vlgmr.msrb.gmra.mxu1 %vm290_vm4, %v2387_v47  ;;  %v2285_v11 = vmul.f32 %v3096_v6, %v2284_v25  ;;  %v2173_v44 = vadd.f32 %v2155_v14, %v2051_v17  ;;  %v1911_v47 = vadd.f32 %v4284_v24, %v4260_v0  ;;  %v2039_v0 = vpop.f32.mrf.mxu1 }
 0x45f   :  { %v2103_v25 = vadd.f32 %v2091_v61, %v1965_v57 }
 0x460   :  { %v3100_v38 = vpop.eup %3099  ;;  %v2942_v59 = vmul.f32 -1.442695, %v2223_v21  ;;  %v2286_v4 = vadd.f32 %v3096_v6, %v2285_v11  ;;  %v2052_v37 = vadd.f32 %v2036_v53, %v1911_v47 }
 0x461   :  { %v3102_v20 = vpop.eup %3101  ;;  %v4307_v5 = vadd.f32 1.0, %v3100_v38 }
 0x462   :  { %v2298_v51 = vmul.f32 %v3102_v20, %v4295_v18  ;;  %3105 = vpow2.f32 %v2942_v59  ;;  %v2290_v3 = vsel %vm2289_vm7, %v3096_v6, %v2286_v4  ;;  %v3104_v7 = vpop.eup %3103  ;;  %vm2303_vm10 = vweird.f32 %v3102_v20  ;;  %v2094_v19 = vpop.f32.mrf.mxu2 }
 0x463   :  { %3107 = vrcp.f32 %v4307_v5  ;;  %v2295_v26 = vsel %vm2292_vm9, %v2294_v40, %v2290_v3  ;;  %v2158_v6 = vpop.f32.mrf.mxu3  ;;  %vm2304_vm15 = vmor %vm2302_vm13, %vm2303_vm10  ;;  %v2323_v9 = vand.u32 2147483648, %v4307_v5  ;;  %v2321_v11 = vand.u32 2147483647, %v4307_v5 }
 0x464   :  { %v2299_v63 = vsub.f32 1.0, %v2298_v51  ;;  %v2388_v28 = vmul.f32 %v3104_v7, %v2295_v26  ;;  %3109 = vtanh.f32 %v2172_v22  ;;  %vm2317_vm8 = vweird.f32 %v4307_v5 }
 0x465   :  { %v2210_v29 = vpop.f32.mrf.mxu0  ;;  %v2174_v22 = vadd.f32 %v2158_v6, %v2052_v37  ;;  %v2324_v51 = vor.u32 1.1754944e-38, %v2323_v9  ;;  %vm2322_vm12 = vcmp.eq.f32.partialorder %v2321_v11, 8.507059e+37  ;;  %v2496_v6 = vld [vmem:[%s4556_s13 + $0x48] sm:$0xff] }
 0x466   :  { %v2224_v16 = vadd.f32 %v2210_v29, %v2102_v43  ;;  %2947 = vmatmul.msk.f32.gmra.mxu1 %vm290_vm4, %v2388_v28  ;;  %v2300_v2 = vmul.f32 %v3102_v20, %v2299_v63 }
 0x468   :  { %v3106_v46 = vpop.eup %3105  ;;  %v2943_v36 = vmul.f32 -1.442695, %v2224_v16  ;;  %v2301_v49 = vadd.f32 %v3102_v20, %v2300_v2  ;;  %v2497_v2 = vld [vmem:[%s4556_s13 + $0x50] sm:$0xff] }
 0x469   :  { %v3108_v8 = vpop.eup %3107  ;;  %v4319_v39 = vadd.f32 1.0, %v3106_v46 }
 0x46a   :  { %v2313_v52 = vmul.f32 %v3108_v8, %v4307_v5  ;;  %3111 = vpow2.f32 %v2943_v36  ;;  %v2305_v41 = vsel %vm2304_vm15, %v3102_v20, %v2301_v49  ;;  %v3110_v33 = vpop.eup %3109  ;;  %vm2318_vm6 = vweird.f32 %v3108_v8 }
 0x46b   :  { %3113 = vrcp.f32 %v4319_v39  ;;  %v2310_v18 = vsel %vm2307_vm5, %v2309_v30, %v2305_v41  ;;  %v1966_v20 = vadd.f32 %v4275_v42, %v4270_v31  ;;  %vm2319_vm11 = vmor %vm2317_vm8, %vm2318_vm6  ;;  %v2161_v7 = vpop.f32.mrf.mxu3  ;;  %v1912_v5 = vadd.f32 %v4284_v24, %v4264_v55  ;;  %v2498_v55 = vld [vmem:[%s4556_s13 + $0x58] sm:$0xff] }
 0x46c   :  { %v2314_v1 = vsub.f32 1.0, %v2313_v52  ;;  %v2389_v45 = vmul.f32 %v3110_v33, %v2310_v18  ;;  %3115 = vtanh.f32 %v2173_v44  ;;  %v2338_v29 = vand.u32 2147483648, %v4319_v39  ;;  %2532 = vmatpush.msrb.mxu2 %v2498_v55  ;;  %v2042_v44 = vpop.f32.mrf.mxu1 }
 0x46d   :  { %v2213_v58 = vpop.f32.mrf.mxu0  ;;  %v2104_v31 = vadd.f32 %v2094_v19, %v1966_v20  ;;  %v2336_v16 = vand.u32 2147483647, %v4319_v39  ;;  %v2053_v34 = vadd.f32 %v2039_v0, %v1912_v5  ;;  %vm2332_vm0 = vweird.f32 %v4319_v39 }
 0x46e   :  { %v2225_v14 = vadd.f32 %v2213_v58, %v2103_v25  ;;  %2948 = vmatmul.msk.f32.gmra.mxu1 %vm290_vm4, %v2389_v45  ;;  %v2315_v21 = vmul.f32 %v3108_v8, %v2314_v1  ;;  %v2339_v57 = vor.u32 1.1754944e-38, %v2338_v29  ;;  %2533 = vmatpush.msrb.mxu2 %v2497_v2  ;;  %v1913_v33 = vadd.f32 %v4284_v24, %v4268_v15  ;;  %v2494_v45 = vld [vmem:[%s4556_s13 + $0x38] sm:$0xff] }
 0x46f   :  { %v2175_v49 = vadd.f32 %v2161_v7, %v2053_v34  ;;  %vm2337_vm3 = vcmp.eq.f32.partialorder %v2336_v16, 8.507059e+37 }
 0x470   :  { %v3112_v62 = vpop.eup %3111  ;;  %v2944_v38 = vmul.f32 -1.442695, %v2225_v14  ;;  %v2316_v59 = vadd.f32 %v3108_v8, %v2315_v21  ;;  %2534 = vmatpush.msrb.mxu2 %v2496_v6  ;;  %v2493_v14 = vld [vmem:[%s4556_s13 + $0x30] sm:$0xff]  ;;  %v2054_v21 = vadd.f32 %v2042_v44, %v1913_v33  ;;  %v2986_v33 = vld [vmem:[%s4554_s11 + $0x2] ss:$0 sm:$0xff] }
 0x471   :  { %v3114_v4 = vpop.eup %3113  ;;  %v4331_v40 = vadd.f32 1.0, %v3112_v62  ;;  %v2492_v62 = vld [vmem:[%s4556_s13 + $0x28] sm:$0xff] }
 0x472   :  { %v2328_v3 = vmul.f32 %v3114_v4, %v4319_v39  ;;  %3117 = vpow2.f32 %v2944_v38  ;;  %v2320_v12 = vsel %vm2319_vm11, %v3108_v8, %v2316_v59  ;;  %v3116_v26 = vpop.eup %3115  ;;  %vm2333_vm14 = vweird.f32 %v3114_v4  ;;  %v2495_v39 = vld [vmem:[%s4556_s13 + $0x40] sm:$0xff] }
 0x473   :  { %3119 = vrcp.f32 %v4331_v40  ;;  %v2325_v43 = vsel %vm2322_vm12, %v2324_v51, %v2320_v12  ;;  %vm2334_vm2 = vmor %vm2332_vm0, %vm2333_vm14  ;;  %v2164_v25 = vpop.f32.mrf.mxu3  ;;  %v2353_v58 = vand.u32 2147483648, %v4331_v40  ;;  %2535 = vmatpush.msrb.mxu2 %v2495_v39  ;;  %v2351_v15 = vand.u32 2147483647, %v4331_v40  ;;  %v2488_v39 = vld [vmem:[%s4556_s13 + $0x8] sm:$0xff] }
 0x474   :  { %v2329_v42 = vsub.f32 1.0, %v2328_v3  ;;  %v2390_v63 = vmul.f32 %v3116_v26, %v2325_v43  ;;  %3121 = vtanh.f32 %v2174_v22  ;;  %vm2347_vm7 = vweird.f32 %v4331_v40  ;;  %v2491_v22 = vld [vmem:[%s4556_s13 + $0x20] sm:$0xff]  ;;  %v2045_v7 = vpop.f32.mrf.mxu1 }
 0x475   :  { %v2216_v28 = vpop.f32.mrf.mxu0  ;;  %2536 = vmatpush.msrb.mxu2 %v2494_v45  ;;  %v2176_v38 = vadd.f32 %v2164_v25, %v2054_v21  ;;  %vm2352_vm10 = vcmp.eq.f32.partialorder %v2351_v15, 8.507059e+37  ;;  %v2463_v25 = vmul.f32 %v4140_v50, %v4106_v10  ;;  %v2464_v15 = vmul.f32 %v4140_v50, %v4113_v48 }
 0x476   :  { %v2226_v35 = vadd.f32 %v2216_v28, %v2104_v31  ;;  %2949 = vmatmul.msk.f32.gmra.mxu1 %vm290_vm4, %v2390_v63  ;;  %v2330_v53 = vmul.f32 %v3114_v4, %v2329_v42  ;;  %vm2578_vm0 = vcmask 523264  }
 0x477   :  { %2537 = vmatpush.msrb.mxu2 %v2493_v14 }
 0x478   :  { %v3118_v17 = vpop.eup %3117  ;;  %v2945_v61 = vmul.f32 -1.442695, %v2226_v35  ;;  %v2331_v46 = vadd.f32 %v3114_v4, %v2330_v53 }
 0x479   :  { %v3120_v36 = vpop.eup %3119  ;;  %v4350_v8 = vadd.f32 1.0, %v3118_v17  ;;  %2538 = vmatpush.msrb.mxu2 %v2492_v62  ;;  %v2465_v62 = vmul.f32 %v4140_v50, %v4126_v32 }
 0x47a   :  { %v2343_v30 = vmul.f32 %v3120_v36, %v4331_v40  ;;  %3123 = vpow2.f32 %v2945_v61  ;;  %v2335_v52 = vsel %vm2334_vm2, %v3114_v4, %v2331_v46  ;;  %v3122_v41 = vpop.eup %3121  ;;  %vm2348_vm1 = vweird.f32 %v3120_v36 }
 0x47b   :  { %3125 = vrcp.f32 %v4350_v8  ;;  %v2340_v47 = vsel %vm2337_vm3, %v2339_v57, %v2335_v52  ;;  %vm2349_vm9 = vmor %vm2347_vm7, %vm2348_vm1  ;;  %v2354_v4 = vor.u32 1.1754944e-38, %v2353_v58  ;;  %v1914_v40 = vadd.f32 %v4284_v24, %v4278_v54  ;;  %2539 = vmatpush.msrb.mxu2 %v2491_v22  ;;  %v2167_v43 = vpop.f32.mrf.mxu3  ;;  %v2489_v52 = vld [vmem:[%s4556_s13 + $0x10] sm:$0xff] }
 0x47c   :  { %v2344_v18 = vsub.f32 1.0, %v2343_v30  ;;  %v2391_v1 = vmul.f32 %v3122_v41, %v2340_v47  ;;  %3127 = vtanh.f32 %v2175_v49  ;;  %v2368_v5 = vand.u32 2147483648, %v4350_v8  ;;  %v2490_v30 = vld [vmem:[%s4556_s13 + $0x18] sm:$0xff]  ;;  %v2487_v41 = vld [vmem:[%s4556_s13] sm:$0xff] }
 0x47d   :  { %v2366_v42 = vand.u32 2147483647, %v4350_v8  ;;  %v2055_v63 = vadd.f32 %v2045_v7, %v1914_v40  ;;  %vm2362_vm15 = vweird.f32 %v4350_v8  ;;  %2540 = vmatpush.msrb.mxu2 %v2490_v30  ;;  %vm2616_vm2 = vcmask 1045504  }
 0x47e   :  { %2950 = vmatmul.msk.f32.gmra.mxu1 %vm290_vm4, %v2391_v1  ;;  %v2345_v9 = vmul.f32 %v3120_v36, %v2344_v18  ;;  %v2369_v29 = vor.u32 1.1754944e-38, %v2368_v5  ;;  %vm2612_vm3 = vcmask 48128   ;;  %vm2745_vm1 = vcmask 3072  }
 0x47f   :  { %v2177_v24 = vadd.f32 %v2167_v43, %v2055_v63  ;;  %vm2367_vm6 = vcmp.eq.f32.partialorder %v2366_v42, 8.507059e+37  ;;  %2541 = vmatpush.msrb.mxu2 %v2489_v52 }
 0x480   :  { %v3124_v11 = vpop.eup %3123  ;;  %v2346_v37 = vadd.f32 %v3120_v36, %v2345_v9 }
 0x481   :  { %v3126_v0 = vpop.eup %3125  ;;  %v2266_v59 = vadd.f32 1.0, %v3124_v11  ;;  %2542 = vmatpush.msrb.mxu2 %v2488_v39 }
 0x482   :  { %v2358_v20 = vmul.f32 %v3126_v0, %v4350_v8  ;;  %v2350_v19 = vsel %vm2349_vm9, %v3120_v36, %v2346_v37  ;;  %v3128_v51 = vpop.eup %3127  ;;  %vm2363_vm13 = vweird.f32 %v3126_v0 }
 0x483   :  { %3129 = vrcp.f32 %v2266_v59  ;;  %v2355_v3 = vsel %vm2352_vm10, %v2354_v4, %v2350_v19  ;;  %vm2364_vm5 = vmor %vm2362_vm15, %vm2363_vm13  ;;  %v2383_v17 = vand.u32 2147483648, %v2266_v59  ;;  %v2381_v46 = vand.u32 2147483647, %v2266_v59  ;;  %2543 = vmatpush.msrb.mxu2 %v2487_v41 }
 0x484   :  { %v2359_v12 = vsub.f32 1.0, %v2358_v20  ;;  %v2392_v26 = vmul.f32 %v3128_v51, %v2355_v3  ;;  %3131 = vtanh.f32 %v2176_v38  ;;  %vm2377_vm11 = vweird.f32 %v2266_v59 }
 0x485   :  { %3133 = vtanh.f32 %v2177_v24  ;;  %v2384_v36 = vor.u32 1.1754944e-38, %v2383_v17  ;;  %vm2382_vm14 = vcmp.eq.f32.partialorder %v2381_v46, 8.507059e+37  ;;  %v2466_v4 = vmul.f32 %v4140_v50, %v4144_v27 }
 0x486   :  { %2951 = vmatmul.msk.f32.gmra.mxu1 %vm290_vm4, %v2392_v26  ;;  %v2360_v31 = vmul.f32 %v3126_v0, %v2359_v12  ;;  %v2467_v51 = vmul.f32 %v4140_v50, %v4166_v23  ;;  %v2468_v12 = vmul.f32 %v4140_v50, %v4182_v60 }
 0x488   :  { %v2361_v28 = vadd.f32 %v3126_v0, %v2360_v31  ;;  %v2469_v31 = vmul.f32 %v4140_v50, %v4195_v56 }
 0x489   :  { %v3130_v54 = vpop.eup %3129 }
 0x48a   :  { %v2373_v35 = vmul.f32 %v3130_v54, %v2266_v59  ;;  %v2365_v53 = vsel %vm2364_vm5, %v3126_v0, %v2361_v28  ;;  %v3132_v16 = vpop.eup %3131  ;;  %vm2378_vm8 = vweird.f32 %v3130_v54 }
 0x48b   :  { %v2370_v55 = vsel %vm2367_vm6, %v2369_v29, %v2365_v53  ;;  %vm2379_vm12 = vmor %vm2377_vm11, %vm2378_vm8  ;;  %v3134_v8 = vpop.eup %3133 }
 0x48c   :  { %v2374_v2 = vsub.f32 1.0, %v2373_v35  ;;  %v2393_v34 = vmul.f32 %v3132_v16, %v2370_v55 }
 0x48e   :  { %2952 = vmatmul.msk.f32.gmra.mxu1 %vm290_vm4, %v2393_v34  ;;  %v2375_v61 = vmul.f32 %v3130_v54, %v2374_v2  ;;  %v2987_v34 = vld [vmem:[%s4557_s14] ss:$0 sm:$0xff] }
 0x490   :  { %v2376_v6 = vadd.f32 %v3130_v54, %v2375_v61 }
 0x492   :  { %v2380_v49 = vsel %vm2379_vm12, %v3130_v54, %v2376_v6  ;;  %v2470_v54 = vmul.f32 %v4140_v50, %v4208_v13 }
 0x493   :  { %v2385_v57 = vsel %vm2382_vm14, %v2384_v36, %v2380_v49 }
 0x494   :  { %v2394_v44 = vmul.f32 %v3134_v8, %v2385_v57 }
 0x496   :  { %2953 = vmatmul.msk.f32.gmra.mxu1 %vm290_vm4, %v2394_v44  ;;  %vm2503_vm4 = vcmask 785408  }
 0x4db   :  { %v2439_v47 = vpop.f32.mrf.mxu1 }
 0x4dc   :  { %v2440_v18 = vadd.f32 %v2986_v33, %v2439_v47 }
 0x4de   :  { %v2471_v1 = vadd.f32 %v2463_v25, %v2440_v18  ;;  %v2577_v18 = vld [vmem:[%s4581_s25] sm:$0xf] }
 0x4df   :  { %v2611_v25 = vld [vmem:[%s4559_s16] sm:$0x3f] }
 0x4e0   :  { %v2479_v45 = vmax.f32 %v2471_v1, 0.0  ;;  %v2609_v1 = vld [vmem:[%s4558_s15 + $0x38] sm:$0xff] }
 0x4e2   :  { %2954 = vmatmul.msk.f32.vlgmr.msrb.gmra.mxu2 %vm2503_vm4, %v2479_v45  ;;  %v2608_v45 = vld [vmem:[%s4558_s15 + $0x30] sm:$0xff] }
 0x4e3   :  { %v2442_v58 = vpop.f32.mrf.mxu1 }
 0x4e4   :  { %v2443_v9 = vadd.f32 %v2986_v33, %v2442_v58  ;;  %v2607_v58 = vld [vmem:[%s4558_s15 + $0x28] sm:$0xff] }
 0x4e6   :  { %v2472_v14 = vadd.f32 %v2464_v15, %v2443_v9  ;;  %v2606_v9 = vld [vmem:[%s4558_s15 + $0x20] sm:$0xff] }
 0x4e7   :  { %v2610_v15 = vld [vmem:[%s4582_s0] sm:$0xf] }
 0x4e8   :  { %v2480_v21 = vmax.f32 %v2472_v14, 0.0  ;;  %v2605_v14 = vld [vmem:[%s4558_s15 + $0x18] sm:$0xff] }
 0x4ea   :  { %2955 = vmatmul.msk.f32.gmra.mxu2 %vm2503_vm4, %v2480_v21  ;;  %v2604_v21 = vld [vmem:[%s4558_s15 + $0x10] sm:$0xff] }
 0x4eb   :  { %v2445_v11 = vpop.f32.mrf.mxu1 }
 0x4ec   :  { %v2446_v37 = vadd.f32 %v2986_v33, %v2445_v11  ;;  %v2603_v11 = vld [vmem:[%s4558_s15 + $0x8] sm:$0xff] }
 0x4ee   :  { %v2473_v10 = vadd.f32 %v2465_v62, %v2446_v37  ;;  %v2602_v37 = vld [vmem:[%s4558_s15] sm:$0xff]  ;;  %v2684_v62 = vld [vmem:[%s4561_s18 + $0x78] sm:$0xff] }
 0x4f0   :  { %v2481_v0 = vmax.f32 %v2473_v10, 0.0  ;;  %v2683_v10 = vld [vmem:[%s4561_s18 + $0x70] sm:$0xff] }
 0x4f2   :  { %2956 = vmatmul.msk.f32.gmra.mxu2 %vm2503_vm4, %v2481_v0  ;;  %v2682_v0 = vld [vmem:[%s4561_s18 + $0x68] sm:$0xff] }
 0x4f3   :  { %v2448_v38 = vpop.f32.mrf.mxu1 }
 0x4f4   :  { %v2449_v59 = vadd.f32 %v2986_v33, %v2448_v38  ;;  %v2681_v38 = vld [vmem:[%s4561_s18 + $0x60] sm:$0xff] }
 0x4f6   :  { %v2474_v20 = vadd.f32 %v2466_v4, %v2449_v59  ;;  %v2680_v59 = vld [vmem:[%s4561_s18 + $0x58] sm:$0xff]  ;;  %v2679_v4 = vld [vmem:[%s4561_s18 + $0x50] sm:$0xff] }
 0x4f8   :  { %v2482_v48 = vmax.f32 %v2474_v20, 0.0  ;;  %v2678_v20 = vld [vmem:[%s4561_s18 + $0x48] sm:$0xff] }
 0x4fa   :  { %2957 = vmatmul.msk.f32.gmra.mxu2 %vm2503_vm4, %v2482_v48  ;;  %v2677_v48 = vld [vmem:[%s4561_s18 + $0x40] sm:$0xff] }
 0x4fb   :  { %v2451_v19 = vpop.f32.mrf.mxu1 }
 0x4fc   :  { %v2452_v22 = vadd.f32 %v2986_v33, %v2451_v19  ;;  %v2676_v19 = vld [vmem:[%s4561_s18 + $0x38] sm:$0xff] }
 0x4fe   :  { %v2475_v40 = vadd.f32 %v2467_v51, %v2452_v22  ;;  %v2675_v22 = vld [vmem:[%s4561_s18 + $0x30] sm:$0xff]  ;;  %v2674_v51 = vld [vmem:[%s4561_s18 + $0x28] sm:$0xff] }
 0x500   :  { %v2483_v32 = vmax.f32 %v2475_v40, 0.0  ;;  %v2673_v40 = vld [vmem:[%s4561_s18 + $0x20] sm:$0xff] }
 0x502   :  { %2958 = vmatmul.msk.f32.gmra.mxu2 %vm2503_vm4, %v2483_v32 }
 0x503   :  { %v2454_v3 = vpop.f32.mrf.mxu1 }
 0x504   :  { %v2455_v7 = vadd.f32 %v2986_v33, %v2454_v3  ;;  %v2672_v3 = vld [vmem:[%s4561_s18 + $0x18] sm:$0xff] }
 0x506   :  { %v2476_v26 = vadd.f32 %v2468_v12, %v2455_v7  ;;  %v2671_v7 = vld [vmem:[%s4561_s18 + $0x10] sm:$0xff]  ;;  %v2670_v12 = vld [vmem:[%s4561_s18 + $0x8] sm:$0xff] }
 0x508   :  { %v2484_v27 = vmax.f32 %v2476_v26, 0.0  ;;  %v2669_v26 = vld [vmem:[%s4561_s18] sm:$0xff] }
 0x50a   :  { %2959 = vmatmul.msk.f32.gmra.mxu2 %vm2503_vm4, %v2484_v27  ;;  %v2717_v27 = vld [vmem:[%s4563_s20 + $0x38] sm:$0xff] }
 0x50b   :  { %v2457_v5 = vpop.f32.mrf.mxu1  ;;  %2733 = vmatpush.msra.mxu0 %v2717_v27 }
 0x50c   :  { %v2458_v43 = vadd.f32 %v2986_v33, %v2457_v5  ;;  %v2716_v5 = vld [vmem:[%s4563_s20 + $0x30] sm:$0xff] }
 0x50d   :  { %2734 = vmatpush.msra.mxu0 %v2716_v5 }
 0x50e   :  { %v2477_v42 = vadd.f32 %v2469_v31, %v2458_v43  ;;  %v2715_v43 = vld [vmem:[%s4563_s20 + $0x28] sm:$0xff]  ;;  %v2714_v31 = vld [vmem:[%s4563_s20 + $0x20] sm:$0xff] }
 0x50f   :  { %2735 = vmatpush.msra.mxu0 %v2715_v43 }
 0x510   :  { %v2485_v23 = vmax.f32 %v2477_v42, 0.0  ;;  %v2713_v42 = vld [vmem:[%s4563_s20 + $0x18] sm:$0xff] }
 0x511   :  { %2736 = vmatpush.msra.mxu0 %v2714_v31 }
 0x512   :  { %2960 = vmatmul.msk.f32.gmra.mxu2 %vm2503_vm4, %v2485_v23  ;;  %v2712_v23 = vld [vmem:[%s4563_s20 + $0x10] sm:$0xff] }
 0x513   :  { %v2460_v63 = vpop.f32.mrf.mxu1  ;;  %2737 = vmatpush.msra.mxu0 %v2713_v42 }
 0x514   :  { %v2461_v28 = vadd.f32 %v2986_v33, %v2460_v63  ;;  %v2711_v63 = vld [vmem:[%s4563_s20 + $0x8] sm:$0xff] }
 0x515   :  { %2738 = vmatpush.msra.mxu0 %v2712_v23 }
 0x516   :  { %v2478_v24 = vadd.f32 %v2470_v54, %v2461_v28  ;;  %v2988_v54 = vld [vmem:[%s4560_s17] ss:$0 sm:$0xff] }
 0x517   :  { %2739 = vmatpush.msra.mxu0 %v2711_v63 }
 0x518   :  { %v2486_v60 = vmax.f32 %v2478_v24, 0.0 }
 0x51a   :  { %2961 = vmatmul.msk.f32.gmra.mxu2 %vm2503_vm4, %v2486_v60 }
 0x565   :  { %v2545_v29 = vpop.f32.mrf.mxu2 }
 0x566   :  { %v2546_v39 = vadd.f32 %v2987_v34, %v2545_v29 }
 0x568   :  { %v2569_v47 = vmax.f32 %v2546_v39, 0.0 }
 0x56d   :  { %v2548_v35 = vpop.f32.mrf.mxu2 }
 0x56e   :  { %v2549_v30 = vadd.f32 %v2987_v34, %v2548_v35 }
 0x570   :  { %v2570_v33 = vmax.f32 %v2549_v30, 0.0 }
 0x575   :  { %v2551_v53 = vpop.f32.mrf.mxu2 }
 0x576   :  { %v2552_v57 = vadd.f32 %v2987_v34, %v2551_v53  ;;  %v2710_v53 = vld [vmem:[%s4563_s20] sm:$0xff] }
 0x577   :  { %2740 = vmatpush.msra.mxu0 %v2710_v53 }
 0x578   :  { %v2571_v41 = vmax.f32 %v2552_v57, 0.0 }
 0x57d   :  { %v2554_v16 = vpop.f32.mrf.mxu2 }
 0x57e   :  { %v2555_v49 = vadd.f32 %v2987_v34, %v2554_v16  ;;  %v2989_v16 = vld [vmem:[%s4562_s19] ss:$0 sm:$0xff] }
 0x580   :  { %v2572_v52 = vmax.f32 %v2555_v49, 0.0 }
 0x585   :  { %v2557_v55 = vpop.f32.mrf.mxu2 }
 0x586   :  { %v2558_v13 = vadd.f32 %v2987_v34, %v2557_v55 }
 0x588   :  { %v2573_v44 = vmax.f32 %v2558_v13, 0.0 }
 0x58d   :  { %v2560_v2 = vpop.f32.mrf.mxu2 }
 0x58e   :  { %v2561_v6 = vadd.f32 %v2987_v34, %v2560_v2 }
 0x590   :  { %v2574_v8 = vmax.f32 %v2561_v6, 0.0 }
 0x595   :  { %v2563_v56 = vpop.f32.mrf.mxu2 }
 0x596   :  { %v2564_v61 = vadd.f32 %v2987_v34, %v2563_v56 }
 0x598   :  { %v2575_v36 = vmax.f32 %v2564_v61, 0.0 }
 0x59d   :  { %v2566_v17 = vpop.f32.mrf.mxu2 }
 0x59e   :  { %v2567_v46 = vadd.f32 %v2987_v34, %v2566_v17  ;;  %v2990_v34 = vld [vmem:[#allocation3] ss:$0 sm:$0xff] }
 0x5a0   :  { %v2576_v50 = vmax.f32 %v2567_v46, 0.0 }
 0x5a2   :  { %2590 = vmatpush.msrb.mxu3 %v2576_v50 }
 0x5a4   :  { %2591 = vmatpush.msrb.mxu3 %v2575_v36 }
 0x5a6   :  { %2592 = vmatpush.msrb.mxu3 %v2574_v8 }
 0x5a8   :  { %2593 = vmatpush.msrb.mxu3 %v2573_v44 }
 0x5aa   :  { %2594 = vmatpush.msrb.mxu3 %v2572_v52 }
 0x5ac   :  { %2595 = vmatpush.msrb.mxu3 %v2571_v41 }
 0x5ae   :  { %2596 = vmatpush.msrb.mxu3 %v2570_v33 }
 0x5b0   :  { %2597 = vmatpush.msrb.mxu3 %v2569_v47 }
 0x5b1   :  { %2962 = vmatmul.msk.f32.vlgmr.msrb.gmra.mxu3 %vm2578_vm0, %v2577_v18 }
 0x5b2   :  { %2963 = vmatpush.msk.msra.mxu3 %vm2616_vm2, %v2611_v25 }
 0x5b4   :  { %2651 = vmatpush.msrb.mxu3 %v2609_v1 }
 0x5b6   :  { %2652 = vmatpush.msrb.mxu3 %v2608_v45 }
 0x5b8   :  { %2653 = vmatpush.msrb.mxu3 %v2607_v58 }
 0x5b9   :  { %2964 = vmatmul.msk.f32.vlgmr.msra.gmra.mxu3 %vm2612_vm3, %v2610_v15 }
 0x5ba   :  { %2654 = vmatpush.msrb.mxu3 %v2606_v9 }
 0x5bc   :  { %2655 = vmatpush.msrb.mxu3 %v2605_v14 }
 0x5be   :  { %2656 = vmatpush.msrb.mxu3 %v2604_v21 }
 0x5c0   :  { %2657 = vmatpush.msrb.mxu3 %v2603_v11 }
 0x5c2   :  { %2658 = vmatpush.msrb.mxu3 %v2602_v37 }
 0x5c4   :  { %2689 = vmatpush.msra.mxu3 %v2684_v62 }
 0x5c6   :  { %2690 = vmatpush.msra.mxu3 %v2683_v10 }
 0x5c8   :  { %2691 = vmatpush.msra.mxu3 %v2682_v0 }
 0x5ca   :  { %2692 = vmatpush.msra.mxu3 %v2681_v38 }
 0x5cc   :  { %2693 = vmatpush.msra.mxu3 %v2680_v59 }
 0x5ce   :  { %2694 = vmatpush.msra.mxu3 %v2679_v4 }
 0x5d0   :  { %2695 = vmatpush.msra.mxu3 %v2678_v20 }
 0x5d2   :  { %2696 = vmatpush.msra.mxu3 %v2677_v48 }
 0x5d4   :  { %2697 = vmatpush.msra.mxu3 %v2676_v19 }
 0x5d6   :  { %2698 = vmatpush.msra.mxu3 %v2675_v22 }
 0x5d8   :  { %2699 = vmatpush.msra.mxu3 %v2674_v51 }
 0x5da   :  { %2700 = vmatpush.msra.mxu3 %v2673_v40 }
 0x5dc   :  { %2701 = vmatpush.msra.mxu3 %v2672_v3 }
 0x5de   :  { %2702 = vmatpush.msra.mxu3 %v2671_v7 }
 0x5e0   :  { %2703 = vmatpush.msra.mxu3 %v2670_v12 }
 0x5e2   :  { %2704 = vmatpush.msra.mxu3 %v2669_v26 }
 0x634   :  { %v2599_v32 = vpop.f32.mrf.mxu3 }
 0x635   :  { %2965 = vmatmul.msk.f32.vlgmr.msrb.gmra.mxu3 %vm2578_vm0, %v2599_v32 }
 0x63c   :  { %v2637_v28 = vpop.f32.mrf.mxu3 }
 0x6b8   :  { %v2660_v24 = vpop.f32.mrf.mxu3 }
 0x6b9   :  { %v2661_v60 = vadd.f32 %v2660_v24, %v2637_v28 }
 0x6bb   :  { %v2667_v29 = vadd.f32 %v2988_v54, %v2661_v60 }
 0x6bd   :  { %v2668_v35 = vmax.f32 %v2667_v29, 0.0 }
 0x6bf   :  { %2705 = vmatmul.f32.vlgmr.msra.gmra.mxu3 %v2668_v35 }
 0x742   :  { %v2706_v55 = vpop.f32.mrf.mxu3 }
 0x743   :  { %v2707_v2 = vadd.f32 %v2989_v16, %v2706_v55 }
 0x745   :  { %v2709_v56 = vmax.f32 %v2707_v2, 0.0 }
 0x747   :  { %2966 = vmatmul.msk.f32.vlgmr.msra.gmra.mxu0 %vm2578_vm0, %v2709_v56 }
 0x7c4   :  { %v2742_v17 = vpop.f32.mrf.mxu0 }
 0x7c5   :  { %v2743_v61 = vadd.f32 %v2990_v34, %v2742_v17 }
 0x7c7   :  { %2746 = vst.msk [vmem:[%s4565_s22] sm:$0xf] %vm2745_vm1, %v2743_v61 }
 0x7c8   :  { %2751 = vsyncpa [#allocation5], 1 }
 0x7c9   :  { %2752 = vsyncpa [#allocation7], 1 }

</bundles_post_ra>
